<compile_context>
chip_gen: v6e
topology: v6e:2x2x1
jax: 0.10.0
libtpu: 0.0.40
codegen_flags: <defaults>
</compile_context>

<pallas_src>
import numpy as np
import jax
import jax.numpy as jnp
from jax.experimental import pallas as pl
from jax.experimental.pallas import tpu as pltpu


# ----------------------------- kernels --------------------------------------


def _conv3x3_bn_stats_kernel(x_ref, top_ref, bot_ref, w1_ref, b1_ref,
                             y1_ref, st_ref, pad_ref):
    """ReLU -> 3x3 conv (9 per-tap MXU matmuls) -> bias; emits BN1 partials.

    x_ref   : (1, TH, W, Cp)   f32   row-tile of one image (unpadded NHWC)
    top_ref : (1, 1, W, Cp)    f32   row just above the tile (clamped at top)
    bot_ref : (1, 1, W, Cp)    f32   row just below the tile (clamped at bottom)
    w1_ref  : (9, Cp, Cp)      bf16  conv taps, [tap, in, out]
    b1_ref  : (1, Cp)          f32
    y1_ref  : (1, TH*W, Cp)    bf16  conv1 output (pre-BN)
    st_ref  : (1, 2, Cp)       f32   per-tile [sum, sum_sq]
    pad_ref : (TH+2, W+2, Cp)  f32   VMEM scratch: ReLU'd tile with 1-px halo
    """
    TH = x_ref.shape[1]
    W = x_ref.shape[2]
    Cp = x_ref.shape[3]
    i = pl.program_id(1)
    is_top = i == 0
    is_bot = i == pl.num_programs(1) - 1

    # Zero only the halo columns; interior/halo rows are fully overwritten.
    zero_col = jnp.zeros((TH + 2, 1, Cp), jnp.float32)
    pad_ref[:, 0:1, :] = zero_col
    pad_ref[:, W + 1:W + 2, :] = zero_col

    # Halo rows: neighbour row (ReLU'd), or zeros at the image border.
    top = jnp.maximum(top_ref[0], 0.0)                    # (1, W, Cp)
    pad_ref[0:1, 1:W + 1, :] = jnp.where(is_top, jnp.zeros_like(top), top)
    bot = jnp.maximum(bot_ref[0], 0.0)
    pad_ref[TH + 1:TH + 2, 1:W + 1, :] = jnp.where(is_bot, jnp.zeros_like(bot), bot)

    # Interior: ReLU of the tile itself.
    pad_ref[1:TH + 1, 1:W + 1, :] = jnp.maximum(x_ref[0], 0.0)

    # 3x3 conv as 9 per-tap matmuls (bf16 operands, f32 accumulation).  No
    # im2col scratch: each tap reads a shifted view of pad_ref directly.
    acc = None
    for di in range(3):
        for dj in range(3):
            t = di * 3 + dj
            patch = (pad_ref[di:di + TH, dj:dj + W, :]
                     .reshape(TH * W, Cp).astype(jnp.bfloat16))
            contrib = jnp.dot(patch, w1_ref[t],
                              preferred_element_type=jnp.float32)
            acc = contrib if acc is None else acc + contrib
    y = acc + b1_ref[...]

    y1_ref[0] = y.astype(jnp.bfloat16)

    # Partial BatchNorm statistics for this tile (finalized outside).
    st_ref[0, 0:1, :] = jnp.sum(y, axis=0, keepdims=True)
    st_ref[0, 1:2, :] = jnp.sum(y * y, axis=0, keepdims=True)


def _bn1_relu_conv1x1_kernel(y1_ref, sc1_ref, sh1_ref, w2_ref, b2_ref,
                             z2_ref, st_ref):
    """BN1 (precomputed scale/shift) -> ReLU -> 1x1 conv; emits BN2 partials.

    y1_ref : (TR, Cp) bf16   sc1/sh1 : (1, Cp) f32   w2 : (Cp, Cp) bf16
    b2_ref : (1, Cp)  f32    z2_ref  : (TR, Cp) f32  st_ref : (1, 2, Cp) f32
    """
    y = y1_ref[...].astype(jnp.float32) * sc1_ref[...] + sh1_ref[...]
    h = jnp.maximum(y, 0.0).astype(jnp.bfloat16)
    z = jnp.dot(h, w2_ref[...], preferred_element_type=jnp.float32) + b2_ref[...]
    z2_ref[...] = z
    st_ref[0, 0:1, :] = jnp.sum(z, axis=0, keepdims=True)
    st_ref[0, 1:2, :] = jnp.sum(z * z, axis=0, keepdims=True)


def _bn2_residual_kernel(x_ref, z_ref, sc_ref, sh_ref, out_ref):
    """out = x + BN2(z) on a lane-dense (rows, Cp) view."""
    out_ref[...] = x_ref[...] + z_ref[...] * sc_ref[...] + sh_ref[...]


# ----------------------------- tiling helpers ---------------------------------


def _divisors(n):
    ds = set()
    d = 1
    while d * d <= n:
        if n % d == 0:
            ds.add(d)
            ds.add(n // d)
        d += 1
    return sorted(ds)


def _pick_row_tile(H, W, Cp, budget=4 * 1024 * 1024):
    """Row-tile TH for pass 1: divisor of H, per-step buffers within `budget`,
    capped at H//2 (when possible) so even small images get >1 spatial step."""
    per_row = W * Cp * 4 + (W + 2) * Cp * 4 + W * Cp * 2   # x + pad scratch + y1
    cap = min(H, max(1, budget // per_row), max(8, H // 2))
    cands = [d for d in _divisors(H)
             if d <= cap and ((d * W) % 8 == 0 or d == H)]
    return max(cands) if cands else H


def _pick_rows(rows, Cp, budget=4 * 1024 * 1024):
    """Row tile for passes 2/3: largest divisor of `rows` that is a multiple of
    8 (or the full extent) with an f32 block within `budget`."""
    # TODO(synk): awkward row counts with no multiple-of-8 divisor fall back to
    # a single full-extent tile; a remainder grid step would be nicer.
    cap = min(rows, max(8, budget // (Cp * 4)))
    cands = [d for d in _divisors(rows)
             if d <= cap and (d % 8 == 0 or d == rows)]
    return max(cands) if cands else rows


# ----------------------------- wrapper ---------------------------------------


@jax.jit
def resblock_pallas(x_nchw, w1_oihw, b1, g1, be1, w2_oihw, b2, g2, be2):
    """ResBlock forward.  x_nchw: (N, C, H, W) f32; weights in PyTorch layouts."""
    N, C, H, W = x_nchw.shape
    eps = 1e-5
    cnt = N * H * W
    Cp = ((C + 127) // 128) * 128          # lane-dense channel count

    # TODO(synk): the NCHW<->NHWC transposes and channel zero-pad are wrapper
    # XLA passes; in a full pipeline neighbouring ops would produce/consume the
    # padded NHWC layout directly (or the transpose would be folded into the
    # first/last kernels via the XLU).
    x_nhwc = jnp.transpose(x_nchw, (0, 2, 3, 1))
    if Cp != C:
        x_nhwc = jnp.pad(x_nhwc, ((0, 0), (0, 0), (0, 0), (0, Cp - C)))

    pad_c = (lambda v: jnp.pad(v, (0, Cp - C))) if Cp != C else (lambda v: v)
    b1p, g1p, be1p = pad_c(b1), pad_c(g1), pad_c(be1)
    b2p, g2p, be2p = pad_c(b2), pad_c(g2), pad_c(be2)

    # Packed bf16 conv weights for the MXU (f32 accumulation in-kernel).
    w1_taps = jnp.transpose(w1_oihw, (2, 3, 1, 0)).reshape(9, C, C)
    if Cp != C:
        w1_taps = jnp.pad(w1_taps, ((0, 0), (0, Cp - C), (0, Cp - C)))
    w1_taps = w1_taps.astype(jnp.bfloat16)

    w2_mat = jnp.transpose(w2_oihw[:, :, 0, 0], (1, 0))
    if Cp != C:
        w2_mat = jnp.pad(w2_mat, ((0, Cp - C), (0, Cp - C)))
    w2_mat = w2_mat.astype(jnp.bfloat16)

    # ---- Pass 1: ReLU -> 3x3 conv (+bias) per row-tile; BN1 partial sums -----
    TH = _pick_row_tile(H, W, Cp)
    HT = H // TH
    y1, st1 = pl.pallas_call(
        _conv3x3_bn_stats_kernel,
        out_shape=(jax.ShapeDtypeStruct((N, H * W, Cp), jnp.bfloat16),
                   jax.ShapeDtypeStruct((N * HT, 2, Cp), jnp.float32)),
        grid=(N, HT),
        in_specs=[
            pl.BlockSpec((1, TH, W, Cp), lambda n, i: (n, i, 0, 0)),
            # 1-row halos above/below the tile (clamped; zeroed in-kernel at
            # the image borders).
            pl.BlockSpec((1, 1, W, Cp),
                         lambda n, i: (n, jnp.maximum(i * TH - 1, 0), 0, 0)),
            pl.BlockSpec((1, 1, W, Cp),
                         lambda n, i: (n, jnp.minimum((i + 1) * TH, H - 1), 0, 0)),
            pl.BlockSpec((9, Cp, Cp), lambda n, i: (0, 0, 0)),
            pl.BlockSpec((1, Cp), lambda n, i: (0, 0)),
        ],
        out_specs=(pl.BlockSpec((1, TH * W, Cp), lambda n, i: (n, i, 0)),
                   pl.BlockSpec((1, 2, Cp), lambda n, i: (n * HT + i, 0, 0))),
        scratch_shapes=[pltpu.VMEM((TH + 2, W + 2, Cp), jnp.float32)],
        compiler_params=pltpu.CompilerParams(
            dimension_semantics=("parallel", "parallel"),
            vmem_limit_bytes=32 * 1024 * 1024),
        cost_estimate=pl.CostEstimate(
            flops=2 * N * H * W * 9 * Cp * Cp,
            transcendentals=0,
            bytes_accessed=N * H * W * Cp * (4 + 2) + 9 * Cp * Cp * 2),
    )(x_nhwc, x_nhwc, x_nhwc, w1_taps, b1p.reshape(1, Cp))

    # Finalize BN1: global biased batch stats (PyTorch training-mode semantics).
    s1 = jnp.sum(st1, axis=0)
    mean1 = s1[0] / cnt
    var1 = jnp.maximum(s1[1] / cnt - mean1 * mean1, 0.0)
    scale1 = g1p * jax.lax.rsqrt(var1 + eps)
    shift1 = be1p - mean1 * scale1

    # ---- Pass 2: BN1 -> ReLU -> 1x1 conv (+bias); BN2 partial sums -----------
    R = N * H * W
    tr = _pick_rows(R, Cp)
    nt = R // tr
    z2, st2 = pl.pallas_call(
        _bn1_relu_conv1x1_kernel,
        out_shape=(jax.ShapeDtypeStruct((R, Cp), jnp.float32),
                   jax.ShapeDtypeStruct((nt, 2, Cp), jnp.float32)),
        grid=(nt,),
        in_specs=[
            pl.BlockSpec((tr, Cp), lambda i: (i, 0)),
            pl.BlockSpec((1, Cp), lambda i: (0, 0)),
            pl.BlockSpec((1, Cp), lambda i: (0, 0)),
            pl.BlockSpec((Cp, Cp), lambda i: (0, 0)),
            pl.BlockSpec((1, Cp), lambda i: (0, 0)),
        ],
        out_specs=(pl.BlockSpec((tr, Cp), lambda i: (i, 0)),
                   pl.BlockSpec((1, 2, Cp), lambda i: (i, 0, 0))),
        compiler_params=pltpu.CompilerParams(
            dimension_semantics=("parallel",),
            vmem_limit_bytes=32 * 1024 * 1024),
        cost_estimate=pl.CostEstimate(
            flops=2 * R * Cp * Cp,
            transcendentals=0,
            bytes_accessed=R * Cp * (2 + 4) + Cp * Cp * 2),
    )(y1.reshape(R, Cp), scale1.reshape(1, Cp), shift1.reshape(1, Cp),
      w2_mat, b2p.reshape(1, Cp))

    # Finalize BN2.
    s2 = jnp.sum(st2, axis=0)
    mean2 = s2[0] / cnt
    var2 = jnp.maximum(s2[1] / cnt - mean2 * mean2, 0.0)
    scale2 = g2p * jax.lax.rsqrt(var2 + eps)
    shift2 = be2p - mean2 * scale2

    # ---- Pass 3: BN2 + residual add on a lane-dense (R, Cp) view -------------
    tr3 = _pick_rows(R, Cp)
    nt3 = R // tr3
    out_flat = pl.pallas_call(
        _bn2_residual_kernel,
        out_shape=jax.ShapeDtypeStruct((R, Cp), jnp.float32),
        grid=(nt3,),
        in_specs=[
            pl.BlockSpec((tr3, Cp), lambda i: (i, 0)),
            pl.BlockSpec((tr3, Cp), lambda i: (i, 0)),
            pl.BlockSpec((1, Cp), lambda i: (0, 0)),
            pl.BlockSpec((1, Cp), lambda i: (0, 0)),
        ],
        out_specs=pl.BlockSpec((tr3, Cp), lambda i: (i, 0)),
        compiler_params=pltpu.CompilerParams(
            dimension_semantics=("parallel",),
            vmem_limit_bytes=32 * 1024 * 1024),
    )(x_nhwc.reshape(R, Cp), z2, scale2.reshape(1, Cp), shift2.reshape(1, Cp))

    out_nhwc = out_flat.reshape(N, H, W, Cp)[:, :, :, :C]
    return jnp.transpose(out_nhwc, (0, 3, 1, 2))   # back to NCHW


# ----------------------------- reference --------------------------------------


def resblock_ref(x, w1, b1, g1, be1, w2, b2, g2, be2):
    """Pure-JAX f32 reference in NCHW, mirroring the PyTorch module."""
    eps = 1e-5

    def bn(y, g, be):
        mean = jnp.mean(y, axis=(0, 2, 3), keepdims=True)
        var = jnp.mean((y - mean) ** 2, axis=(0, 2, 3), keepdims=True)
        return (y - mean) / jnp.sqrt(var + eps) * g[None, :, None, None] \
            + be[None, :, None, None]

    h = jnp.maximum(x, 0.0)
    y = jax.lax.conv_general_dilated(
        h, w1, (1, 1), "SAME",
        dimension_numbers=("NCHW", "OIHW", "NCHW")) + b1[None, :, None, None]
    y = bn(y, g1, be1)
    y = jnp.maximum(y, 0.0)
    y = jax.lax.conv_general_dilated(
        y, w2, (1, 1), "SAME",
        dimension_numbers=("NCHW", "OIHW", "NCHW")) + b2[None, :, None, None]
    y = bn(y, g2, be2)
    return x + y


if __name__ == "__main__":
    # Small shapes: batch=2, dim=8 channels, 16x16 spatial.
    N, C, H, W = 2, 8, 16, 16

    key = jax.random.PRNGKey(0)
    kx, kw1, kb1, kw2, kb2, kg1, kg2 = jax.random.split(key, 7)

    x = jax.random.normal(kx, (N, C, H, W), jnp.float32)

    # Deterministic synthetic parameters (PyTorch Conv2d OIHW layout).
    w1 = 0.1 * jax.random.normal(kw1, (C, C, 3, 3), jnp.float32)
    b1 = 0.05 * jax.random.normal(kb1, (C,), jnp.float32)
    w2 = 0.1 * jax.random.normal(kw2, (C, C, 1, 1), jnp.float32)
    b2 = 0.05 * jax.random.normal(kb2, (C,), jnp.float32)
    gamma1 = 1.0 + 0.1 * jax.random.normal(kg1, (C,), jnp.float32)
    beta1 = jnp.zeros((C,), jnp.float32)
    gamma2 = 1.0 + 0.1 * jax.random.normal(kg2, (C,), jnp.float32)
    beta2 = jnp.zeros((C,), jnp.float32)

    out = resblock_pallas(x, w1, b1, gamma1, beta1, w2, b2, gamma2, beta2)
    out = jax.block_until_ready(out)

    ref = resblock_ref(x, w1, b1, gamma1, beta1, w2, b2, gamma2, beta2)
    # bf16 MXU operands and bf16 storage of the conv1 output (with f32
    # accumulation and f32 BN statistics) introduce ~1e-3..1e-2 absolute
    # deviation vs. the pure-f32 reference.
    np.testing.assert_allclose(np.asarray(out), np.asarray(ref),
                               rtol=2e-2, atol=2e-2)

    print("KERNEL_OK")
</pallas_src>

<mosaic_0001>
module attributes {stable_mosaic.version = 11 : i64} {
  func.func @_conv3x3_bn_stats_kernel(%arg0: i32, %arg1: i32, %arg2: memref<1x8x16x128xf32, #tpu.memory_space<vmem>>, %arg3: memref<1x1x16x128xf32, #tpu.memory_space<vmem>>, %arg4: memref<1x1x16x128xf32, #tpu.memory_space<vmem>>, %arg5: memref<9x128x128xbf16, #tpu.memory_space<vmem>>, %arg6: memref<1x128xf32, #tpu.memory_space<vmem>>, %arg7: memref<1x128x128xbf16, #tpu.memory_space<vmem>>, %arg8: memref<1x2x128xf32, #tpu.memory_space<vmem>>, %arg9: memref<10x18x128xf32, #tpu.memory_space<vmem>>) attributes {dimension_semantics = [#tpu.dimension_semantics<parallel>, #tpu.dimension_semantics<parallel>], iteration_bounds = array<i64: 2, 2>, scalar_prefetch = 0 : i64, scratch_operands = 1 : i64, tpu.core_type = #tpu.core_type<tc>, window_params = [{transform_indices = @transform_0, window_bounds = array<i64: 1, 8, 16, 128>}, {transform_indices = @transform_1, window_bounds = array<i64: 1, 1, 16, 128>}, {transform_indices = @transform_2, window_bounds = array<i64: 1, 1, 16, 128>}, {pipeline_mode = #tpu.pipeline_mode<synchronous>, transform_indices = @transform_3, window_bounds = array<i64: 9, 128, 128>}, {pipeline_mode = #tpu.pipeline_mode<synchronous>, transform_indices = @transform_4, window_bounds = array<i64: 1, 128>}, {transform_indices = @transform_5, window_bounds = array<i64: 1, 128, 128>}, {transform_indices = @transform_6, window_bounds = array<i64: 1, 2, 128>}]} {
    %c0_i32 = arith.constant 0 : i32
    %0 = arith.cmpi eq, %arg1, %c0_i32 : i32
    %c1_i32 = arith.constant 1 : i32
    %1 = arith.cmpi eq, %arg1, %c1_i32 : i32
    %cst = arith.constant 0.000000e+00 : f32
    %2 = vector.broadcast %cst : f32 to vector<10x1x128xf32>
    %c0 = arith.constant 0 : index
    %c0_0 = arith.constant 0 : index
    %c0_1 = arith.constant 0 : index
    %3 = vector.load %arg9[%c0, %c0_0, %c0_1] : memref<10x18x128xf32, #tpu.memory_space<vmem>>, vector<10x1x128xf32>
    tpu.vector_store %arg9[%c0, %c0_0, %c0_1], %2 {strides = array<i32>} : memref<10x18x128xf32, #tpu.memory_space<vmem>>, vector<10x1x128xf32>,
    %c0_2 = arith.constant 0 : index
    %c17 = arith.constant 17 : index
    %c0_3 = arith.constant 0 : index
    %4 = vector.load %arg9[%c0_2, %c17, %c0_3] : memref<10x18x128xf32, #tpu.memory_space<vmem>>, vector<10x1x128xf32>
    tpu.vector_store %arg9[%c0_2, %c17, %c0_3], %2 {strides = array<i32>} : memref<10x18x128xf32, #tpu.memory_space<vmem>>, vector<10x1x128xf32>,
    %c0_4 = arith.constant 0 : index
    %c0_5 = arith.constant 0 : index
    %c0_6 = arith.constant 0 : index
    %c0_7 = arith.constant 0 : index
    %5 = vector.load %arg3[%c0_4, %c0_5, %c0_6, %c0_7] : memref<1x1x16x128xf32, #tpu.memory_space<vmem>>, vector<1x1x16x128xf32>
    %6 = vector.shape_cast %5 : vector<1x1x16x128xf32> to vector<1x16x128xf32>
    %cst_8 = arith.constant 0.000000e+00 : f32
    %7 = vector.broadcast %cst_8 : f32 to vector<1x16x128xf32>
    %8 = arith.maximumf %6, %7 : vector<1x16x128xf32>
    %cst_9 = arith.constant 0.000000e+00 : f32
    %9 = vector.broadcast %cst_9 : f32 to vector<1x16x128xf32>
    %10 = arith.select %0, %9, %8 : vector<1x16x128xf32>
    %c0_10 = arith.constant 0 : index
    %c1 = arith.constant 1 : index
    %c0_11 = arith.constant 0 : index
    %11 = vector.load %arg9[%c0_10, %c1, %c0_11] : memref<10x18x128xf32, #tpu.memory_space<vmem>>, vector<1x16x128xf32>
    tpu.vector_store %arg9[%c0_10, %c1, %c0_11], %10 {strides = array<i32>} : memref<10x18x128xf32, #tpu.memory_space<vmem>>, vector<1x16x128xf32>,
    %c0_12 = arith.constant 0 : index
    %c0_13 = arith.constant 0 : index
    %c0_14 = arith.constant 0 : index
    %c0_15 = arith.constant 0 : index
    %12 = vector.load %arg4[%c0_12, %c0_13, %c0_14, %c0_15] : memref<1x1x16x128xf32, #tpu.memory_space<vmem>>, vector<1x1x16x128xf32>
    %13 = vector.shape_cast %12 : vector<1x1x16x128xf32> to vector<1x16x128xf32>
    %cst_16 = arith.constant 0.000000e+00 : f32
    %14 = vector.broadcast %cst_16 : f32 to vector<1x16x128xf32>
    %15 = arith.maximumf %13, %14 : vector<1x16x128xf32>
    %cst_17 = arith.constant 0.000000e+00 : f32
    %16 = vector.broadcast %cst_17 : f32 to vector<1x16x128xf32>
    %17 = arith.select %1, %16, %15 : vector<1x16x128xf32>
    %c9 = arith.constant 9 : index
    %c1_18 = arith.constant 1 : index
    %c0_19 = arith.constant 0 : index
    %18 = vector.load %arg9[%c9, %c1_18, %c0_19] : memref<10x18x128xf32, #tpu.memory_space<vmem>>, vector<1x16x128xf32>
    tpu.vector_store %arg9[%c9, %c1_18, %c0_19], %17 {strides = array<i32>} : memref<10x18x128xf32, #tpu.memory_space<vmem>>, vector<1x16x128xf32>,
    %c0_20 = arith.constant 0 : index
    %c0_21 = arith.constant 0 : index
    %c0_22 = arith.constant 0 : index
    %c0_23 = arith.constant 0 : index
    %19 = vector.load %arg2[%c0_20, %c0_21, %c0_22, %c0_23] : memref<1x8x16x128xf32, #tpu.memory_space<vmem>>, vector<1x8x16x128xf32>
    %20 = vector.shape_cast %19 : vector<1x8x16x128xf32> to vector<8x16x128xf32>
    %cst_24 = arith.constant 0.000000e+00 : f32
    %21 = vector.broadcast %cst_24 : f32 to vector<8x16x128xf32>
    %22 = arith.maximumf %20, %21 : vector<8x16x128xf32>
    %c1_25 = arith.constant 1 : index
    %c1_26 = arith.constant 1 : index
    %c0_27 = arith.constant 0 : index
    %23 = vector.load %arg9[%c1_25, %c1_26, %c0_27] : memref<10x18x128xf32, #tpu.memory_space<vmem>>, vector<8x16x128xf32>
    tpu.vector_store %arg9[%c1_25, %c1_26, %c0_27], %22 {strides = array<i32>} : memref<10x18x128xf32, #tpu.memory_space<vmem>>, vector<8x16x128xf32>,
    %c0_28 = arith.constant 0 : index
    %c0_29 = arith.constant 0 : index
    %c0_30 = arith.constant 0 : index
    %24 = vector.load %arg9[%c0_28, %c0_29, %c0_30] : memref<10x18x128xf32, #tpu.memory_space<vmem>>, vector<8x16x128xf32>
    %25 = vector.shape_cast %24 : vector<8x16x128xf32> to vector<128x128xf32>
    %26 = arith.truncf %25 : vector<128x128xf32> to vector<128x128xbf16>
    %c0_31 = arith.constant 0 : index
    %c0_32 = arith.constant 0 : index
    %c0_33 = arith.constant 0 : index
    %27 = vector.load %arg5[%c0_31, %c0_32, %c0_33] : memref<9x128x128xbf16, #tpu.memory_space<vmem>>, vector<1x128x128xbf16>
    %28 = vector.shape_cast %27 : vector<1x128x128xbf16> to vector<128x128xbf16>
    %cst_34 = arith.constant dense<0.000000e+00> : vector<128x128xf32>
    %29 = tpu.matmul %26, %28, %cst_34 {dimension_numbers = #tpu.dot_dimension_numbers<[1], [0], [0], [1], [0, 0, 1, 1], [], []>} : vector<128x128xbf16>, vector<128x128xbf16>, vector<128x128xf32> -> vector<128x128xf32>
    %c0_35 = arith.constant 0 : index
    %c1_36 = arith.constant 1 : index
    %c0_37 = arith.constant 0 : index
    %30 = vector.load %arg9[%c0_35, %c1_36, %c0_37] : memref<10x18x128xf32, #tpu.memory_space<vmem>>, vector<8x16x128xf32>
    %31 = vector.shape_cast %30 : vector<8x16x128xf32> to vector<128x128xf32>
    %32 = arith.truncf %31 : vector<128x128xf32> to vector<128x128xbf16>
    %c1_38 = arith.constant 1 : index
    %c0_39 = arith.constant 0 : index
    %c0_40 = arith.constant 0 : index
    %33 = vector.load %arg5[%c1_38, %c0_39, %c0_40] : memref<9x128x128xbf16, #tpu.memory_space<vmem>>, vector<1x128x128xbf16>
    %34 = vector.shape_cast %33 : vector<1x128x128xbf16> to vector<128x128xbf16>
    %cst_41 = arith.constant dense<0.000000e+00> : vector<128x128xf32>
    %35 = tpu.matmul %32, %34, %cst_41 {dimension_numbers = #tpu.dot_dimension_numbers<[1], [0], [0], [1], [0, 0, 1, 1], [], []>} : vector<128x128xbf16>, vector<128x128xbf16>, vector<128x128xf32> -> vector<128x128xf32>
    %36 = arith.addf %29, %35 : vector<128x128xf32>
    %c0_42 = arith.constant 0 : index
    %c2 = arith.constant 2 : index
    %c0_43 = arith.constant 0 : index
    %37 = vector.load %arg9[%c0_42, %c2, %c0_43] : memref<10x18x128xf32, #tpu.memory_space<vmem>>, vector<8x16x128xf32>
    %38 = vector.shape_cast %37 : vector<8x16x128xf32> to vector<128x128xf32>
    %39 = arith.truncf %38 : vector<128x128xf32> to vector<128x128xbf16>
    %c2_44 = arith.constant 2 : index
    %c0_45 = arith.constant 0 : index
    %c0_46 = arith.constant 0 : index
    %40 = vector.load %arg5[%c2_44, %c0_45, %c0_46] : memref<9x128x128xbf16, #tpu.memory_space<vmem>>, vector<1x128x128xbf16>
    %41 = vector.shape_cast %40 : vector<1x128x128xbf16> to vector<128x128xbf16>
    %cst_47 = arith.constant dense<0.000000e+00> : vector<128x128xf32>
    %42 = tpu.matmul %39, %41, %cst_47 {dimension_numbers = #tpu.dot_dimension_numbers<[1], [0], [0], [1], [0, 0, 1, 1], [], []>} : vector<128x128xbf16>, vector<128x128xbf16>, vector<128x128xf32> -> vector<128x128xf32>
    %43 = arith.addf %36, %42 : vector<128x128xf32>
    %c1_48 = arith.constant 1 : index
    %c0_49 = arith.constant 0 : index
    %c0_50 = arith.constant 0 : index
    %44 = vector.load %arg9[%c1_48, %c0_49, %c0_50] : memref<10x18x128xf32, #tpu.memory_space<vmem>>, vector<8x16x128xf32>
    %45 = vector.shape_cast %44 : vector<8x16x128xf32> to vector<128x128xf32>
    %46 = arith.truncf %45 : vector<128x128xf32> to vector<128x128xbf16>
    %c3 = arith.constant 3 : index
    %c0_51 = arith.constant 0 : index
    %c0_52 = arith.constant 0 : index
    %47 = vector.load %arg5[%c3, %c0_51, %c0_52] : memref<9x128x128xbf16, #tpu.memory_space<vmem>>, vector<1x128x128xbf16>
    %48 = vector.shape_cast %47 : vector<1x128x128xbf16> to vector<128x128xbf16>
    %cst_53 = arith.constant dense<0.000000e+00> : vector<128x128xf32>
    %49 = tpu.matmul %46, %48, %cst_53 {dimension_numbers = #tpu.dot_dimension_numbers<[1], [0], [0], [1], [0, 0, 1, 1], [], []>} : vector<128x128xbf16>, vector<128x128xbf16>, vector<128x128xf32> -> vector<128x128xf32>
    %50 = arith.addf %43, %49 : vector<128x128xf32>
    %c1_54 = arith.constant 1 : index
    %c1_55 = arith.constant 1 : index
    %c0_56 = arith.constant 0 : index
    %51 = vector.load %arg9[%c1_54, %c1_55, %c0_56] : memref<10x18x128xf32, #tpu.memory_space<vmem>>, vector<8x16x128xf32>
    %52 = vector.shape_cast %51 : vector<8x16x128xf32> to vector<128x128xf32>
    %53 = arith.truncf %52 : vector<128x128xf32> to vector<128x128xbf16>
    %c4 = arith.constant 4 : index
    %c0_57 = arith.constant 0 : index
    %c0_58 = arith.constant 0 : index
    %54 = vector.load %arg5[%c4, %c0_57, %c0_58] : memref<9x128x128xbf16, #tpu.memory_space<vmem>>, vector<1x128x128xbf16>
    %55 = vector.shape_cast %54 : vector<1x128x128xbf16> to vector<128x128xbf16>
    %cst_59 = arith.constant dense<0.000000e+00> : vector<128x128xf32>
    %56 = tpu.matmul %53, %55, %cst_59 {dimension_numbers = #tpu.dot_dimension_numbers<[1], [0], [0], [1], [0, 0, 1, 1], [], []>} : vector<128x128xbf16>, vector<128x128xbf16>, vector<128x128xf32> -> vector<128x128xf32>
    %57 = arith.addf %50, %56 : vector<128x128xf32>
    %c1_60 = arith.constant 1 : index
    %c2_61 = arith.constant 2 : index
    %c0_62 = arith.constant 0 : index
    %58 = vector.load %arg9[%c1_60, %c2_61, %c0_62] : memref<10x18x128xf32, #tpu.memory_space<vmem>>, vector<8x16x128xf32>
    %59 = vector.shape_cast %58 : vector<8x16x128xf32> to vector<128x128xf32>
    %60 = arith.truncf %59 : vector<128x128xf32> to vector<128x128xbf16>
    %c5 = arith.constant 5 : index
    %c0_63 = arith.constant 0 : index
    %c0_64 = arith.constant 0 : index
    %61 = vector.load %arg5[%c5, %c0_63, %c0_64] : memref<9x128x128xbf16, #tpu.memory_space<vmem>>, vector<1x128x128xbf16>
    %62 = vector.shape_cast %61 : vector<1x128x128xbf16> to vector<128x128xbf16>
    %cst_65 = arith.constant dense<0.000000e+00> : vector<128x128xf32>
    %63 = tpu.matmul %60, %62, %cst_65 {dimension_numbers = #tpu.dot_dimension_numbers<[1], [0], [0], [1], [0, 0, 1, 1], [], []>} : vector<128x128xbf16>, vector<128x128xbf16>, vector<128x128xf32> -> vector<128x128xf32>
    %64 = arith.addf %57, %63 : vector<128x128xf32>
    %c2_66 = arith.constant 2 : index
    %c0_67 = arith.constant 0 : index
    %c0_68 = arith.constant 0 : index
    %65 = vector.load %arg9[%c2_66, %c0_67, %c0_68] : memref<10x18x128xf32, #tpu.memory_space<vmem>>, vector<8x16x128xf32>
    %66 = vector.shape_cast %65 : vector<8x16x128xf32> to vector<128x128xf32>
    %67 = arith.truncf %66 : vector<128x128xf32> to vector<128x128xbf16>
    %c6 = arith.constant 6 : index
    %c0_69 = arith.constant 0 : index
    %c0_70 = arith.constant 0 : index
    %68 = vector.load %arg5[%c6, %c0_69, %c0_70] : memref<9x128x128xbf16, #tpu.memory_space<vmem>>, vector<1x128x128xbf16>
    %69 = vector.shape_cast %68 : vector<1x128x128xbf16> to vector<128x128xbf16>
    %cst_71 = arith.constant dense<0.000000e+00> : vector<128x128xf32>
    %70 = tpu.matmul %67, %69, %cst_71 {dimension_numbers = #tpu.dot_dimension_numbers<[1], [0], [0], [1], [0, 0, 1, 1], [], []>} : vector<128x128xbf16>, vector<128x128xbf16>, vector<128x128xf32> -> vector<128x128xf32>
    %71 = arith.addf %64, %70 : vector<128x128xf32>
    %c2_72 = arith.constant 2 : index
    %c1_73 = arith.constant 1 : index
    %c0_74 = arith.constant 0 : index
    %72 = vector.load %arg9[%c2_72, %c1_73, %c0_74] : memref<10x18x128xf32, #tpu.memory_space<vmem>>, vector<8x16x128xf32>
    %73 = vector.shape_cast %72 : vector<8x16x128xf32> to vector<128x128xf32>
    %74 = arith.truncf %73 : vector<128x128xf32> to vector<128x128xbf16>
    %c7 = arith.constant 7 : index
    %c0_75 = arith.constant 0 : index
    %c0_76 = arith.constant 0 : index
    %75 = vector.load %arg5[%c7, %c0_75, %c0_76] : memref<9x128x128xbf16, #tpu.memory_space<vmem>>, vector<1x128x128xbf16>
    %76 = vector.shape_cast %75 : vector<1x128x128xbf16> to vector<128x128xbf16>
    %cst_77 = arith.constant dense<0.000000e+00> : vector<128x128xf32>
    %77 = tpu.matmul %74, %76, %cst_77 {dimension_numbers = #tpu.dot_dimension_numbers<[1], [0], [0], [1], [0, 0, 1, 1], [], []>} : vector<128x128xbf16>, vector<128x128xbf16>, vector<128x128xf32> -> vector<128x128xf32>
    %78 = arith.addf %71, %77 : vector<128x128xf32>
    %c2_78 = arith.constant 2 : index
    %c2_79 = arith.constant 2 : index
    %c0_80 = arith.constant 0 : index
    %79 = vector.load %arg9[%c2_78, %c2_79, %c0_80] : memref<10x18x128xf32, #tpu.memory_space<vmem>>, vector<8x16x128xf32>
    %80 = vector.shape_cast %79 : vector<8x16x128xf32> to vector<128x128xf32>
    %81 = arith.truncf %80 : vector<128x128xf32> to vector<128x128xbf16>
    %c8 = arith.constant 8 : index
    %c0_81 = arith.constant 0 : index
    %c0_82 = arith.constant 0 : index
    %82 = vector.load %arg5[%c8, %c0_81, %c0_82] : memref<9x128x128xbf16, #tpu.memory_space<vmem>>, vector<1x128x128xbf16>
    %83 = vector.shape_cast %82 : vector<1x128x128xbf16> to vector<128x128xbf16>
    %cst_83 = arith.constant dense<0.000000e+00> : vector<128x128xf32>
    %84 = tpu.matmul %81, %83, %cst_83 {dimension_numbers = #tpu.dot_dimension_numbers<[1], [0], [0], [1], [0, 0, 1, 1], [], []>} : vector<128x128xbf16>, vector<128x128xbf16>, vector<128x128xf32> -> vector<128x128xf32>
    %85 = arith.addf %78, %84 : vector<128x128xf32>
    %c0_84 = arith.constant 0 : index
    %c0_85 = arith.constant 0 : index
    %86 = vector.load %arg6[%c0_84, %c0_85] : memref<1x128xf32, #tpu.memory_space<vmem>>, vector<1x128xf32>
    %87 = vector.broadcast %86 : vector<1x128xf32> to vector<128x128xf32>
    %88 = arith.addf %85, %87 : vector<128x128xf32>
    %89 = arith.truncf %88 : vector<128x128xf32> to vector<128x128xbf16>
    %c0_86 = arith.constant 0 : index
    %c0_87 = arith.constant 0 : index
    %c0_88 = arith.constant 0 : index
    %90 = vector.load %arg7[%c0_86, %c0_87, %c0_88] : memref<1x128x128xbf16, #tpu.memory_space<vmem>>, vector<1x128x128xbf16>
    %91 = vector.shape_cast %90 : vector<1x128x128xbf16> to vector<128x128xbf16>
    %92 = vector.shape_cast %89 : vector<128x128xbf16> to vector<1x128x128xbf16>
    tpu.vector_store %arg7[%c0_86, %c0_87, %c0_88], %92 {strides = array<i32>} : memref<1x128x128xbf16, #tpu.memory_space<vmem>>, vector<1x128x128xbf16>,
    %cst_89 = arith.constant dense<0.000000e+00> : vector<128xf32>
    %93 = vector.multi_reduction <add>, %88, %cst_89 [0] : vector<128x128xf32> to vector<128xf32>
    %94 = vector.shape_cast %93 : vector<128xf32> to vector<1x128xf32>
    %c0_90 = arith.constant 0 : index
    %c0_91 = arith.constant 0 : index
    %c0_92 = arith.constant 0 : index
    %95 = vector.load %arg8[%c0_90, %c0_91, %c0_92] : memref<1x2x128xf32, #tpu.memory_space<vmem>>, vector<1x1x128xf32>
    %96 = vector.shape_cast %95 : vector<1x1x128xf32> to vector<1x128xf32>
    %97 = vector.shape_cast %94 : vector<1x128xf32> to vector<1x1x128xf32>
    tpu.vector_store %arg8[%c0_90, %c0_91, %c0_92], %97 {strides = array<i32>} : memref<1x2x128xf32, #tpu.memory_space<vmem>>, vector<1x1x128xf32>,
    %98 = arith.mulf %88, %88 : vector<128x128xf32>
    %cst_93 = arith.constant dense<0.000000e+00> : vector<128xf32>
    %99 = vector.multi_reduction <add>, %98, %cst_93 [0] : vector<128x128xf32> to vector<128xf32>
    %100 = vector.shape_cast %99 : vector<128xf32> to vector<1x128xf32>
    %c0_94 = arith.constant 0 : index
    %c1_95 = arith.constant 1 : index
    %c0_96 = arith.constant 0 : index
    %101 = vector.load %arg8[%c0_94, %c1_95, %c0_96] : memref<1x2x128xf32, #tpu.memory_space<vmem>>, vector<1x1x128xf32>
    %102 = vector.shape_cast %101 : vector<1x1x128xf32> to vector<1x128xf32>
    %103 = vector.shape_cast %100 : vector<1x128xf32> to vector<1x1x128xf32>
    tpu.vector_store %arg8[%c0_94, %c1_95, %c0_96], %103 {strides = array<i32>} : memref<1x2x128xf32, #tpu.memory_space<vmem>>, vector<1x1x128xf32>,
    return
  }
  func.func @transform_0(%arg0: i32, %arg1: i32) -> (i32, i32, i32, i32) {
    %c0_i32 = arith.constant 0 : i32
    %c0_i32_0 = arith.constant 0 : i32
    %c0_i32_1 = arith.constant 0 : i32
    return %arg0, %arg1, %c0_i32, %c0_i32_0 : i32, i32, i32, i32
  }
  func.func @transform_1(%arg0: i32, %arg1: i32) -> (i32, i32, i32, i32) {
    %c8_i32 = arith.constant 8 : i32
    %0 = arith.muli %arg1, %c8_i32 : i32
    %c1_i32 = arith.constant 1 : i32
    %1 = arith.subi %0, %c1_i32 : i32
    %c0_i32 = arith.constant 0 : i32
    %2 = arith.maxsi %1, %c0_i32 : i32
    %c0_i32_0 = arith.constant 0 : i32
    %c0_i32_1 = arith.constant 0 : i32
    %c0_i32_2 = arith.constant 0 : i32
    return %arg0, %2, %c0_i32_0, %c0_i32_1 : i32, i32, i32, i32
  }
  func.func @transform_2(%arg0: i32, %arg1: i32) -> (i32, i32, i32, i32) {
    %c1_i32 = arith.constant 1 : i32
    %0 = arith.addi %arg1, %c1_i32 : i32
    %c8_i32 = arith.constant 8 : i32
    %1 = arith.muli %0, %c8_i32 : i32
    %c15_i32 = arith.constant 15 : i32
    %2 = arith.minsi %1, %c15_i32 : i32
    %c0_i32 = arith.constant 0 : i32
    %c0_i32_0 = arith.constant 0 : i32
    %c0_i32_1 = arith.constant 0 : i32
    return %arg0, %2, %c0_i32, %c0_i32_0 : i32, i32, i32, i32
  }
  func.func @transform_3(%arg0: i32, %arg1: i32) -> (i32, i32, i32) {
    %c0_i32 = arith.constant 0 : i32
    %c0_i32_0 = arith.constant 0 : i32
    %c0_i32_1 = arith.constant 0 : i32
    %c0_i32_2 = arith.constant 0 : i32
    return %c0_i32, %c0_i32_0, %c0_i32_1 : i32, i32, i32
  }
  func.func @transform_4(%arg0: i32, %arg1: i32) -> (i32, i32) {
    %c0_i32 = arith.constant 0 : i32
    %c0_i32_0 = arith.constant 0 : i32
    %c0_i32_1 = arith.constant 0 : i32
    return %c0_i32, %c0_i32_0 : i32, i32
  }
  func.func @transform_5(%arg0: i32, %arg1: i32) -> (i32, i32, i32) {
    %c0_i32 = arith.constant 0 : i32
    %c0_i32_0 = arith.constant 0 : i32
    return %arg0, %arg1, %c0_i32 : i32, i32, i32
  }
  func.func @transform_6(%arg0: i32, %arg1: i32) -> (i32, i32, i32) {
    %c2_i32 = arith.constant 2 : i32
    %0 = arith.muli %arg0, %c2_i32 : i32
    %1 = arith.addi %0, %arg1 : i32
    %c0_i32 = arith.constant 0 : i32
    %c0_i32_0 = arith.constant 0 : i32
    %c0_i32_1 = arith.constant 0 : i32
    return %1, %c0_i32, %c0_i32_0 : i32, i32, i32
  }
}

module attributes {stable_mosaic.version = 11 : i64} {
  func.func @_bn1_relu_conv1x1_kernel(%arg0: i32, %arg1: memref<512x128xbf16, #tpu.memory_space<vmem>>, %arg2: memref<1x128xf32, #tpu.memory_space<vmem>>, %arg3: memref<1x128xf32, #tpu.memory_space<vmem>>, %arg4: memref<128x128xbf16, #tpu.memory_space<vmem>>, %arg5: memref<1x128xf32, #tpu.memory_space<vmem>>, %arg6: memref<512x128xf32, #tpu.memory_space<vmem>>, %arg7: memref<1x2x128xf32, #tpu.memory_space<vmem>>) attributes {dimension_semantics = [#tpu.dimension_semantics<parallel>], iteration_bounds = array<i64: 1>, scalar_prefetch = 0 : i64, scratch_operands = 0 : i64, tpu.core_type = #tpu.core_type<tc>, window_params = [{transform_indices = @transform_0, window_bounds = array<i64: 512, 128>}, {pipeline_mode = #tpu.pipeline_mode<synchronous>, transform_indices = @transform_1, window_bounds = array<i64: 1, 128>}, {pipeline_mode = #tpu.pipeline_mode<synchronous>, transform_indices = @transform_2, window_bounds = array<i64: 1, 128>}, {pipeline_mode = #tpu.pipeline_mode<synchronous>, transform_indices = @transform_3, window_bounds = array<i64: 128, 128>}, {pipeline_mode = #tpu.pipeline_mode<synchronous>, transform_indices = @transform_4, window_bounds = array<i64: 1, 128>}, {transform_indices = @transform_5, window_bounds = array<i64: 512, 128>}, {transform_indices = @transform_6, window_bounds = array<i64: 1, 2, 128>}]} {
    %c0 = arith.constant 0 : index
    %c0_0 = arith.constant 0 : index
    %0 = vector.load %arg1[%c0, %c0_0] : memref<512x128xbf16, #tpu.memory_space<vmem>>, vector<512x128xbf16>
    %1 = arith.extf %0 : vector<512x128xbf16> to vector<512x128xf32>
    %c0_1 = arith.constant 0 : index
    %c0_2 = arith.constant 0 : index
    %2 = vector.load %arg2[%c0_1, %c0_2] : memref<1x128xf32, #tpu.memory_space<vmem>>, vector<1x128xf32>
    %3 = vector.broadcast %2 : vector<1x128xf32> to vector<512x128xf32>
    %4 = arith.mulf %1, %3 : vector<512x128xf32>
    %c0_3 = arith.constant 0 : index
    %c0_4 = arith.constant 0 : index
    %5 = vector.load %arg3[%c0_3, %c0_4] : memref<1x128xf32, #tpu.memory_space<vmem>>, vector<1x128xf32>
    %6 = vector.broadcast %5 : vector<1x128xf32> to vector<512x128xf32>
    %7 = arith.addf %4, %6 : vector<512x128xf32>
    %cst = arith.constant 0.000000e+00 : f32
    %8 = vector.broadcast %cst : f32 to vector<512x128xf32>
    %9 = arith.maximumf %7, %8 : vector<512x128xf32>
    %10 = arith.truncf %9 : vector<512x128xf32> to vector<512x128xbf16>
    %c0_5 = arith.constant 0 : index
    %c0_6 = arith.constant 0 : index
    %11 = vector.load %arg4[%c0_5, %c0_6] : memref<128x128xbf16, #tpu.memory_space<vmem>>, vector<128x128xbf16>
    %cst_7 = arith.constant dense<0.000000e+00> : vector<512x128xf32>
    %12 = tpu.matmul %10, %11, %cst_7 {dimension_numbers = #tpu.dot_dimension_numbers<[1], [0], [0], [1], [0, 0, 1, 1], [], []>} : vector<512x128xbf16>, vector<128x128xbf16>, vector<512x128xf32> -> vector<512x128xf32>
    %c0_8 = arith.constant 0 : index
    %c0_9 = arith.constant 0 : index
    %13 = vector.load %arg5[%c0_8, %c0_9] : memref<1x128xf32, #tpu.memory_space<vmem>>, vector<1x128xf32>
    %14 = vector.broadcast %13 : vector<1x128xf32> to vector<512x128xf32>
    %15 = arith.addf %12, %14 : vector<512x128xf32>
    %c0_10 = arith.constant 0 : index
    %c0_11 = arith.constant 0 : index
    %16 = vector.load %arg6[%c0_10, %c0_11] : memref<512x128xf32, #tpu.memory_space<vmem>>, vector<512x128xf32>
    tpu.vector_store %arg6[%c0_10, %c0_11], %15 {strides = array<i32>} : memref<512x128xf32, #tpu.memory_space<vmem>>, vector<512x128xf32>,
    %cst_12 = arith.constant dense<0.000000e+00> : vector<128xf32>
    %17 = vector.multi_reduction <add>, %15, %cst_12 [0] : vector<512x128xf32> to vector<128xf32>
    %18 = vector.shape_cast %17 : vector<128xf32> to vector<1x128xf32>
    %c0_13 = arith.constant 0 : index
    %c0_14 = arith.constant 0 : index
    %c0_15 = arith.constant 0 : index
    %19 = vector.load %arg7[%c0_13, %c0_14, %c0_15] : memref<1x2x128xf32, #tpu.memory_space<vmem>>, vector<1x1x128xf32>
    %20 = vector.shape_cast %19 : vector<1x1x128xf32> to vector<1x128xf32>
    %21 = vector.shape_cast %18 : vector<1x128xf32> to vector<1x1x128xf32>
    tpu.vector_store %arg7[%c0_13, %c0_14, %c0_15], %21 {strides = array<i32>} : memref<1x2x128xf32, #tpu.memory_space<vmem>>, vector<1x1x128xf32>,
    %22 = arith.mulf %15, %15 : vector<512x128xf32>
    %cst_16 = arith.constant dense<0.000000e+00> : vector<128xf32>
    %23 = vector.multi_reduction <add>, %22, %cst_16 [0] : vector<512x128xf32> to vector<128xf32>
    %24 = vector.shape_cast %23 : vector<128xf32> to vector<1x128xf32>
    %c0_17 = arith.constant 0 : index
    %c1 = arith.constant 1 : index
    %c0_18 = arith.constant 0 : index
    %25 = vector.load %arg7[%c0_17, %c1, %c0_18] : memref<1x2x128xf32, #tpu.memory_space<vmem>>, vector<1x1x128xf32>
    %26 = vector.shape_cast %25 : vector<1x1x128xf32> to vector<1x128xf32>
    %27 = vector.shape_cast %24 : vector<1x128xf32> to vector<1x1x128xf32>
    tpu.vector_store %arg7[%c0_17, %c1, %c0_18], %27 {strides = array<i32>} : memref<1x2x128xf32, #tpu.memory_space<vmem>>, vector<1x1x128xf32>,
    return
  }
  func.func @transform_0(%arg0: i32) -> (i32, i32) {
    %c0_i32 = arith.constant 0 : i32
    %c0_i32_0 = arith.constant 0 : i32
    return %arg0, %c0_i32 : i32, i32
  }
  func.func @transform_1(%arg0: i32) -> (i32, i32) {
    %c0_i32 = arith.constant 0 : i32
    %c0_i32_0 = arith.constant 0 : i32
    %c0_i32_1 = arith.constant 0 : i32
    return %c0_i32, %c0_i32_0 : i32, i32
  }
  func.func @transform_2(%arg0: i32) -> (i32, i32) {
    %c0_i32 = arith.constant 0 : i32
    %c0_i32_0 = arith.constant 0 : i32
    %c0_i32_1 = arith.constant 0 : i32
    return %c0_i32, %c0_i32_0 : i32, i32
  }
  func.func @transform_3(%arg0: i32) -> (i32, i32) {
    %c0_i32 = arith.constant 0 : i32
    %c0_i32_0 = arith.constant 0 : i32
    %c0_i32_1 = arith.constant 0 : i32
    return %c0_i32, %c0_i32_0 : i32, i32
  }
  func.func @transform_4(%arg0: i32) -> (i32, i32) {
    %c0_i32 = arith.constant 0 : i32
    %c0_i32_0 = arith.constant 0 : i32
    %c0_i32_1 = arith.constant 0 : i32
    return %c0_i32, %c0_i32_0 : i32, i32
  }
  func.func @transform_5(%arg0: i32) -> (i32, i32) {
    %c0_i32 = arith.constant 0 : i32
    %c0_i32_0 = arith.constant 0 : i32
    return %arg0, %c0_i32 : i32, i32
  }
  func.func @transform_6(%arg0: i32) -> (i32, i32, i32) {
    %c0_i32 = arith.constant 0 : i32
    %c0_i32_0 = arith.constant 0 : i32
    %c0_i32_1 = arith.constant 0 : i32
    return %arg0, %c0_i32, %c0_i32_0 : i32, i32, i32
  }
}

module attributes {stable_mosaic.version = 11 : i64} {
  func.func @_bn2_residual_kernel(%arg0: i32, %arg1: memref<512x128xf32, #tpu.memory_space<vmem>>, %arg2: memref<512x128xf32, #tpu.memory_space<vmem>>, %arg3: memref<1x128xf32, #tpu.memory_space<vmem>>, %arg4: memref<1x128xf32, #tpu.memory_space<vmem>>, %arg5: memref<512x128xf32, #tpu.memory_space<vmem>>) attributes {dimension_semantics = [#tpu.dimension_semantics<parallel>], iteration_bounds = array<i64: 1>, scalar_prefetch = 0 : i64, scratch_operands = 0 : i64, tpu.core_type = #tpu.core_type<tc>, window_params = [{transform_indices = @transform_0, window_bounds = array<i64: 512, 128>}, {transform_indices = @transform_1, window_bounds = array<i64: 512, 128>}, {pipeline_mode = #tpu.pipeline_mode<synchronous>, transform_indices = @transform_2, window_bounds = array<i64: 1, 128>}, {pipeline_mode = #tpu.pipeline_mode<synchronous>, transform_indices = @transform_3, window_bounds = array<i64: 1, 128>}, {transform_indices = @transform_4, window_bounds = array<i64: 512, 128>}]} {
    %c0 = arith.constant 0 : index
    %c0_0 = arith.constant 0 : index
    %0 = vector.load %arg1[%c0, %c0_0] : memref<512x128xf32, #tpu.memory_space<vmem>>, vector<512x128xf32>
    %c0_1 = arith.constant 0 : index
    %c0_2 = arith.constant 0 : index
    %1 = vector.load %arg2[%c0_1, %c0_2] : memref<512x128xf32, #tpu.memory_space<vmem>>, vector<512x128xf32>
    %c0_3 = arith.constant 0 : index
    %c0_4 = arith.constant 0 : index
    %2 = vector.load %arg3[%c0_3, %c0_4] : memref<1x128xf32, #tpu.memory_space<vmem>>, vector<1x128xf32>
    %3 = vector.broadcast %2 : vector<1x128xf32> to vector<512x128xf32>
    %4 = arith.mulf %1, %3 : vector<512x128xf32>
    %5 = arith.addf %0, %4 : vector<512x128xf32>
    %c0_5 = arith.constant 0 : index
    %c0_6 = arith.constant 0 : index
    %6 = vector.load %arg4[%c0_5, %c0_6] : memref<1x128xf32, #tpu.memory_space<vmem>>, vector<1x128xf32>
    %7 = vector.broadcast %6 : vector<1x128xf32> to vector<512x128xf32>
    %8 = arith.addf %5, %7 : vector<512x128xf32>
    %c0_7 = arith.constant 0 : index
    %c0_8 = arith.constant 0 : index
    %9 = vector.load %arg5[%c0_7, %c0_8] : memref<512x128xf32, #tpu.memory_space<vmem>>, vector<512x128xf32>
    tpu.vector_store %arg5[%c0_7, %c0_8], %8 {strides = array<i32>} : memref<512x128xf32, #tpu.memory_space<vmem>>, vector<512x128xf32>,
    return
  }
  func.func @transform_0(%arg0: i32) -> (i32, i32) {
    %c0_i32 = arith.constant 0 : i32
    %c0_i32_0 = arith.constant 0 : i32
    return %arg0, %c0_i32 : i32, i32
  }
  func.func @transform_1(%arg0: i32) -> (i32, i32) {
    %c0_i32 = arith.constant 0 : i32
    %c0_i32_0 = arith.constant 0 : i32
    return %arg0, %c0_i32 : i32, i32
  }
  func.func @transform_2(%arg0: i32) -> (i32, i32) {
    %c0_i32 = arith.constant 0 : i32
    %c0_i32_0 = arith.constant 0 : i32
    %c0_i32_1 = arith.constant 0 : i32
    return %c0_i32, %c0_i32_0 : i32, i32
  }
  func.func @transform_3(%arg0: i32) -> (i32, i32) {
    %c0_i32 = arith.constant 0 : i32
    %c0_i32_0 = arith.constant 0 : i32
    %c0_i32_1 = arith.constant 0 : i32
    return %c0_i32, %c0_i32_0 : i32, i32
  }
  func.func @transform_4(%arg0: i32) -> (i32, i32) {
    %c0_i32 = arith.constant 0 : i32
    %c0_i32_0 = arith.constant 0 : i32
    return %arg0, %c0_i32 : i32, i32
  }
}

</mosaic_0001>

<bundles_post_ra>
// kernel: resblock_pallas.5
= control target key start
LH: loop header
LB: loop body
LE: loop exit
PB: predicated region body
PF: predicated region fallthrough
CT: control target
= control target key end

     0   :  { %s1160_s0 = inlined_call_operand.vmem [shape: f32[512,128], index: 0, kind: input, shape index: {}]   ;;  %s1161_s1 = inlined_call_operand.vmem [shape: f32[512,128], index: 1, kind: input, shape index: {}]   ;;  %s1162_s2 = inlined_call_operand.vmem [shape: f32[1,128], index: 2, kind: input, shape index: {}]   ;;  %s1163_s3 = inlined_call_operand.vmem [shape: f32[1,128], index: 3, kind: input, shape index: {}]   ;;  %s1164_s4 = inlined_call_operand.vmem [shape: f32[512,128], index: 4, kind: output, shape index: {}]  }
   0x1   :  { %v17_v0 = vld [vmem:[%s1160_s0] sm:$0xff]  ;;  %v18_v5 = vld [vmem:[%s1160_s0 + $0x8] sm:$0xff]  ;;  %v19_v8 = vld [vmem:[%s1160_s0 + $0x10] sm:$0xff] }
   0x2   :  { %v81_v1 = vld [vmem:[%s1161_s1] sm:$0xff]  ;;  %v82_v6 = vld [vmem:[%s1161_s1 + $0x8] sm:$0xff]  ;;  %v83_v9 = vld [vmem:[%s1161_s1 + $0x10] sm:$0xff] }
   0x3   :  { %v455_v2 = vld [vmem:[%s1162_s2] ss:$0 sm:$0xff]  ;;  %v20_v10 = vld [vmem:[%s1160_s0 + $0x18] sm:$0xff]  ;;  %v22_v19 = vld [vmem:[%s1160_s0 + $0x28] sm:$0xff] }
   0x4   :  { %v152_v3 = vmul.f32 %v455_v2, %v81_v1  ;;  %v461_v4 = vld [vmem:[%s1163_s3] ss:$0 sm:$0xff]  ;;  %v153_v7 = vmul.f32 %v455_v2, %v82_v6  ;;  %v154_v12 = vmul.f32 %v455_v2, %v83_v9  ;;  %v84_v13 = vld [vmem:[%s1161_s1 + $0x18] sm:$0xff]  ;;  %v86_v20 = vld [vmem:[%s1161_s1 + $0x28] sm:$0xff] }
   0x5   :  { %v21_v14 = vld [vmem:[%s1160_s0 + $0x20] sm:$0xff]  ;;  %v155_v17 = vmul.f32 %v455_v2, %v84_v13  ;;  %v157_v23 = vmul.f32 %v455_v2, %v86_v20  ;;  %v23_v24 = vld [vmem:[%s1160_s0 + $0x30] sm:$0xff]  ;;  %v88_v26 = vld [vmem:[%s1161_s1 + $0x38] sm:$0xff] }
   0x6   :  { %v216_v11 = vadd.f32 %v152_v3, %v17_v0  ;;  %v85_v15 = vld [vmem:[%s1161_s1 + $0x20] sm:$0xff]  ;;  %v217_v16 = vadd.f32 %v153_v7, %v18_v5  ;;  %v218_v22 = vadd.f32 %v154_v12, %v19_v8  ;;  %v87_v25 = vld [vmem:[%s1161_s1 + $0x30] sm:$0xff]  ;;  %v24_v31 = vld [vmem:[%s1160_s0 + $0x38] sm:$0xff]  ;;  %v159_v36 = vmul.f32 %v455_v2, %v88_v26 }
   0x7   :  { %v156_v18 = vmul.f32 %v455_v2, %v85_v15  ;;  %v219_v28 = vadd.f32 %v155_v17, %v20_v10  ;;  %v158_v30 = vmul.f32 %v455_v2, %v87_v25  ;;  %v25_v32 = vld [vmem:[%s1160_s0 + $0x40] sm:$0xff]  ;;  %v221_v35 = vadd.f32 %v157_v23, %v22_v19  ;;  %v26_v38 = vld [vmem:[%s1160_s0 + $0x48] sm:$0xff]  ;;  %v91_v40 = vld [vmem:[%s1161_s1 + $0x50] sm:$0xff] }
   0x8   :  { %v287_v21 = vadd.f32 %v461_v4, %v216_v11  ;;  %v288_v27 = vadd.f32 %v461_v4, %v217_v16  ;;  %v89_v33 = vld [vmem:[%s1161_s1 + $0x40] sm:$0xff]  ;;  %v289_v34 = vadd.f32 %v461_v4, %v218_v22  ;;  %v90_v39 = vld [vmem:[%s1161_s1 + $0x48] sm:$0xff]  ;;  %v27_v45 = vld [vmem:[%s1160_s0 + $0x50] sm:$0xff]  ;;  %v223_v49 = vadd.f32 %v159_v36, %v24_v31 }
   0x9   :  { %v220_v29 = vadd.f32 %v156_v18, %v21_v14  ;;  %v160_v37 = vmul.f32 %v455_v2, %v89_v33  ;;  %v290_v41 = vadd.f32 %v461_v4, %v219_v28  ;;  %v222_v43 = vadd.f32 %v158_v30, %v23_v24  ;;  %v28_v46 = vld [vmem:[%s1160_s0 + $0x58] sm:$0xff]  ;;  %v29_v52 = vld [vmem:[%s1160_s0 + $0x60] sm:$0xff]  ;;  %v94_v54 = vld [vmem:[%s1161_s1 + $0x68] sm:$0xff] }
   0xa   :  { %351 = vst [vmem:[%s1164_s4] sm:$0xff] %v287_v21  ;;  %352 = vst [vmem:[%s1164_s4 + $0x8] sm:$0xff] %v288_v27  ;;  %v161_v44 = vmul.f32 %v455_v2, %v90_v39  ;;  %v92_v47 = vld [vmem:[%s1161_s1 + $0x58] sm:$0xff]  ;;  %v292_v48 = vadd.f32 %v461_v4, %v221_v35  ;;  %v162_v51 = vmul.f32 %v455_v2, %v91_v40  ;;  %v93_v53 = vld [vmem:[%s1161_s1 + $0x60] sm:$0xff] }
   0xb   :  { %v291_v42 = vadd.f32 %v461_v4, %v220_v29  ;;  %353 = vst [vmem:[%s1164_s4 + $0x10] sm:$0xff] %v289_v34  ;;  %v224_v50 = vadd.f32 %v160_v37, %v25_v32  ;;  %354 = vst [vmem:[%s1164_s4 + $0x18] sm:$0xff] %v290_v41  ;;  %v293_v55 = vadd.f32 %v461_v4, %v222_v43  ;;  %v30_v59 = vld [vmem:[%s1160_s0 + $0x68] sm:$0xff]  ;;  %v95_v60 = vld [vmem:[%s1161_s1 + $0x70] sm:$0xff] }
   0xc   :  { %v225_v56 = vadd.f32 %v161_v44, %v26_v38  ;;  %v163_v57 = vmul.f32 %v455_v2, %v92_v47  ;;  %v164_v58 = vmul.f32 %v455_v2, %v93_v53  ;;  %356 = vst [vmem:[%s1164_s4 + $0x28] sm:$0xff] %v292_v48  ;;  %v294_v61 = vadd.f32 %v461_v4, %v223_v49  ;;  %v31_v1 = vld [vmem:[%s1160_s0 + $0x70] sm:$0xff]  ;;  %v96_v3 = vld [vmem:[%s1161_s1 + $0x78] sm:$0xff]  ;;  %v97_v5 = vld [vmem:[%s1161_s1 + $0x80] sm:$0xff] }
   0xd   :  { %355 = vst [vmem:[%s1164_s4 + $0x20] sm:$0xff] %v291_v42  ;;  %v295_v62 = vadd.f32 %v461_v4, %v224_v50  ;;  %v226_v63 = vadd.f32 %v162_v51, %v27_v45  ;;  %v165_v0 = vmul.f32 %v455_v2, %v94_v54  ;;  %357 = vst [vmem:[%s1164_s4 + $0x30] sm:$0xff] %v293_v55  ;;  %v32_v10 = vld [vmem:[%s1160_s0 + $0x78] sm:$0xff]  ;;  %v33_v11 = vld [vmem:[%s1160_s0 + $0x80] sm:$0xff] }
   0xe   :  { %v296_v6 = vadd.f32 %v461_v4, %v225_v56  ;;  %v227_v7 = vadd.f32 %v163_v57, %v28_v46  ;;  %v228_v8 = vadd.f32 %v164_v58, %v29_v52  ;;  %v166_v9 = vmul.f32 %v455_v2, %v95_v60  ;;  %v98_v12 = vld [vmem:[%s1161_s1 + $0x88] sm:$0xff]  ;;  %358 = vst [vmem:[%s1164_s4 + $0x38] sm:$0xff] %v294_v61  ;;  %v99_v18 = vld [vmem:[%s1161_s1 + $0x90] sm:$0xff]  ;;  %v100_v19 = vld [vmem:[%s1161_s1 + $0x98] sm:$0xff] }
   0xf   :  { %359 = vst [vmem:[%s1164_s4 + $0x40] sm:$0xff] %v295_v62  ;;  %v297_v13 = vadd.f32 %v461_v4, %v226_v63  ;;  %v229_v14 = vadd.f32 %v165_v0, %v30_v59  ;;  %v167_v15 = vmul.f32 %v455_v2, %v96_v3  ;;  %v168_v16 = vmul.f32 %v455_v2, %v97_v5  ;;  %v34_v17 = vld [vmem:[%s1160_s0 + $0x88] sm:$0xff]  ;;  %v35_v24 = vld [vmem:[%s1160_s0 + $0x90] sm:$0xff]  ;;  %v36_v25 = vld [vmem:[%s1160_s0 + $0x98] sm:$0xff] }
  0x10   :  { %360 = vst [vmem:[%s1164_s4 + $0x48] sm:$0xff] %v296_v6  ;;  %v298_v20 = vadd.f32 %v461_v4, %v227_v7  ;;  %v299_v21 = vadd.f32 %v461_v4, %v228_v8  ;;  %v230_v22 = vadd.f32 %v166_v9, %v31_v1  ;;  %v169_v23 = vmul.f32 %v455_v2, %v98_v12  ;;  %v101_v26 = vld [vmem:[%s1161_s1 + $0xa0] sm:$0xff]  ;;  %v102_v32 = vld [vmem:[%s1161_s1 + $0xa8] sm:$0xff]  ;;  %v103_v33 = vld [vmem:[%s1161_s1 + $0xb0] sm:$0xff] }
  0x11   :  { %361 = vst [vmem:[%s1164_s4 + $0x50] sm:$0xff] %v297_v13  ;;  %v300_v27 = vadd.f32 %v461_v4, %v229_v14  ;;  %v231_v28 = vadd.f32 %v167_v15, %v32_v10  ;;  %v232_v29 = vadd.f32 %v168_v16, %v33_v11  ;;  %v170_v30 = vmul.f32 %v455_v2, %v99_v18  ;;  %v37_v31 = vld [vmem:[%s1160_s0 + $0xa0] sm:$0xff]  ;;  %v38_v38 = vld [vmem:[%s1160_s0 + $0xa8] sm:$0xff]  ;;  %v104_v39 = vld [vmem:[%s1161_s1 + $0xb8] sm:$0xff] }
  0x12   :  { %362 = vst [vmem:[%s1164_s4 + $0x58] sm:$0xff] %v298_v20  ;;  %363 = vst [vmem:[%s1164_s4 + $0x60] sm:$0xff] %v299_v21  ;;  %v301_v34 = vadd.f32 %v461_v4, %v230_v22  ;;  %v233_v35 = vadd.f32 %v169_v23, %v34_v17  ;;  %v171_v36 = vmul.f32 %v455_v2, %v100_v19  ;;  %v39_v44 = vld [vmem:[%s1160_s0 + $0xb0] sm:$0xff]  ;;  %v105_v45 = vld [vmem:[%s1161_s1 + $0xc0] sm:$0xff] }
  0x13   :  { %v172_v37 = vmul.f32 %v455_v2, %v101_v26  ;;  %364 = vst [vmem:[%s1164_s4 + $0x68] sm:$0xff] %v300_v27  ;;  %v302_v40 = vadd.f32 %v461_v4, %v231_v28  ;;  %v303_v41 = vadd.f32 %v461_v4, %v232_v29  ;;  %v234_v42 = vadd.f32 %v170_v30, %v35_v24  ;;  %v106_v46 = vld [vmem:[%s1161_s1 + $0xc8] sm:$0xff]  ;;  %v40_v51 = vld [vmem:[%s1160_s0 + $0xb8] sm:$0xff]  ;;  %v41_v52 = vld [vmem:[%s1160_s0 + $0xc0] sm:$0xff] }
  0x14   :  { %v173_v43 = vmul.f32 %v455_v2, %v102_v32  ;;  %365 = vst [vmem:[%s1164_s4 + $0x70] sm:$0xff] %v301_v34  ;;  %v304_v47 = vadd.f32 %v461_v4, %v233_v35  ;;  %v235_v48 = vadd.f32 %v171_v36, %v36_v25  ;;  %v174_v50 = vmul.f32 %v455_v2, %v103_v33  ;;  %v107_v53 = vld [vmem:[%s1161_s1 + $0xd0] sm:$0xff]  ;;  %v42_v58 = vld [vmem:[%s1160_s0 + $0xc8] sm:$0xff]  ;;  %v108_v59 = vld [vmem:[%s1161_s1 + $0xd8] sm:$0xff] }
  0x15   :  { %v236_v49 = vadd.f32 %v172_v37, %v37_v31  ;;  %366 = vst [vmem:[%s1164_s4 + $0x78] sm:$0xff] %v302_v40  ;;  %367 = vst [vmem:[%s1164_s4 + $0x80] sm:$0xff] %v303_v41  ;;  %v305_v54 = vadd.f32 %v461_v4, %v234_v42  ;;  %v175_v56 = vmul.f32 %v455_v2, %v104_v39  ;;  %v109_v60 = vld [vmem:[%s1161_s1 + $0xe0] sm:$0xff]  ;;  %v43_v1 = vld [vmem:[%s1160_s0 + $0xd0] sm:$0xff] }
  0x16   :  { %v237_v55 = vadd.f32 %v173_v43, %v38_v38  ;;  %v176_v57 = vmul.f32 %v455_v2, %v105_v45  ;;  %368 = vst [vmem:[%s1164_s4 + $0x88] sm:$0xff] %v304_v47  ;;  %v306_v61 = vadd.f32 %v461_v4, %v235_v48  ;;  %v238_v63 = vadd.f32 %v174_v50, %v39_v44  ;;  %v110_v3 = vld [vmem:[%s1161_s1 + $0xe8] sm:$0xff]  ;;  %v44_v9 = vld [vmem:[%s1160_s0 + $0xd8] sm:$0xff]  ;;  %v45_v10 = vld [vmem:[%s1160_s0 + $0xe0] sm:$0xff] }
  0x17   :  { %v307_v62 = vadd.f32 %v461_v4, %v236_v49  ;;  %v177_v0 = vmul.f32 %v455_v2, %v106_v46  ;;  %369 = vst [vmem:[%s1164_s4 + $0x90] sm:$0xff] %v305_v54  ;;  %v239_v6 = vadd.f32 %v175_v56, %v40_v51  ;;  %v178_v8 = vmul.f32 %v455_v2, %v107_v53  ;;  %v111_v11 = vld [vmem:[%s1161_s1 + $0xf0] sm:$0xff]  ;;  %v46_v16 = vld [vmem:[%s1160_s0 + $0xe8] sm:$0xff]  ;;  %v112_v17 = vld [vmem:[%s1161_s1 + $0xf8] sm:$0xff] }
  0x18   :  { %v308_v5 = vadd.f32 %v461_v4, %v237_v55  ;;  %v240_v7 = vadd.f32 %v176_v57, %v41_v52  ;;  %370 = vst [vmem:[%s1164_s4 + $0x98] sm:$0xff] %v306_v61  ;;  %v309_v12 = vadd.f32 %v461_v4, %v238_v63  ;;  %v179_v14 = vmul.f32 %v455_v2, %v108_v59  ;;  %v113_v18 = vld [vmem:[%s1161_s1 + $0x100] sm:$0xff]  ;;  %v47_v23 = vld [vmem:[%s1160_s0 + $0xf0] sm:$0xff]  ;;  %v114_v24 = vld [vmem:[%s1161_s1 + $0x108] sm:$0xff] }
  0x19   :  { %371 = vst [vmem:[%s1164_s4 + $0xa0] sm:$0xff] %v307_v62  ;;  %v241_v13 = vadd.f32 %v177_v0, %v42_v58  ;;  %v180_v15 = vmul.f32 %v455_v2, %v109_v60  ;;  %v310_v19 = vadd.f32 %v461_v4, %v239_v6  ;;  %v242_v21 = vadd.f32 %v178_v8, %v43_v1  ;;  %v48_v29 = vld [vmem:[%s1160_s0 + $0xf8] sm:$0xff]  ;;  %v49_v30 = vld [vmem:[%s1160_s0 + $0x100] sm:$0xff]  ;;  %v115_v31 = vld [vmem:[%s1161_s1 + $0x110] sm:$0xff] }
  0x1a   :  { %372 = vst [vmem:[%s1164_s4 + $0xa8] sm:$0xff] %v308_v5  ;;  %v311_v20 = vadd.f32 %v461_v4, %v240_v7  ;;  %v181_v22 = vmul.f32 %v455_v2, %v110_v3  ;;  %373 = vst [vmem:[%s1164_s4 + $0xb0] sm:$0xff] %v309_v12  ;;  %v243_v26 = vadd.f32 %v179_v14, %v44_v9  ;;  %v50_v36 = vld [vmem:[%s1160_s0 + $0x108] sm:$0xff]  ;;  %v116_v37 = vld [vmem:[%s1161_s1 + $0x118] sm:$0xff] }
  0x1b   :  { %v312_v25 = vadd.f32 %v461_v4, %v241_v13  ;;  %v244_v27 = vadd.f32 %v180_v15, %v45_v10  ;;  %v182_v28 = vmul.f32 %v455_v2, %v111_v11  ;;  %374 = vst [vmem:[%s1164_s4 + $0xb8] sm:$0xff] %v310_v19  ;;  %v313_v32 = vadd.f32 %v461_v4, %v242_v21  ;;  %v117_v38 = vld [vmem:[%s1161_s1 + $0x120] sm:$0xff]  ;;  %v51_v43 = vld [vmem:[%s1160_s0 + $0x110] sm:$0xff]  ;;  %v118_v44 = vld [vmem:[%s1161_s1 + $0x128] sm:$0xff] }
  0x1c   :  { %375 = vst [vmem:[%s1164_s4 + $0xc0] sm:$0xff] %v311_v20  ;;  %v245_v33 = vadd.f32 %v181_v22, %v46_v16  ;;  %v183_v34 = vmul.f32 %v455_v2, %v112_v17  ;;  %v184_v35 = vmul.f32 %v455_v2, %v113_v18  ;;  %v314_v39 = vadd.f32 %v461_v4, %v243_v26  ;;  %v52_v49 = vld [vmem:[%s1160_s0 + $0x118] sm:$0xff]  ;;  %v53_v50 = vld [vmem:[%s1160_s0 + $0x120] sm:$0xff]  ;;  %v119_v51 = vld [vmem:[%s1161_s1 + $0x130] sm:$0xff] }
  0x1d   :  { %376 = vst [vmem:[%s1164_s4 + $0xc8] sm:$0xff] %v312_v25  ;;  %v315_v40 = vadd.f32 %v461_v4, %v244_v27  ;;  %v246_v41 = vadd.f32 %v182_v28, %v47_v23  ;;  %v185_v42 = vmul.f32 %v455_v2, %v114_v24  ;;  %377 = vst [vmem:[%s1164_s4 + $0xd0] sm:$0xff] %v313_v32  ;;  %v54_v56 = vld [vmem:[%s1160_s0 + $0x128] sm:$0xff]  ;;  %v120_v57 = vld [vmem:[%s1161_s1 + $0x138] sm:$0xff] }
  0x1e   :  { %v316_v45 = vadd.f32 %v461_v4, %v245_v33  ;;  %v247_v46 = vadd.f32 %v183_v34, %v48_v29  ;;  %v248_v47 = vadd.f32 %v184_v35, %v49_v30  ;;  %v186_v48 = vmul.f32 %v455_v2, %v115_v31  ;;  %378 = vst [vmem:[%s1164_s4 + $0xd8] sm:$0xff] %v314_v39  ;;  %v121_v58 = vld [vmem:[%s1161_s1 + $0x140] sm:$0xff]  ;;  %v55_v63 = vld [vmem:[%s1160_s0 + $0x130] sm:$0xff]  ;;  %v122_v0 = vld [vmem:[%s1161_s1 + $0x148] sm:$0xff] }
  0x1f   :  { %379 = vst [vmem:[%s1164_s4 + $0xe0] sm:$0xff] %v315_v40  ;;  %v317_v52 = vadd.f32 %v461_v4, %v246_v41  ;;  %v249_v53 = vadd.f32 %v185_v42, %v50_v36  ;;  %v187_v54 = vmul.f32 %v455_v2, %v116_v37  ;;  %v188_v55 = vmul.f32 %v455_v2, %v117_v38  ;;  %v56_v7 = vld [vmem:[%s1160_s0 + $0x138] sm:$0xff]  ;;  %v57_v8 = vld [vmem:[%s1160_s0 + $0x140] sm:$0xff]  ;;  %v123_v9 = vld [vmem:[%s1161_s1 + $0x150] sm:$0xff] }
  0x20   :  { %380 = vst [vmem:[%s1164_s4 + $0xe8] sm:$0xff] %v316_v45  ;;  %v318_v59 = vadd.f32 %v461_v4, %v247_v46  ;;  %v319_v60 = vadd.f32 %v461_v4, %v248_v47  ;;  %v250_v61 = vadd.f32 %v186_v48, %v51_v43  ;;  %v189_v62 = vmul.f32 %v455_v2, %v118_v44  ;;  %v58_v14 = vld [vmem:[%s1160_s0 + $0x148] sm:$0xff]  ;;  %v124_v15 = vld [vmem:[%s1161_s1 + $0x158] sm:$0xff]  ;;  %v125_v16 = vld [vmem:[%s1161_s1 + $0x160] sm:$0xff] }
  0x21   :  { %381 = vst [vmem:[%s1164_s4 + $0xf0] sm:$0xff] %v317_v52  ;;  %v320_v1 = vadd.f32 %v461_v4, %v249_v53  ;;  %v251_v3 = vadd.f32 %v187_v54, %v52_v49  ;;  %v252_v5 = vadd.f32 %v188_v55, %v53_v50  ;;  %v190_v6 = vmul.f32 %v455_v2, %v119_v51  ;;  %v59_v21 = vld [vmem:[%s1160_s0 + $0x150] sm:$0xff]  ;;  %v126_v22 = vld [vmem:[%s1161_s1 + $0x168] sm:$0xff]  ;;  %v60_v27 = vld [vmem:[%s1160_s0 + $0x158] sm:$0xff] }
  0x22   :  { %382 = vst [vmem:[%s1164_s4 + $0xf8] sm:$0xff] %v318_v59  ;;  %383 = vst [vmem:[%s1164_s4 + $0x100] sm:$0xff] %v319_v60  ;;  %v321_v10 = vadd.f32 %v461_v4, %v250_v61  ;;  %v253_v11 = vadd.f32 %v189_v62, %v54_v56  ;;  %v191_v12 = vmul.f32 %v455_v2, %v120_v57  ;;  %v61_v28 = vld [vmem:[%s1160_s0 + $0x160] sm:$0xff]  ;;  %v127_v29 = vld [vmem:[%s1161_s1 + $0x170] sm:$0xff] }
  0x23   :  { %v192_v13 = vmul.f32 %v455_v2, %v121_v58  ;;  %384 = vst [vmem:[%s1164_s4 + $0x108] sm:$0xff] %v320_v1  ;;  %v322_v17 = vadd.f32 %v461_v4, %v251_v3  ;;  %v323_v18 = vadd.f32 %v461_v4, %v252_v5  ;;  %v254_v19 = vadd.f32 %v190_v6, %v55_v63  ;;  %v62_v34 = vld [vmem:[%s1160_s0 + $0x168] sm:$0xff]  ;;  %v128_v35 = vld [vmem:[%s1161_s1 + $0x178] sm:$0xff]  ;;  %v129_v36 = vld [vmem:[%s1161_s1 + $0x180] sm:$0xff] }
  0x24   :  { %v193_v20 = vmul.f32 %v455_v2, %v122_v0  ;;  %385 = vst [vmem:[%s1164_s4 + $0x110] sm:$0xff] %v321_v10  ;;  %v324_v23 = vadd.f32 %v461_v4, %v253_v11  ;;  %v255_v24 = vadd.f32 %v191_v12, %v56_v7  ;;  %v194_v26 = vmul.f32 %v455_v2, %v123_v9  ;;  %v63_v41 = vld [vmem:[%s1160_s0 + $0x170] sm:$0xff]  ;;  %v130_v42 = vld [vmem:[%s1161_s1 + $0x188] sm:$0xff]  ;;  %v64_v47 = vld [vmem:[%s1160_s0 + $0x178] sm:$0xff] }
  0x25   :  { %v256_v25 = vadd.f32 %v192_v13, %v57_v8  ;;  %386 = vst [vmem:[%s1164_s4 + $0x118] sm:$0xff] %v322_v17  ;;  %387 = vst [vmem:[%s1164_s4 + $0x120] sm:$0xff] %v323_v18  ;;  %v325_v30 = vadd.f32 %v461_v4, %v254_v19  ;;  %v195_v32 = vmul.f32 %v455_v2, %v124_v15  ;;  %v65_v48 = vld [vmem:[%s1160_s0 + $0x180] sm:$0xff]  ;;  %v131_v49 = vld [vmem:[%s1161_s1 + $0x190] sm:$0xff] }
  0x26   :  { %v257_v31 = vadd.f32 %v193_v20, %v58_v14  ;;  %v196_v33 = vmul.f32 %v455_v2, %v125_v16  ;;  %388 = vst [vmem:[%s1164_s4 + $0x128] sm:$0xff] %v324_v23  ;;  %v326_v37 = vadd.f32 %v461_v4, %v255_v24  ;;  %v258_v39 = vadd.f32 %v194_v26, %v59_v21  ;;  %v66_v54 = vld [vmem:[%s1160_s0 + $0x188] sm:$0xff]  ;;  %v132_v55 = vld [vmem:[%s1161_s1 + $0x198] sm:$0xff]  ;;  %v133_v56 = vld [vmem:[%s1161_s1 + $0x1a0] sm:$0xff] }
  0x27   :  { %v327_v38 = vadd.f32 %v461_v4, %v256_v25  ;;  %v197_v40 = vmul.f32 %v455_v2, %v126_v22  ;;  %389 = vst [vmem:[%s1164_s4 + $0x130] sm:$0xff] %v325_v30  ;;  %v259_v44 = vadd.f32 %v195_v32, %v60_v27  ;;  %v198_v46 = vmul.f32 %v455_v2, %v127_v29  ;;  %v67_v61 = vld [vmem:[%s1160_s0 + $0x190] sm:$0xff]  ;;  %v134_v62 = vld [vmem:[%s1161_s1 + $0x1a8] sm:$0xff]  ;;  %v68_v5 = vld [vmem:[%s1160_s0 + $0x198] sm:$0xff] }
  0x28   :  { %v328_v43 = vadd.f32 %v461_v4, %v257_v31  ;;  %v260_v45 = vadd.f32 %v196_v33, %v61_v28  ;;  %390 = vst [vmem:[%s1164_s4 + $0x138] sm:$0xff] %v326_v37  ;;  %v329_v50 = vadd.f32 %v461_v4, %v258_v39  ;;  %v199_v52 = vmul.f32 %v455_v2, %v128_v35  ;;  %v69_v6 = vld [vmem:[%s1160_s0 + $0x1a0] sm:$0xff]  ;;  %v135_v7 = vld [vmem:[%s1161_s1 + $0x1b0] sm:$0xff]  ;;  %v70_v12 = vld [vmem:[%s1160_s0 + $0x1a8] sm:$0xff] }
  0x29   :  { %391 = vst [vmem:[%s1164_s4 + $0x140] sm:$0xff] %v327_v38  ;;  %v261_v51 = vadd.f32 %v197_v40, %v62_v34  ;;  %v200_v53 = vmul.f32 %v455_v2, %v129_v36  ;;  %v330_v57 = vadd.f32 %v461_v4, %v259_v44  ;;  %v262_v59 = vadd.f32 %v198_v46, %v63_v41  ;;  %v136_v13 = vld [vmem:[%s1161_s1 + $0x1b8] sm:$0xff]  ;;  %v137_v14 = vld [vmem:[%s1161_s1 + $0x1c0] sm:$0xff]  ;;  %v71_v19 = vld [vmem:[%s1160_s0 + $0x1b0] sm:$0xff] }
  0x2a   :  { %392 = vst [vmem:[%s1164_s4 + $0x148] sm:$0xff] %v328_v43  ;;  %v331_v58 = vadd.f32 %v461_v4, %v260_v45  ;;  %v201_v60 = vmul.f32 %v455_v2, %v130_v42  ;;  %393 = vst [vmem:[%s1164_s4 + $0x150] sm:$0xff] %v329_v50  ;;  %v263_v0 = vadd.f32 %v199_v52, %v64_v47  ;;  %v138_v20 = vld [vmem:[%s1161_s1 + $0x1c8] sm:$0xff]  ;;  %v72_v25 = vld [vmem:[%s1160_s0 + $0x1b8] sm:$0xff] }
  0x2b   :  { %v332_v63 = vadd.f32 %v461_v4, %v261_v51  ;;  %v264_v1 = vadd.f32 %v200_v53, %v65_v48  ;;  %v202_v3 = vmul.f32 %v455_v2, %v131_v49  ;;  %394 = vst [vmem:[%s1164_s4 + $0x158] sm:$0xff] %v330_v57  ;;  %v333_v8 = vadd.f32 %v461_v4, %v262_v59  ;;  %v73_v26 = vld [vmem:[%s1160_s0 + $0x1c0] sm:$0xff]  ;;  %v139_v27 = vld [vmem:[%s1161_s1 + $0x1d0] sm:$0xff]  ;;  %v74_v32 = vld [vmem:[%s1160_s0 + $0x1c8] sm:$0xff] }
  0x2c   :  { %395 = vst [vmem:[%s1164_s4 + $0x160] sm:$0xff] %v331_v58  ;;  %v265_v9 = vadd.f32 %v201_v60, %v66_v54  ;;  %v203_v10 = vmul.f32 %v455_v2, %v132_v55  ;;  %v204_v11 = vmul.f32 %v455_v2, %v133_v56  ;;  %v334_v15 = vadd.f32 %v461_v4, %v263_v0  ;;  %v140_v33 = vld [vmem:[%s1161_s1 + $0x1d8] sm:$0xff]  ;;  %v141_v34 = vld [vmem:[%s1161_s1 + $0x1e0] sm:$0xff]  ;;  %v75_v39 = vld [vmem:[%s1160_s0 + $0x1d0] sm:$0xff] }
  0x2d   :  { %396 = vst [vmem:[%s1164_s4 + $0x168] sm:$0xff] %v332_v63  ;;  %v335_v16 = vadd.f32 %v461_v4, %v264_v1  ;;  %v266_v17 = vadd.f32 %v202_v3, %v67_v61  ;;  %v205_v18 = vmul.f32 %v455_v2, %v134_v62  ;;  %397 = vst [vmem:[%s1164_s4 + $0x170] sm:$0xff] %v333_v8  ;;  %v142_v40 = vld [vmem:[%s1161_s1 + $0x1e8] sm:$0xff]  ;;  %v76_v45 = vld [vmem:[%s1160_s0 + $0x1d8] sm:$0xff] }
  0x2e   :  { %v336_v21 = vadd.f32 %v461_v4, %v265_v9  ;;  %v267_v22 = vadd.f32 %v203_v10, %v68_v5  ;;  %v268_v23 = vadd.f32 %v204_v11, %v69_v6  ;;  %v206_v24 = vmul.f32 %v455_v2, %v135_v7  ;;  %398 = vst [vmem:[%s1164_s4 + $0x178] sm:$0xff] %v334_v15  ;;  %v77_v46 = vld [vmem:[%s1160_s0 + $0x1e0] sm:$0xff]  ;;  %v143_v47 = vld [vmem:[%s1161_s1 + $0x1f0] sm:$0xff]  ;;  %v78_v52 = vld [vmem:[%s1160_s0 + $0x1e8] sm:$0xff] }
  0x2f   :  { %399 = vst [vmem:[%s1164_s4 + $0x180] sm:$0xff] %v335_v16  ;;  %v337_v28 = vadd.f32 %v461_v4, %v266_v17  ;;  %v269_v29 = vadd.f32 %v205_v18, %v70_v12  ;;  %v207_v30 = vmul.f32 %v455_v2, %v136_v13  ;;  %v208_v31 = vmul.f32 %v455_v2, %v137_v14  ;;  %v144_v53 = vld [vmem:[%s1161_s1 + $0x1f8] sm:$0xff]  ;;  %v79_v58 = vld [vmem:[%s1160_s0 + $0x1f0] sm:$0xff] }
  0x30   :  { %400 = vst [vmem:[%s1164_s4 + $0x188] sm:$0xff] %v336_v21  ;;  %v338_v35 = vadd.f32 %v461_v4, %v267_v22  ;;  %v339_v36 = vadd.f32 %v461_v4, %v268_v23  ;;  %v270_v37 = vadd.f32 %v206_v24, %v71_v19  ;;  %v209_v38 = vmul.f32 %v455_v2, %v138_v20  ;;  %v80_v63 = vld [vmem:[%s1160_s0 + $0x1f8] sm:$0xff] }
  0x31   :  { %401 = vst [vmem:[%s1164_s4 + $0x190] sm:$0xff] %v337_v28  ;;  %v340_v41 = vadd.f32 %v461_v4, %v269_v29  ;;  %v271_v42 = vadd.f32 %v207_v30, %v72_v25  ;;  %v272_v43 = vadd.f32 %v208_v31, %v73_v26  ;;  %v210_v44 = vmul.f32 %v455_v2, %v139_v27 }
  0x32   :  { %402 = vst [vmem:[%s1164_s4 + $0x198] sm:$0xff] %v338_v35  ;;  %403 = vst [vmem:[%s1164_s4 + $0x1a0] sm:$0xff] %v339_v36  ;;  %v341_v48 = vadd.f32 %v461_v4, %v270_v37  ;;  %v273_v49 = vadd.f32 %v209_v38, %v74_v32  ;;  %v211_v50 = vmul.f32 %v455_v2, %v140_v33 }
  0x33   :  { %v212_v51 = vmul.f32 %v455_v2, %v141_v34  ;;  %404 = vst [vmem:[%s1164_s4 + $0x1a8] sm:$0xff] %v340_v41  ;;  %v342_v54 = vadd.f32 %v461_v4, %v271_v42  ;;  %v343_v55 = vadd.f32 %v461_v4, %v272_v43  ;;  %v274_v56 = vadd.f32 %v210_v44, %v75_v39 }
  0x34   :  { %v213_v57 = vmul.f32 %v455_v2, %v142_v40  ;;  %405 = vst [vmem:[%s1164_s4 + $0x1b0] sm:$0xff] %v341_v48  ;;  %v344_v59 = vadd.f32 %v461_v4, %v273_v49  ;;  %v275_v60 = vadd.f32 %v211_v50, %v76_v45  ;;  %v214_v62 = vmul.f32 %v455_v2, %v143_v47 }
  0x35   :  { %v276_v61 = vadd.f32 %v212_v51, %v77_v46  ;;  %406 = vst [vmem:[%s1164_s4 + $0x1b8] sm:$0xff] %v342_v54  ;;  %407 = vst [vmem:[%s1164_s4 + $0x1c0] sm:$0xff] %v343_v55  ;;  %v345_v0 = vadd.f32 %v461_v4, %v274_v56  ;;  %v215_v3 = vmul.f32 %v455_v2, %v144_v53 }
  0x36   :  { %v277_v1 = vadd.f32 %v213_v57, %v78_v52  ;;  %408 = vst [vmem:[%s1164_s4 + $0x1c8] sm:$0xff] %v344_v59  ;;  %v346_v5 = vadd.f32 %v461_v4, %v275_v60  ;;  %v278_v7 = vadd.f32 %v214_v62, %v79_v58 }
  0x37   :  { %v347_v6 = vadd.f32 %v461_v4, %v276_v61  ;;  %409 = vst [vmem:[%s1164_s4 + $0x1d0] sm:$0xff] %v345_v0  ;;  %v279_v9 = vadd.f32 %v215_v3, %v80_v63 }
  0x38   :  { %v348_v8 = vadd.f32 %v461_v4, %v277_v1  ;;  %410 = vst [vmem:[%s1164_s4 + $0x1d8] sm:$0xff] %v346_v5  ;;  %v349_v2 = vadd.f32 %v461_v4, %v278_v7 }
  0x39   :  { %411 = vst [vmem:[%s1164_s4 + $0x1e0] sm:$0xff] %v347_v6  ;;  %v350_v10 = vadd.f32 %v461_v4, %v279_v9 }
  0x3a   :  { %412 = vst [vmem:[%s1164_s4 + $0x1e8] sm:$0xff] %v348_v8  ;;  %413 = vst [vmem:[%s1164_s4 + $0x1f0] sm:$0xff] %v349_v2 }
  0x3b   :  { %414 = vst [vmem:[%s1164_s4 + $0x1f8] sm:$0xff] %v350_v10 }

// kernel: resblock_pallas.4
= control target key start
LH: loop header
LB: loop body
LE: loop exit
PB: predicated region body
PF: predicated region fallthrough
CT: control target
= control target key end

     0   :  { %s2125_s3 = inlined_call_operand.vmem [shape: bf16[128,128], index: 3, kind: input, shape index: {}]   ;;  %s2126_s0 = inlined_call_operand.vmem [shape: bf16[512,128], index: 0, kind: input, shape index: {}]   ;;  %s2127_s1 = inlined_call_operand.vmem [shape: f32[1,128], index: 1, kind: input, shape index: {}]   ;;  %s2128_s2 = inlined_call_operand.vmem [shape: f32[1,128], index: 2, kind: input, shape index: {}]   ;;  %s2129_s4 = inlined_call_operand.vmem [shape: f32[1,128], index: 4, kind: input, shape index: {}]   ;;  %s2130_s5 = inlined_call_operand.vmem [shape: f32[512,128], index: 5, kind: output, shape index: {0}]   ;;  %s2131_s6 = inlined_call_operand.vmem [shape: f32[1,2,128], index: 6, kind: output, shape index: {1}]  }
   0x1   :  { %v1331_v0 = vld [vmem:[%s2125_s3 + $0x38] sm:$0xff]   ;;  %v1332_v1 = vld [vmem:[%s2125_s3 + $0x30] sm:$0xff]   ;;  %v1333_v2 = vld [vmem:[%s2125_s3 + $0x28] sm:$0xff]  }
   0x2   :  { %1235 = vmatprep.subr.bf16.mxu0 %v1331_v0  ;;  %1315 = vmatprep.subr.bf16.mxu1 %v1331_v0  ;;  %v1334_v3 = vld [vmem:[%s2125_s3 + $0x20] sm:$0xff]   ;;  %v1164_v8 = vld [vmem:[%s2126_s0 + $0x8] sm:$0xff]   ;;  %v1165_v9 = vld [vmem:[%s2126_s0 + $0x10] sm:$0xff]  }
   0x3   :  { %1236 = vmatpush3.bf16.msra.mxu0 %v1331_v0  ;;  %1323 = vmatpush3.bf16.msra.mxu1 %v1331_v0  ;;  %v1037_v4 = vld [vmem:[%s2126_s0] sm:$0xff]   ;;  %v1335_v13 = vld [vmem:[%s2125_s3 + $0x18] sm:$0xff]   ;;  %v1042_v14 = vunpack.c.l.bf16 %v1164_v8  ;;  %v1043_v15 = vunpack.c.h.bf16 %v1164_v8  ;;  %v1046_v16 = vunpack.c.l.bf16 %v1165_v9  ;;  %v1047_v19 = vunpack.c.h.bf16 %v1165_v9  ;;  %v1336_v22 = vld [vmem:[%s2125_s3 + $0x10] sm:$0xff]  }
   0x4   :  { %1237 = vmatprep.subr.bf16.mxu0 %v1332_v1  ;;  %1316 = vmatprep.subr.bf16.mxu1 %v1332_v1  ;;  %v1392_v5 = vld [vmem:[%s2127_s1] ss:$0 sm:$0xff]  ;;  %v1038_v6 = vunpack.c.l.bf16 %v1037_v4  ;;  %v1039_v7 = vunpack.c.h.bf16 %v1037_v4  ;;  %v1166_v26 = vld [vmem:[%s2126_s0 + $0x18] sm:$0xff]   ;;  %v1337_v31 = vld [vmem:[%s2125_s3 + $0x8] sm:$0xff]  }
   0x5   :  { %v1403_v10 = vld [vmem:[%s2128_s2] ss:$0 sm:$0xff]  ;;  %v160_v23 = vmul.f32 %v1042_v14, %v1392_v5  ;;  %v161_v24 = vmul.f32 %v1043_v15, %v1392_v5  ;;  %v162_v25 = vmul.f32 %v1046_v16, %v1392_v5  ;;  %v163_v28 = vmul.f32 %v1047_v19, %v1392_v5  ;;  %v1168_v38 = vld [vmem:[%s2126_s0 + $0x28] sm:$0xff]   ;;  %v1169_v41 = vld [vmem:[%s2126_s0 + $0x30] sm:$0xff]  }
   0x6   :  { %v158_v11 = vmul.f32 %v1038_v6, %v1392_v5  ;;  %v159_v12 = vmul.f32 %v1039_v7, %v1392_v5  ;;  %v1167_v29 = vld [vmem:[%s2126_s0 + $0x20] sm:$0xff]   ;;  %v1050_v30 = vunpack.c.l.bf16 %v1166_v26  ;;  %v1051_v35 = vunpack.c.h.bf16 %v1166_v26  ;;  %v1170_v42 = vld [vmem:[%s2126_s0 + $0x38] sm:$0xff]   ;;  %v1172_v63 = vld [vmem:[%s2126_s0 + $0x48] sm:$0xff]  }
   0x7   :  { %1238 = vmatpush3.bf16.msra.mxu0 %v1332_v1  ;;  %1324 = vmatpush3.bf16.msra.mxu1 %v1332_v1  ;;  %v231_v32 = vadd.f32 %v1403_v10, %v160_v23  ;;  %v232_v33 = vadd.f32 %v1403_v10, %v161_v24  ;;  %v233_v34 = vadd.f32 %v1403_v10, %v162_v25  ;;  %v1054_v37 = vunpack.c.l.bf16 %v1167_v29  ;;  %v1338_v43 = vld [vmem:[%s2125_s3] sm:$0xff]   ;;  %v1173_v4 = vld [vmem:[%s2126_s0 + $0x50] sm:$0xff]   ;;  %v1174_v23 = vld [vmem:[%s2126_s0 + $0x58] sm:$0xff]  }
   0x8   :  { %1239 = vmatprep.subr.bf16.mxu0 %v1333_v2  ;;  %1317 = vmatprep.subr.bf16.mxu1 %v1333_v2  ;;  %v229_v17 = vadd.f32 %v1403_v10, %v158_v11  ;;  %v230_v18 = vadd.f32 %v1403_v10, %v159_v12  ;;  %v234_v36 = vadd.f32 %v1403_v10, %v163_v28  ;;  %v1055_v40 = vunpack.c.h.bf16 %v1167_v29  ;;  %v1171_v48 = vld [vmem:[%s2126_s0 + $0x40] sm:$0xff]  }
   0x9   :  { %v164_v39 = vmul.f32 %v1050_v30, %v1392_v5  ;;  %v295_v44 = vmax.f32 %v231_v32, 0.0  ;;  %v296_v45 = vmax.f32 %v232_v33, 0.0  ;;  %v297_v46 = vmax.f32 %v233_v34, 0.0 }
   0xa   :  { %v293_v20 = vmax.f32 %v229_v17, 0.0  ;;  %v294_v21 = vmax.f32 %v230_v18, 0.0  ;;  %v165_v47 = vmul.f32 %v1051_v35, %v1392_v5  ;;  %v298_v49 = vmax.f32 %v234_v36, 0.0 }
   0xb   :  { %1240 = vmatpush3.bf16.msra.mxu0 %v1333_v2  ;;  %1325 = vmatpush3.bf16.msra.mxu1 %v1333_v2  ;;  %v166_v50 = vmul.f32 %v1054_v37, %v1392_v5  ;;  %v1058_v51 = vunpack.c.l.bf16 %v1168_v38  ;;  %v1059_v52 = vunpack.c.h.bf16 %v1168_v38  ;;  %v1062_v53 = vunpack.c.l.bf16 %v1169_v41 }
   0xc   :  { %1241 = vmatprep.subr.bf16.mxu0 %v1334_v3  ;;  %1318 = vmatprep.subr.bf16.mxu1 %v1334_v3  ;;  %v357_v27 = vpack.c.bf16 %v294_v21, %v293_v20  ;;  %v1063_v54 = vunpack.c.h.bf16 %v1169_v41  ;;  %v1066_v55 = vunpack.c.l.bf16 %v1170_v42  ;;  %v1067_v56 = vunpack.c.h.bf16 %v1170_v42 }
   0xd   :  { %v167_v57 = vmul.f32 %v1055_v40, %v1392_v5  ;;  %v1070_v58 = vunpack.c.l.bf16 %v1171_v48  ;;  %v1071_v59 = vunpack.c.h.bf16 %v1171_v48  ;;  %v358_v60 = vpack.c.bf16 %v296_v45, %v295_v44  ;;  %v1179_v44 = vld [vmem:[%s2126_s0 + $0x80] sm:$0xff]  }
   0xe   :  { %1251 = vmatprep.mubr.bf16.mxu0 %v357_v27  ;;  %v235_v61 = vadd.f32 %v1403_v10, %v164_v39  ;;  %v236_v62 = vadd.f32 %v1403_v10, %v165_v47  ;;  %v359_v0 = vpack.c.bf16 %v298_v49, %v297_v46  ;;  %v237_v1 = vadd.f32 %v1403_v10, %v166_v50 }
   0xf   :  { %1242 = vmatpush3.bf16.msra.mxu0 %v1334_v3  ;;  %1326 = vmatpush3.bf16.msra.mxu1 %v1334_v3  ;;  %v168_v2 = vmul.f32 %v1058_v51, %v1392_v5  ;;  %v169_v3 = vmul.f32 %v1059_v52, %v1392_v5  ;;  %v170_v6 = vmul.f32 %v1062_v53, %v1392_v5  ;;  %v1074_v14 = vunpack.c.l.bf16 %v1172_v63  ;;  %v1496_v52 = vld [vmem:[%s2126_s0 + $0x60] sm:$0xff]  }
  0x10   :  { %1243 = vmatprep.subr.bf16.mxu0 %v1335_v13  ;;  %1319 = vmatprep.subr.bf16.mxu1 %v1335_v13  ;;  %v171_v7 = vmul.f32 %v1063_v54, %v1392_v5  ;;  %v172_v8 = vmul.f32 %v1066_v55, %v1392_v5  ;;  %v173_v9 = vmul.f32 %v1067_v56, %v1392_v5  ;;  %v299_v15 = vmax.f32 %v235_v61, 0.0 }
  0x11   :  { %v238_v11 = vadd.f32 %v1403_v10, %v167_v57  ;;  %v174_v12 = vmul.f32 %v1070_v58, %v1392_v5  ;;  %v300_v16 = vmax.f32 %v236_v62, 0.0  ;;  %v1075_v17 = vunpack.c.h.bf16 %v1172_v63 }
  0x12   :  { %v1078_v18 = vunpack.c.l.bf16 %v1173_v4  ;;  %v301_v19 = vmax.f32 %v237_v1, 0.0  ;;  %v239_v20 = vadd.f32 %v1403_v10, %v168_v2  ;;  %v240_v21 = vadd.f32 %v1403_v10, %v169_v3 }
  0x13   :  { %1244 = vmatpush3.bf16.msra.mxu0 %v1335_v13  ;;  %1327 = vmatpush3.bf16.msra.mxu1 %v1335_v13  ;;  %v175_v13 = vmul.f32 %v1071_v59, %v1392_v5  ;;  %v241_v24 = vadd.f32 %v1403_v10, %v170_v6  ;;  %v242_v25 = vadd.f32 %v1403_v10, %v171_v7  ;;  %v302_v28 = vmax.f32 %v238_v11, 0.0  ;;  %v1180_v59 = vld [vmem:[%s2126_s0 + $0x88] sm:$0xff]   ;;  %v1182_v11 = vld [vmem:[%s2126_s0 + $0x98] sm:$0xff]  }
  0x14   :  { %1245 = vmatprep.subr.bf16.mxu0 %v1336_v22  ;;  %1320 = vmatprep.subr.bf16.mxu1 %v1336_v22  ;;  %v243_v26 = vadd.f32 %v1403_v10, %v172_v8  ;;  %v244_v27 = vadd.f32 %v1403_v10, %v173_v9  ;;  %v245_v29 = vadd.f32 %v1403_v10, %v174_v12  ;;  %v1082_v35 = vunpack.c.l.bf16 %v1174_v23 }
  0x15   :  { %v246_v30 = vadd.f32 %v1403_v10, %v175_v13  ;;  %v360_v32 = vpack.c.bf16 %v300_v16, %v299_v15  ;;  %v177_v33 = vmul.f32 %v1075_v17, %v1392_v5  ;;  %v178_v34 = vmul.f32 %v1078_v18, %v1392_v5 }
  0x16   :  { %v303_v36 = vmax.f32 %v239_v20, 0.0  ;;  %v304_v37 = vmax.f32 %v240_v21, 0.0  ;;  %v1083_v39 = vunpack.c.h.bf16 %v1174_v23  ;;  %v305_v40 = vmax.f32 %v241_v24, 0.0  ;;  %v1183_v24 = vld [vmem:[%s2126_s0 + $0xa0] sm:$0xff]  }
  0x17   :  { %1246 = vmatpush3.bf16.msra.mxu0 %v1336_v22  ;;  %1328 = vmatpush3.bf16.msra.mxu1 %v1336_v22  ;;  %v1079_v22 = vunpack.c.h.bf16 %v1173_v4  ;;  %v306_v41 = vmax.f32 %v242_v25, 0.0  ;;  %v307_v42 = vmax.f32 %v243_v26, 0.0  ;;  %v361_v45 = vpack.c.bf16 %v302_v28, %v301_v19 }
  0x18   :  { %1247 = vmatprep.subr.bf16.mxu0 %v1337_v31  ;;  %1321 = vmatprep.subr.bf16.mxu1 %v1337_v31  ;;  %v309_v46 = vmax.f32 %v245_v29, 0.0  ;;  %v310_v47 = vmax.f32 %v246_v30, 0.0  ;;  %v248_v49 = vadd.f32 %v1403_v10, %v177_v33  ;;  %v1490_v50 = vadd.f32 %v1403_v10, %v178_v34  ;;  %v1184_v33 = vld [vmem:[%s2126_s0 + $0xa8] sm:$0xff]  }
  0x19   :  { %v179_v38 = vmul.f32 %v1079_v22, %v1392_v5  ;;  %v180_v51 = vmul.f32 %v1082_v35, %v1392_v5  ;;  %v181_v54 = vmul.f32 %v1083_v39, %v1392_v5  ;;  %v1102_v55 = vunpack.c.l.bf16 %v1179_v44 }
  0x1a   :  { %v362_v56 = vpack.c.bf16 %v304_v37, %v303_v36  ;;  %v363_v57 = vpack.c.bf16 %v306_v41, %v305_v40  ;;  %v1086_v62 = vunpack.c.l.bf16 %v1496_v52  ;;  %v1103_v63 = vunpack.c.h.bf16 %v1179_v44 }
  0x1b   :  { %1248 = vmatpush3.bf16.msra.mxu0 %v1337_v31  ;;  %1329 = vmatpush3.bf16.msra.mxu1 %v1337_v31  ;;  %v176_v31 = vmul.f32 %v1074_v14, %v1392_v5  ;;  %v1499_v53 = vadd.f32 %v1403_v10, %v179_v38  ;;  %v312_v1 = vmax.f32 %v248_v49, 0.0  ;;  %v313_v2 = vmax.f32 %v1490_v50, 0.0 }
  0x1c   :  { %1249 = vmatprep.subr.bf16.mxu0 %v1338_v43  ;;  %1322 = vmatprep.subr.bf16.mxu1 %v1338_v43  ;;  %v1515_v3 = vadd.f32 %v1403_v10, %v180_v51  ;;  %v190_v4 = vmul.f32 %v1102_v55, %v1392_v5  ;;  %v1520_v7 = vadd.f32 %v1403_v10, %v181_v54  ;;  %v1106_v9 = vunpack.c.l.bf16 %v1180_v59 }
  0x1d   :  { %v247_v48 = vadd.f32 %v1403_v10, %v176_v31  ;;  %v314_v6 = vmax.f32 %v1499_v53, 0.0  ;;  %v191_v8 = vmul.f32 %v1103_v63, %v1392_v5  ;;  %v1087_v12 = vunpack.c.h.bf16 %v1496_v52 }
  0x1e   :  { %v261_v13 = vadd.f32 %v1403_v10, %v190_v4  ;;  %v1107_v14 = vunpack.c.h.bf16 %v1180_v59  ;;  %v1529_v16 = vmul.f32 %v1086_v62, %v1392_v5  ;;  %v192_v18 = vmul.f32 %v1106_v9, %v1392_v5 }
  0x1f   :  { %1250 = vmatpush3.bf16.msra.mxu0 %v1338_v43  ;;  %1330 = vmatpush3.bf16.msra.mxu1 %v1338_v43  ;;  %v308_v43 = vmax.f32 %v244_v27, 0.0  ;;  %v311_v61 = vmax.f32 %v247_v48, 0.0  ;;  %v262_v17 = vadd.f32 %v1403_v10, %v191_v8  ;;  %v1114_v23 = vunpack.c.l.bf16 %v1182_v11 }
  0x20   :  { %v325_v20 = vmax.f32 %v261_v13, 0.0  ;;  %v193_v21 = vmul.f32 %v1107_v14, %v1392_v5  ;;  %v263_v27 = vadd.f32 %v1403_v10, %v192_v18  ;;  %v1115_v31 = vunpack.c.h.bf16 %v1182_v11  ;;  %v1187_v18 = vld [vmem:[%s2126_s0 + $0xc0] sm:$0xff]  }
  0x21   :  { %v1502_v58 = vpack.c.bf16 %v308_v43, %v307_v42  ;;  %v1538_v25 = vpack.c.bf16 %v312_v1, %v311_v61  ;;  %v326_v26 = vmax.f32 %v262_v17, 0.0  ;;  %v1118_v37 = vunpack.c.l.bf16 %v1183_v24  ;;  %v1186_v1 = vld [vmem:[%s2126_s0 + $0xb8] sm:$0xff]  }
  0x22   :  { %1252 = vmatmul.mubr.bf16.vlgmr.msra.gmra.mxu0 %v358_v60  ;;  %v1507_v60 = vpack.c.bf16 %v310_v47, %v309_v46  ;;  %v264_v29 = vadd.f32 %v1403_v10, %v193_v21  ;;  %v327_v35 = vmax.f32 %v263_v27, 0.0  ;;  %v197_v40 = vmul.f32 %v1115_v31, %v1392_v5  ;;  %v1185_v46 = vld [vmem:[%s2126_s0 + $0xb0] sm:$0xff]   ;;  %v1176_v47 = vld [vmem:[%s2126_s0 + $0x68] sm:$0xff]  }
  0x23   :  { %1255 = vmatprep.mubr.bf16.mxu0 %v359_v0  ;;  %v1181_v0 = vld [vmem:[%s2126_s0 + $0x90] sm:$0xff]   ;;  %v373_v34 = vpack.c.bf16 %v326_v26, %v325_v20  ;;  %v1119_v43 = vunpack.c.h.bf16 %v1183_v24  ;;  %v198_v44 = vmul.f32 %v1118_v37, %v1392_v5  ;;  %v1123_v54 = vunpack.c.h.bf16 %v1184_v33 }
  0x24   :  { %v1110_v15 = vunpack.c.l.bf16 %v1181_v0  ;;  %v1111_v19 = vunpack.c.h.bf16 %v1181_v0  ;;  %v328_v38 = vmax.f32 %v264_v29, 0.0  ;;  %v268_v49 = vadd.f32 %v1403_v10, %v197_v40  ;;  %v1189_v40 = vld [vmem:[%s2126_s0 + $0xd0] sm:$0xff]  }
  0x25   :  { %1283 = vmatprep.mubr.bf16.mxu1 %v373_v34  ;;  %v201_v62 = vmul.f32 %v1123_v54, %v1392_v5  ;;  %v1126_v63 = vunpack.c.l.bf16 %v1185_v46  ;;  %v1127_v0 = vunpack.c.h.bf16 %v1185_v46  ;;  %v315_v4 = vmax.f32 %v1515_v3, 0.0 }
  0x26   :  { %v194_v22 = vmul.f32 %v1110_v15, %v1392_v5  ;;  %v195_v28 = vmul.f32 %v1111_v19, %v1392_v5  ;;  %v374_v48 = vpack.c.bf16 %v328_v38, %v327_v35  ;;  %v332_v61 = vmax.f32 %v268_v49, 0.0 }
  0x27   :  { %v1090_v8 = vunpack.c.l.bf16 %v1176_v47  ;;  %v316_v13 = vmax.f32 %v1520_v7, 0.0  ;;  %v1091_v14 = vunpack.c.h.bf16 %v1176_v47  ;;  %v202_v15 = vmul.f32 %v1126_v63, %v1392_v5 }
  0x28   :  { %v265_v30 = vadd.f32 %v1403_v10, %v194_v22  ;;  %v266_v36 = vadd.f32 %v1403_v10, %v195_v28  ;;  %1284 = vmatmul.mubr.bf16.vlgmr.msra.gmra.mxu1 %v374_v48  ;;  %v203_v17 = vmul.f32 %v1127_v0, %v1392_v5  ;;  %v183_v3 = vmul.f32 %v1087_v12, %v1392_v5 }
  0x29   :  { %v1130_v19 = vunpack.c.l.bf16 %v1186_v1  ;;  %v1131_v20 = vunpack.c.h.bf16 %v1186_v1  ;;  %v273_v24 = vadd.f32 %v1403_v10, %v202_v15  ;;  %v1134_v27 = vunpack.c.l.bf16 %v1187_v18  ;;  %v1190_v15 = vld [vmem:[%s2126_s0 + $0xd8] sm:$0xff]  }
  0x2a   :  { %1256 = vmatmul.mubr.bf16.gmra.mxu0 %v360_v32  ;;  %v196_v32 = vmul.f32 %v1114_v23, %v1392_v5  ;;  %v329_v39 = vmax.f32 %v265_v30, 0.0  ;;  %v330_v42 = vmax.f32 %v266_v36, 0.0  ;;  %v272_v23 = vadd.f32 %v1403_v10, %v201_v62 }
  0x2b   :  { %1259 = vmatprep.mubr.bf16.mxu0 %v361_v45  ;;  %v1122_v45 = vunpack.c.l.bf16 %v1184_v33  ;;  %v1135_v52 = vunpack.c.h.bf16 %v1187_v18  ;;  %v367_v12 = vpack.c.bf16 %v314_v6, %v313_v2  ;;  %v253_v28 = vadd.f32 %v1403_v10, %v1529_v16  ;;  %v1178_v33 = vld [vmem:[%s2126_s0 + $0x78] sm:$0xff]   ;;  %v1188_v16 = vld [vmem:[%s2126_s0 + $0xc8] sm:$0xff]  }
  0x2c   :  { %v267_v41 = vadd.f32 %v1403_v10, %v196_v32  ;;  %v375_v55 = vpack.c.bf16 %v330_v42, %v329_v39  ;;  %v254_v31 = vadd.f32 %v1403_v10, %v183_v3  ;;  %v184_v32 = vmul.f32 %v1090_v8, %v1392_v5 }
  0x2d   :  { %v200_v59 = vmul.f32 %v1122_v45, %v1392_v5  ;;  %v204_v34 = vmul.f32 %v1130_v19, %v1392_v5  ;;  %v205_v50 = vmul.f32 %v1131_v20, %v1392_v5  ;;  %v368_v35 = vpack.c.bf16 %v316_v13, %v315_v4 }
  0x2e   :  { %v331_v51 = vmax.f32 %v267_v41, 0.0  ;;  %1287 = vmatprep.mubr.bf16.mxu1 %v375_v55  ;;  %v185_v53 = vmul.f32 %v1091_v14, %v1392_v5  ;;  %v336_v6 = vmax.f32 %v272_v23, 0.0  ;;  %v337_v36 = vmax.f32 %v273_v24, 0.0 }
  0x2f   :  { %v271_v22 = vadd.f32 %v1403_v10, %v200_v59  ;;  %v206_v38 = vmul.f32 %v1134_v27, %v1392_v5  ;;  %v207_v39 = vmul.f32 %v1135_v52, %v1392_v5  ;;  %v317_v41 = vmax.f32 %v253_v28, 0.0 }
  0x30   :  { %v376_v21 = vpack.c.bf16 %v332_v61, %v331_v51  ;;  %v318_v45 = vmax.f32 %v254_v31, 0.0  ;;  %v275_v46 = vadd.f32 %v1403_v10, %v204_v34  ;;  %v276_v47 = vadd.f32 %v1403_v10, %v205_v50 }
  0x31   :  { %v335_v2 = vmax.f32 %v271_v22, 0.0  ;;  %v1138_v48 = vunpack.c.l.bf16 %v1188_v16  ;;  %v1139_v51 = vunpack.c.h.bf16 %v1188_v16  ;;  %v1142_v54 = vunpack.c.l.bf16 %v1189_v40 }
  0x32   :  { %1260 = vmatmul.mubr.bf16.gmra.mxu0 %v362_v56  ;;  %v199_v56 = vmul.f32 %v1119_v43, %v1392_v5  ;;  %1288 = vmatmul.mubr.bf16.gmra.mxu1 %v376_v21  ;;  %v1143_v55 = vunpack.c.h.bf16 %v1189_v40  ;;  %v278_v59 = vadd.f32 %v1403_v10, %v207_v39  ;;  %v256_v61 = vadd.f32 %v1403_v10, %v185_v53  ;;  %v1191_v21 = vld [vmem:[%s2126_s0 + $0xe0] sm:$0xff]  }
  0x33   :  { %1263 = vmatprep.mubr.bf16.mxu0 %v363_v57  ;;  %v269_v57 = vadd.f32 %v1403_v10, %v198_v44  ;;  %v1098_v44 = vunpack.c.l.bf16 %v1178_v33  ;;  %v378_v49 = vpack.c.bf16 %v336_v6, %v335_v2  ;;  %v1099_v0 = vunpack.c.h.bf16 %v1178_v33 }
  0x34   :  { %v270_v9 = vadd.f32 %v1403_v10, %v199_v56  ;;  %v255_v56 = vadd.f32 %v1403_v10, %v184_v32  ;;  %v369_v1 = vpack.c.bf16 %v318_v45, %v317_v41  ;;  %v339_v4 = vmax.f32 %v275_v46, 0.0  ;;  %v1193_v41 = vld [vmem:[%s2126_s0 + $0xf0] sm:$0xff]  }
  0x35   :  { %v333_v11 = vmax.f32 %v269_v57, 0.0  ;;  %v277_v57 = vadd.f32 %v1403_v10, %v206_v38  ;;  %v340_v8 = vmax.f32 %v276_v47, 0.0  ;;  %v210_v13 = vmul.f32 %v1142_v54, %v1392_v5 }
  0x36   :  { %v334_v7 = vmax.f32 %v270_v9, 0.0  ;;  %v208_v9 = vmul.f32 %v1138_v48, %v1392_v5  ;;  %v211_v14 = vmul.f32 %v1143_v55, %v1392_v5  ;;  %v342_v3 = vmax.f32 %v278_v59, 0.0 }
  0x37   :  { %v341_v18 = vmax.f32 %v277_v57, 0.0  ;;  %v189_v20 = vmul.f32 %v1099_v0, %v1392_v5  ;;  %v380_v23 = vpack.c.bf16 %v340_v8, %v339_v4  ;;  %v281_v27 = vadd.f32 %v1403_v10, %v210_v13 }
  0x38   :  { %v377_v26 = vpack.c.bf16 %v334_v7, %v333_v11  ;;  %v209_v11 = vmul.f32 %v1139_v51, %v1392_v5  ;;  %v320_v7 = vmax.f32 %v256_v61, 0.0  ;;  %v279_v24 = vadd.f32 %v1403_v10, %v208_v9 }
  0x39   :  { %v282_v52 = vadd.f32 %v1403_v10, %v211_v14  ;;  %v381_v28 = vpack.c.bf16 %v342_v3, %v341_v18  ;;  %v260_v33 = vadd.f32 %v1403_v10, %v189_v20  ;;  %v345_v2 = vmax.f32 %v281_v27, 0.0 }
  0x3a   :  { %1264 = vmatmul.mubr.bf16.gmra.mxu0 %v1502_v58  ;;  %v1177_v58 = vld [vmem:[%s2126_s0 + $0x70] sm:$0xff]   ;;  %1291 = vmatprep.mubr.bf16.mxu1 %v377_v26  ;;  %v1146_v26 = vunpack.c.l.bf16 %v1190_v15  ;;  %v343_v50 = vmax.f32 %v279_v24, 0.0  ;;  %v1158_v51 = vunpack.c.l.bf16 %v1193_v41  ;;  %v1159_v54 = vunpack.c.h.bf16 %v1193_v41 }
  0x3b   :  { %1267 = vmatprep.mubr.bf16.mxu0 %v1507_v60  ;;  %v274_v60 = vadd.f32 %v1403_v10, %v203_v17  ;;  %v1094_v29 = vunpack.c.l.bf16 %v1177_v58  ;;  %v1095_v30 = vunpack.c.h.bf16 %v1177_v58  ;;  %1292 = vmatmul.mubr.bf16.gmra.mxu1 %v378_v49  ;;  %v188_v17 = vmul.f32 %v1098_v44, %v1392_v5 }
  0x3c   :  { %v319_v58 = vmax.f32 %v255_v56, 0.0  ;;  %v346_v6 = vmax.f32 %v282_v52, 0.0  ;;  %v324_v40 = vmax.f32 %v260_v33, 0.0  ;;  %v219_v0 = vmul.f32 %v1159_v54, %v1392_v5  ;;  %v1669_v52 = vld [vmem:[%s2129_s4] ss:$0 sm:$0xff] }
  0x3d   :  { %v338_v37 = vmax.f32 %v274_v60, 0.0  ;;  %v186_v42 = vmul.f32 %v1094_v29, %v1392_v5  ;;  %v187_v43 = vmul.f32 %v1095_v30, %v1392_v5  ;;  %v280_v60 = vadd.f32 %v1403_v10, %v209_v11 }
  0x3e   :  { %v1150_v29 = vunpack.c.l.bf16 %v1191_v21  ;;  %v1151_v30 = vunpack.c.h.bf16 %v1191_v21  ;;  %v370_v31 = vpack.c.bf16 %v320_v7, %v319_v58  ;;  %v259_v32 = vadd.f32 %v1403_v10, %v188_v17 }
  0x3f   :  { %v257_v62 = vadd.f32 %v1403_v10, %v186_v42  ;;  %v258_v63 = vadd.f32 %v1403_v10, %v187_v43  ;;  %v344_v53 = vmax.f32 %v280_v60, 0.0  ;;  %v383_v45 = vpack.c.bf16 %v346_v6, %v345_v2 }
  0x40   :  { %v215_v38 = vmul.f32 %v1151_v30, %v1392_v5  ;;  %v323_v39 = vmax.f32 %v259_v32, 0.0  ;;  %v290_v17 = vadd.f32 %v1403_v10, %v219_v0 }
  0x41   :  { %v321_v19 = vmax.f32 %v257_v62, 0.0  ;;  %v322_v22 = vmax.f32 %v258_v63, 0.0  ;;  %v382_v44 = vpack.c.bf16 %v344_v53, %v343_v50  ;;  %v218_v63 = vmul.f32 %v1158_v51, %v1392_v5 }
  0x42   :  { %1268 = vmatmul.mubr.bf16.gmra.mxu0 %v1538_v25  ;;  %v379_v25 = vpack.c.bf16 %v338_v37, %v337_v36  ;;  %v1192_v36 = vld [vmem:[%s2126_s0 + $0xe8] sm:$0xff]   ;;  %v214_v37 = vmul.f32 %v1150_v29, %v1392_v5  ;;  %v286_v49 = vadd.f32 %v1403_v10, %v215_v38  ;;  %v372_v55 = vpack.c.bf16 %v324_v40, %v323_v39 }
  0x43   :  { %1271 = vmatprep.mubr.bf16.mxu0 %v367_v12  ;;  %v1147_v12 = vunpack.c.h.bf16 %v1190_v15  ;;  %v371_v34 = vpack.c.bf16 %v322_v22, %v321_v19  ;;  %v1154_v43 = vunpack.c.l.bf16 %v1192_v36  ;;  %v1155_v47 = vunpack.c.h.bf16 %v1192_v36 }
  0x44   :  { %1295 = vmatprep.mubr.bf16.mxu1 %v379_v25  ;;  %v285_v48 = vadd.f32 %v1403_v10, %v214_v37  ;;  %v350_v62 = vmax.f32 %v286_v49, 0.0  ;;  %v289_v15 = vadd.f32 %v1403_v10, %v218_v63  ;;  %v354_v20 = vmax.f32 %v290_v17, 0.0 }
  0x45   :  { %1296 = vmatmul.mubr.bf16.gmra.mxu1 %v380_v23  ;;  %v213_v16 = vmul.f32 %v1147_v12, %v1392_v5  ;;  %v216_v56 = vmul.f32 %v1154_v43, %v1392_v5  ;;  %v217_v59 = vmul.f32 %v1155_v47, %v1392_v5 }
  0x46   :  { %1299 = vmatprep.mubr.bf16.mxu1 %v381_v28  ;;  %v349_v61 = vmax.f32 %v285_v48, 0.0  ;;  %v353_v19 = vmax.f32 %v289_v15, 0.0 }
  0x47   :  { %v284_v46 = vadd.f32 %v1403_v10, %v213_v16  ;;  %v287_v4 = vadd.f32 %v1403_v10, %v216_v56  ;;  %v288_v9 = vadd.f32 %v1403_v10, %v217_v59 }
  0x48   :  { %v385_v14 = vpack.c.bf16 %v350_v62, %v349_v61  ;;  %v387_v24 = vpack.c.bf16 %v354_v20, %v353_v19 }
  0x49   :  { %v348_v57 = vmax.f32 %v284_v46, 0.0  ;;  %v351_v18 = vmax.f32 %v287_v4, 0.0  ;;  %v352_v3 = vmax.f32 %v288_v9, 0.0 }
  0x4a   :  { %1272 = vmatmul.mubr.bf16.gmra.mxu0 %v368_v35  ;;  %v212_v35 = vmul.f32 %v1146_v26, %v1392_v5 }
  0x4b   :  { %1275 = vmatprep.mubr.bf16.mxu0 %v369_v1  ;;  %v1194_v1 = vld [vmem:[%s2126_s0 + $0xf8] sm:$0xff]   ;;  %v386_v21 = vpack.c.bf16 %v352_v3, %v351_v18 }
  0x4c   :  { %v283_v42 = vadd.f32 %v1403_v10, %v212_v35  ;;  %v1162_v11 = vunpack.c.l.bf16 %v1194_v1  ;;  %v1163_v13 = vunpack.c.h.bf16 %v1194_v1 }
  0x4d   :  { %1300 = vmatmul.mubr.bf16.gmra.mxu1 %v382_v44 }
  0x4e   :  { %v347_v25 = vmax.f32 %v283_v42, 0.0  ;;  %1303 = vmatprep.mubr.bf16.mxu1 %v383_v45  ;;  %v220_v58 = vmul.f32 %v1162_v11, %v1392_v5  ;;  %v221_v7 = vmul.f32 %v1163_v13, %v1392_v5 }
  0x50   :  { %v384_v8 = vpack.c.bf16 %v348_v57, %v347_v25  ;;  %v291_v22 = vadd.f32 %v1403_v10, %v220_v58  ;;  %v292_v23 = vadd.f32 %v1403_v10, %v221_v7 }
  0x52   :  { %1276 = vmatmul.mubr.bf16.gmra.mxu0 %v370_v31  ;;  %v355_v26 = vmax.f32 %v291_v22, 0.0  ;;  %v356_v60 = vmax.f32 %v292_v23, 0.0 }
  0x53   :  { %1279 = vmatprep.mubr.bf16.mxu0 %v371_v34 }
  0x54   :  { %v388_v27 = vpack.c.bf16 %v356_v60, %v355_v26 }
  0x55   :  { %1304 = vmatmul.mubr.bf16.gmra.mxu1 %v384_v8 }
  0x56   :  { %1307 = vmatprep.mubr.bf16.mxu1 %v385_v14 }
  0x5a   :  { %1280 = vmatmul.mubr.bf16.gmra.mxu0 %v372_v55 }
  0x5d   :  { %1308 = vmatmul.mubr.bf16.gmra.mxu1 %v386_v21 }
  0x5e   :  { %1311 = vmatprep.mubr.bf16.mxu1 %v387_v24 }
  0x65   :  { %1312 = vmatmul.mubr.bf16.gmra.mxu1 %v388_v27 }
  0xe2   :  { %v1253_v5 = vpop.f32.mrf.mxu0 }
  0xe3   :  { %v503_v12 = vadd.f32 %v1253_v5, %v1669_v52 }
  0xe4   :  { %v494_v28 = vpop.f32.mrf.mxu0 }
  0xe5   :  { %751 = vst [vmem:[%s2130_s5 + $0x10] sm:$0xff] %v503_v12  ;;  %v495_v10 = vadd.f32 %v1669_v52, %v494_v28  ;;  %v885_v6 = vmul.f32 %v503_v12, %v503_v12 }
  0xe6   :  { %v1254_v29 = vpop.f32.mrf.mxu0 }
  0xe7   :  { %749 = vst [vmem:[%s2130_s5] sm:$0xff] %v495_v10  ;;  %v506_v30 = vadd.f32 %v1254_v29, %v1669_v52  ;;  %v883_v34 = vmul.f32 %v495_v10, %v495_v10 }
  0xe8   :  { %v497_v31 = vpop.f32.mrf.mxu0  ;;  %v1285_v9 = vpop.f32.mrf.mxu1 }
  0xe9   :  { %752 = vst [vmem:[%s2130_s5 + $0x18] sm:$0xff] %v506_v30  ;;  %v498_v32 = vadd.f32 %v1669_v52, %v497_v31  ;;  %v886_v39 = vmul.f32 %v506_v30, %v506_v30  ;;  %v1717_v18 = vadd.f32 %v1285_v9, %v1669_v52 }
  0xea   :  { %v1257_v33 = vpop.f32.mrf.mxu0  ;;  %v622_v3 = vpop.f32.mrf.mxu1 }
  0xeb   :  { %750 = vst [vmem:[%s2130_s5 + $0x8] sm:$0xff] %v498_v32  ;;  %v813_v50 = vadd.f32 %v498_v32, %v495_v10  ;;  %v884_v35 = vmul.f32 %v498_v32, %v498_v32  ;;  %v519_v53 = vadd.f32 %v1257_v33, %v1669_v52  ;;  %783 = vst [vmem:[%s2130_s5 + $0x110] sm:$0xff] %v1717_v18 }
  0xec   :  { %v510_v2 = vpop.f32.mrf.mxu0  ;;  %v1728_v22 = vadd.f32 %v1669_v52, %v622_v3  ;;  %v1286_v23 = vpop.f32.mrf.mxu1 }
  0xed   :  { %v814_v16 = vadd.f32 %v813_v50, %v503_v12  ;;  %v947_v36 = vadd.f32 %v884_v35, %v883_v34  ;;  %755 = vst [vmem:[%s2130_s5 + $0x30] sm:$0xff] %v519_v53  ;;  %v511_v37 = vadd.f32 %v1669_v52, %v510_v2  ;;  %v889_v25 = vmul.f32 %v519_v53, %v519_v53 }
  0xee   :  { %v1258_v38 = vpop.f32.mrf.mxu0  ;;  %781 = vst [vmem:[%s2130_s5 + $0x100] sm:$0xff] %v1728_v22  ;;  %v1739_v12 = vadd.f32 %v1286_v23, %v1669_v52  ;;  %v625_v28 = vpop.f32.mrf.mxu1 }
  0xef   :  { %v948_v40 = vadd.f32 %v947_v36, %v885_v6  ;;  %753 = vst [vmem:[%s2130_s5 + $0x20] sm:$0xff] %v511_v37  ;;  %v815_v41 = vadd.f32 %v814_v16, %v506_v30  ;;  %v522_v42 = vadd.f32 %v1258_v38, %v1669_v52  ;;  %v887_v45 = vmul.f32 %v511_v37, %v511_v37 }
  0xf0   :  { %v513_v43 = vpop.f32.mrf.mxu0  ;;  %784 = vst [vmem:[%s2130_s5 + $0x118] sm:$0xff] %v1739_v12  ;;  %v1750_v33 = vadd.f32 %v1669_v52, %v625_v28 }
  0xf1   :  { %v816_v44 = vadd.f32 %v815_v41, %v511_v37  ;;  %v949_v46 = vadd.f32 %v948_v40, %v886_v39  ;;  %756 = vst [vmem:[%s2130_s5 + $0x38] sm:$0xff] %v522_v42  ;;  %v514_v47 = vadd.f32 %v1669_v52, %v513_v43  ;;  %v890_v63 = vmul.f32 %v522_v42, %v522_v42 }
  0xf2   :  { %v1261_v48 = vpop.f32.mrf.mxu0  ;;  %v1289_v34 = vpop.f32.mrf.mxu1  ;;  %782 = vst [vmem:[%s2130_s5 + $0x108] sm:$0xff] %v1750_v33 }
  0xf3   :  { %v950_v49 = vadd.f32 %v949_v46, %v887_v45  ;;  %754 = vst [vmem:[%s2130_s5 + $0x28] sm:$0xff] %v514_v47  ;;  %v817_v51 = vadd.f32 %v816_v44, %v514_v47  ;;  %v888_v54 = vmul.f32 %v514_v47, %v514_v47  ;;  %v535_v55 = vadd.f32 %v1261_v48, %v1669_v52 }
  0xf4   :  { %v526_v56 = vpop.f32.mrf.mxu0  ;;  %v1761_v16 = vadd.f32 %v1289_v34, %v1669_v52  ;;  %v638_v36 = vpop.f32.mrf.mxu1 }
  0xf5   :  { %v818_v57 = vadd.f32 %v817_v51, %v519_v53  ;;  %v951_v59 = vadd.f32 %v950_v49, %v888_v54  ;;  %759 = vst [vmem:[%s2130_s5 + $0x50] sm:$0xff] %v535_v55  ;;  %v527_v61 = vadd.f32 %v1669_v52, %v526_v56  ;;  %v893_v24 = vmul.f32 %v535_v55, %v535_v55 }
  0xf6   :  { %v1262_v62 = vpop.f32.mrf.mxu0  ;;  %787 = vst [vmem:[%s2130_s5 + $0x130] sm:$0xff] %v1761_v16  ;;  %v1290_v43 = vpop.f32.mrf.mxu1 }
  0xf7   :  { %v952_v0 = vadd.f32 %v951_v59, %v889_v25  ;;  %757 = vst [vmem:[%s2130_s5 + $0x40] sm:$0xff] %v527_v61  ;;  %v819_v1 = vadd.f32 %v818_v57, %v522_v42  ;;  %v538_v4 = vadd.f32 %v1262_v62, %v1669_v52  ;;  %v891_v13 = vmul.f32 %v527_v61, %v527_v61 }
  0xf8   :  { %v529_v8 = vpop.f32.mrf.mxu0  ;;  %v1772_v42 = vadd.f32 %v1669_v52, %v638_v36  ;;  %v1783_v49 = vadd.f32 %v1290_v43, %v1669_v52  ;;  %v641_v51 = vpop.f32.mrf.mxu1 }
  0xf9   :  { %v820_v11 = vadd.f32 %v819_v1, %v527_v61  ;;  %v953_v14 = vadd.f32 %v952_v0, %v890_v63  ;;  %760 = vst [vmem:[%s2130_s5 + $0x58] sm:$0xff] %v538_v4  ;;  %v530_v15 = vadd.f32 %v1669_v52, %v529_v8  ;;  %v894_v10 = vmul.f32 %v538_v4, %v538_v4 }
  0xfa   :  { %v1265_v17 = vpop.f32.mrf.mxu0  ;;  %785 = vst [vmem:[%s2130_s5 + $0x120] sm:$0xff] %v1772_v42  ;;  %788 = vst [vmem:[%s2130_s5 + $0x138] sm:$0xff] %v1783_v49  ;;  %v1794_v59 = vadd.f32 %v1669_v52, %v641_v51 }
  0xfb   :  { %v954_v58 = vadd.f32 %v953_v14, %v891_v13  ;;  %758 = vst [vmem:[%s2130_s5 + $0x48] sm:$0xff] %v530_v15  ;;  %v821_v7 = vadd.f32 %v820_v11, %v530_v15  ;;  %v892_v19 = vmul.f32 %v530_v15, %v530_v15  ;;  %v551_v20 = vadd.f32 %v1265_v17, %v1669_v52  ;;  %v1293_v61 = vpop.f32.mrf.mxu1 }
  0xfc   :  { %v542_v21 = vpop.f32.mrf.mxu0  ;;  %786 = vst [vmem:[%s2130_s5 + $0x128] sm:$0xff] %v1794_v59  ;;  %v1805_v8 = vadd.f32 %v1293_v61, %v1669_v52 }
  0xfd   :  { %v822_v26 = vadd.f32 %v821_v7, %v535_v55  ;;  %v955_v60 = vadd.f32 %v954_v58, %v892_v19  ;;  %763 = vst [vmem:[%s2130_s5 + $0x70] sm:$0xff] %v551_v20  ;;  %v543_v27 = vadd.f32 %v1669_v52, %v542_v21  ;;  %v897_v44 = vmul.f32 %v551_v20, %v551_v20  ;;  %v654_v9 = vpop.f32.mrf.mxu1 }
  0xfe   :  { %v1266_v5 = vpop.f32.mrf.mxu0  ;;  %791 = vst [vmem:[%s2130_s5 + $0x150] sm:$0xff] %v1805_v8  ;;  %v1816_v3 = vadd.f32 %v1669_v52, %v654_v9 }
  0xff   :  { %v956_v29 = vadd.f32 %v955_v60, %v893_v24  ;;  %761 = vst [vmem:[%s2130_s5 + $0x60] sm:$0xff] %v543_v27  ;;  %v823_v30 = vadd.f32 %v822_v26, %v538_v4  ;;  %v554_v31 = vadd.f32 %v1266_v5, %v1669_v52  ;;  %v895_v35 = vmul.f32 %v543_v27, %v543_v27  ;;  %v1294_v58 = vpop.f32.mrf.mxu1 }
 0x100   :  { %v545_v32 = vpop.f32.mrf.mxu0  ;;  %789 = vst [vmem:[%s2130_s5 + $0x140] sm:$0xff] %v1816_v3  ;;  %v1827_v24 = vadd.f32 %v1294_v58, %v1669_v52 }
 0x101   :  { %v824_v50 = vadd.f32 %v823_v30, %v543_v27  ;;  %v957_v53 = vadd.f32 %v956_v29, %v894_v10  ;;  %764 = vst [vmem:[%s2130_s5 + $0x78] sm:$0xff] %v554_v31  ;;  %v546_v2 = vadd.f32 %v1669_v52, %v545_v32  ;;  %v898_v54 = vmul.f32 %v554_v31, %v554_v31  ;;  %v657_v26 = vpop.f32.mrf.mxu1 }
 0x102   :  { %v1269_v6 = vpop.f32.mrf.mxu0  ;;  %792 = vst [vmem:[%s2130_s5 + $0x158] sm:$0xff] %v1827_v24  ;;  %v1838_v29 = vadd.f32 %v1669_v52, %v657_v26 }
 0x103   :  { %v958_v37 = vadd.f32 %v957_v53, %v895_v35  ;;  %762 = vst [vmem:[%s2130_s5 + $0x68] sm:$0xff] %v546_v2  ;;  %v825_v38 = vadd.f32 %v824_v50, %v546_v2  ;;  %v896_v39 = vmul.f32 %v546_v2, %v546_v2  ;;  %v567_v40 = vadd.f32 %v1269_v6, %v1669_v52 }
 0x104   :  { %v558_v41 = vpop.f32.mrf.mxu0  ;;  %790 = vst [vmem:[%s2130_s5 + $0x148] sm:$0xff] %v1838_v29 }
 0x105   :  { %v826_v45 = vadd.f32 %v825_v38, %v551_v20  ;;  %v959_v46 = vadd.f32 %v958_v37, %v896_v39  ;;  %767 = vst [vmem:[%s2130_s5 + $0x90] sm:$0xff] %v567_v40  ;;  %v559_v47 = vadd.f32 %v1669_v52, %v558_v41  ;;  %v901_v7 = vmul.f32 %v567_v40, %v567_v40  ;;  %v1297_v30 = vpop.f32.mrf.mxu1 }
 0x106   :  { %v1270_v48 = vpop.f32.mrf.mxu0  ;;  %v1849_v53 = vadd.f32 %v1297_v30, %v1669_v52 }
 0x107   :  { %v960_v55 = vadd.f32 %v959_v46, %v897_v44  ;;  %765 = vst [vmem:[%s2130_s5 + $0x80] sm:$0xff] %v559_v47  ;;  %v827_v56 = vadd.f32 %v826_v45, %v554_v31  ;;  %v570_v25 = vadd.f32 %v1270_v48, %v1669_v52  ;;  %v899_v63 = vmul.f32 %v559_v47, %v559_v47  ;;  %v670_v2 = vpop.f32.mrf.mxu1 }
 0x108   :  { %v561_v57 = vpop.f32.mrf.mxu0  ;;  %795 = vst [vmem:[%s2130_s5 + $0x170] sm:$0xff] %v1849_v53 }
 0x109   :  { %v828_v62 = vadd.f32 %v827_v56, %v559_v47  ;;  %v961_v0 = vadd.f32 %v960_v55, %v898_v54  ;;  %768 = vst [vmem:[%s2130_s5 + $0x98] sm:$0xff] %v570_v25  ;;  %v562_v1 = vadd.f32 %v1669_v52, %v561_v57  ;;  %v902_v60 = vmul.f32 %v570_v25, %v570_v25  ;;  %v1298_v41 = vpop.f32.mrf.mxu1 }
 0x10a   :  { %v1273_v4 = vpop.f32.mrf.mxu0  ;;  %v1871_v48 = vadd.f32 %v1298_v41, %v1669_v52 }
 0x10b   :  { %v962_v11 = vadd.f32 %v961_v0, %v899_v63  ;;  %766 = vst [vmem:[%s2130_s5 + $0x88] sm:$0xff] %v562_v1  ;;  %v829_v13 = vadd.f32 %v828_v62, %v562_v1  ;;  %v900_v14 = vmul.f32 %v562_v1, %v562_v1  ;;  %v583_v15 = vadd.f32 %v1273_v4, %v1669_v52  ;;  %v673_v51 = vpop.f32.mrf.mxu1 }
 0x10c   :  { %v574_v17 = vpop.f32.mrf.mxu0  ;;  %796 = vst [vmem:[%s2130_s5 + $0x178] sm:$0xff] %v1871_v48  ;;  %v1882_v61 = vadd.f32 %v1669_v52, %v673_v51 }
 0x10d   :  { %v830_v19 = vadd.f32 %v829_v13, %v567_v40  ;;  %v963_v20 = vadd.f32 %v962_v11, %v900_v14  ;;  %771 = vst [vmem:[%s2130_s5 + $0xb0] sm:$0xff] %v583_v15  ;;  %v575_v21 = vadd.f32 %v1669_v52, %v574_v17  ;;  %v1860_v40 = vadd.f32 %v1669_v52, %v670_v2  ;;  %v1301_v62 = vpop.f32.mrf.mxu1 }
 0x10e   :  { %v1274_v23 = vpop.f32.mrf.mxu0  ;;  %v905_v43 = vmul.f32 %v583_v15, %v583_v15  ;;  %794 = vst [vmem:[%s2130_s5 + $0x168] sm:$0xff] %v1882_v61  ;;  %v1893_v11 = vadd.f32 %v1301_v62, %v1669_v52 }
 0x10f   :  { %v964_v27 = vadd.f32 %v963_v20, %v901_v7  ;;  %769 = vst [vmem:[%s2130_s5 + $0xa0] sm:$0xff] %v575_v21  ;;  %v831_v5 = vadd.f32 %v830_v19, %v570_v25  ;;  %v586_v28 = vadd.f32 %v1274_v23, %v1669_v52  ;;  %v903_v32 = vmul.f32 %v575_v21, %v575_v21  ;;  %v686_v13 = vpop.f32.mrf.mxu1 }
 0x110   :  { %v577_v10 = vpop.f32.mrf.mxu0  ;;  %793 = vst [vmem:[%s2130_s5 + $0x160] sm:$0xff] %v1860_v40  ;;  %799 = vst [vmem:[%s2130_s5 + $0x190] sm:$0xff] %v1893_v11  ;;  %v1904_v19 = vadd.f32 %v1669_v52, %v686_v13 }
 0x111   :  { %v832_v31 = vadd.f32 %v831_v5, %v575_v21  ;;  %v965_v34 = vadd.f32 %v964_v27, %v902_v60  ;;  %772 = vst [vmem:[%s2130_s5 + $0xb8] sm:$0xff] %v586_v28  ;;  %v578_v50 = vadd.f32 %v1669_v52, %v577_v10  ;;  %v906_v54 = vmul.f32 %v586_v28, %v586_v28  ;;  %v1302_v20 = vpop.f32.mrf.mxu1 }
 0x112   :  { %v1277_v35 = vpop.f32.mrf.mxu0  ;;  %797 = vst [vmem:[%s2130_s5 + $0x180] sm:$0xff] %v1904_v19  ;;  %v1915_v5 = vadd.f32 %v1302_v20, %v1669_v52  ;;  %v917_v20 = vmul.f32 %v1717_v18, %v1717_v18 }
 0x113   :  { %v966_v6 = vadd.f32 %v965_v34, %v903_v32  ;;  %770 = vst [vmem:[%s2130_s5 + $0xa8] sm:$0xff] %v578_v50  ;;  %v833_v36 = vadd.f32 %v832_v31, %v578_v50  ;;  %v904_v37 = vmul.f32 %v578_v50, %v578_v50  ;;  %v599_v38 = vadd.f32 %v1277_v35, %v1669_v52 }
 0x114   :  { %v590_v39 = vpop.f32.mrf.mxu0  ;;  %800 = vst [vmem:[%s2130_s5 + $0x198] sm:$0xff] %v1915_v5 }
 0x115   :  { %v834_v44 = vadd.f32 %v833_v36, %v583_v15  ;;  %v967_v45 = vadd.f32 %v966_v6, %v904_v37  ;;  %775 = vst [vmem:[%s2130_s5 + $0xd0] sm:$0xff] %v599_v38  ;;  %v591_v46 = vadd.f32 %v1669_v52, %v590_v39  ;;  %v909_v21 = vmul.f32 %v599_v38, %v599_v38 }
 0x116   :  { %v1278_v47 = vpop.f32.mrf.mxu0 }
 0x117   :  { %v968_v55 = vadd.f32 %v967_v45, %v905_v43  ;;  %773 = vst [vmem:[%s2130_s5 + $0xc0] sm:$0xff] %v591_v46  ;;  %v835_v56 = vadd.f32 %v834_v44, %v586_v28  ;;  %v602_v25 = vadd.f32 %v1278_v47, %v1669_v52  ;;  %v907_v0 = vmul.f32 %v591_v46, %v591_v46  ;;  %v689_v28 = vpop.f32.mrf.mxu1 }
 0x118   :  { %v593_v57 = vpop.f32.mrf.mxu0  ;;  %v1926_v50 = vadd.f32 %v1669_v52, %v689_v28 }
 0x119   :  { %v836_v63 = vadd.f32 %v835_v56, %v591_v46  ;;  %v969_v1 = vadd.f32 %v968_v55, %v906_v54  ;;  %776 = vst [vmem:[%s2130_s5 + $0xd8] sm:$0xff] %v602_v25  ;;  %v594_v4 = vadd.f32 %v1669_v52, %v593_v57  ;;  %v910_v10 = vmul.f32 %v602_v25, %v602_v25  ;;  %v1305_v35 = vpop.f32.mrf.mxu1 }
 0x11a   :  { %v1281_v9 = vpop.f32.mrf.mxu0  ;;  %798 = vst [vmem:[%s2130_s5 + $0x188] sm:$0xff] %v1926_v50 }
 0x11b   :  { %v970_v14 = vadd.f32 %v969_v1, %v907_v0  ;;  %774 = vst [vmem:[%s2130_s5 + $0xc8] sm:$0xff] %v594_v4  ;;  %v837_v15 = vadd.f32 %v836_v63, %v594_v4  ;;  %v908_v17 = vmul.f32 %v594_v4, %v594_v4  ;;  %v615_v58 = vadd.f32 %v1281_v9, %v1669_v52  ;;  %v702_v39 = vpop.f32.mrf.mxu1 }
 0x11c   :  { %v606_v7 = vpop.f32.mrf.mxu0  ;;  %v1943_v45 = vadd.f32 %v1669_v52, %v702_v39  ;;  %v915_v1 = vmul.f32 %v1728_v22, %v1728_v22 }
 0x11d   :  { %v838_v23 = vadd.f32 %v837_v15, %v599_v38  ;;  %v971_v26 = vadd.f32 %v970_v14, %v908_v17  ;;  %779 = vst [vmem:[%s2130_s5 + $0xf0] sm:$0xff] %v615_v58  ;;  %v607_v60 = vadd.f32 %v1669_v52, %v606_v7  ;;  %v1937_v38 = vadd.f32 %v1305_v35, %v1669_v52  ;;  %v1306_v46 = vpop.f32.mrf.mxu1 }
 0x11e   :  { %v1282_v27 = vpop.f32.mrf.mxu0  ;;  %v913_v47 = vmul.f32 %v615_v58, %v615_v58  ;;  %801 = vst [vmem:[%s2130_s5 + $0x1a0] sm:$0xff] %v1943_v45  ;;  %v1954_v55 = vadd.f32 %v1306_v46, %v1669_v52  ;;  %v916_v17 = vmul.f32 %v1750_v33, %v1750_v33 }
 0x11f   :  { %v972_v30 = vadd.f32 %v971_v26, %v909_v21  ;;  %777 = vst [vmem:[%s2130_s5 + $0xe0] sm:$0xff] %v607_v60  ;;  %v839_v31 = vadd.f32 %v838_v23, %v602_v25  ;;  %v618_v32 = vadd.f32 %v1282_v27, %v1669_v52  ;;  %v911_v6 = vmul.f32 %v607_v60, %v607_v60  ;;  %v705_v56 = vpop.f32.mrf.mxu1 }
 0x120   :  { %v609_v34 = vpop.f32.mrf.mxu0  ;;  %803 = vst [vmem:[%s2130_s5 + $0x1b0] sm:$0xff] %v1937_v38  ;;  %804 = vst [vmem:[%s2130_s5 + $0x1b8] sm:$0xff] %v1954_v55  ;;  %v1961_v63 = vadd.f32 %v1669_v52, %v705_v56 }
 0x121   :  { %v840_v2 = vadd.f32 %v839_v31, %v607_v60  ;;  %v973_v36 = vadd.f32 %v972_v30, %v910_v10  ;;  %780 = vst [vmem:[%s2130_s5 + $0xf8] sm:$0xff] %v618_v32  ;;  %v610_v37 = vadd.f32 %v1669_v52, %v609_v34  ;;  %v914_v25 = vmul.f32 %v618_v32, %v618_v32  ;;  %v1309_v0 = vpop.f32.mrf.mxu1 }
 0x122   :  { %802 = vst [vmem:[%s2130_s5 + $0x1a8] sm:$0xff] %v1961_v63  ;;  %v1971_v13 = vadd.f32 %v1309_v0, %v1669_v52  ;;  %v918_v60 = vmul.f32 %v1739_v12, %v1739_v12  ;;  %v919_v31 = vmul.f32 %v1772_v42, %v1772_v42 }
 0x123   :  { %v974_v41 = vadd.f32 %v973_v36, %v911_v6  ;;  %778 = vst [vmem:[%s2130_s5 + $0xe8] sm:$0xff] %v610_v37  ;;  %v841_v43 = vadd.f32 %v840_v2, %v610_v37  ;;  %v912_v44 = vmul.f32 %v610_v37, %v610_v37  ;;  %v718_v14 = vpop.f32.mrf.mxu1  ;;  %v920_v6 = vmul.f32 %v1794_v59, %v1794_v59 }
 0x124   :  { %807 = vst [vmem:[%s2130_s5 + $0x1d0] sm:$0xff] %v1971_v13  ;;  %v921_v37 = vmul.f32 %v1761_v16, %v1761_v16 }
 0x125   :  { %v842_v51 = vadd.f32 %v841_v43, %v615_v58  ;;  %v975_v54 = vadd.f32 %v974_v41, %v912_v44  ;;  %v1310_v7 = vpop.f32.mrf.mxu1  ;;  %v922_v44 = vmul.f32 %v1783_v49, %v1783_v49 }
 0x127   :  { %v976_v57 = vadd.f32 %v975_v54, %v913_v47  ;;  %v843_v62 = vadd.f32 %v842_v51, %v618_v32  ;;  %v721_v26 = vpop.f32.mrf.mxu1  ;;  %v923_v54 = vmul.f32 %v1816_v3, %v1816_v3 }
 0x129   :  { %v844_v4 = vadd.f32 %v843_v62, %v1728_v22  ;;  %v977_v9 = vadd.f32 %v976_v57, %v914_v25  ;;  %v1981_v22 = vadd.f32 %v1669_v52, %v718_v14  ;;  %v1313_v10 = vpop.f32.mrf.mxu1  ;;  %v924_v57 = vmul.f32 %v1838_v29, %v1838_v29 }
 0x12a   :  { %v927_v14 = vmul.f32 %v1860_v40, %v1860_v40 }
 0x12b   :  { %v845_v15 = vadd.f32 %v844_v4, %v1750_v33  ;;  %v978_v58 = vadd.f32 %v977_v9, %v915_v1  ;;  %805 = vst [vmem:[%s2130_s5 + $0x1c0] sm:$0xff] %v1981_v22  ;;  %v1991_v33 = vadd.f32 %v1310_v7, %v1669_v52  ;;  %v734_v34 = vpop.f32.mrf.mxu1 }
 0x12d   :  { %v846_v21 = vadd.f32 %v845_v15, %v1717_v18  ;;  %v979_v23 = vadd.f32 %v978_v58, %v916_v17  ;;  %808 = vst [vmem:[%s2130_s5 + $0x1d8] sm:$0xff] %v1991_v33  ;;  %v2001_v18 = vadd.f32 %v1669_v52, %v721_v26  ;;  %v1314_v36 = vpop.f32.mrf.mxu1  ;;  %v928_v58 = vmul.f32 %v1882_v61, %v1882_v61 }
 0x12e   :  { %v931_v26 = vmul.f32 %v1904_v19, %v1904_v19 }
 0x12f   :  { %v980_v27 = vadd.f32 %v979_v23, %v917_v20  ;;  %v847_v28 = vadd.f32 %v846_v21, %v1739_v12  ;;  %806 = vst [vmem:[%s2130_s5 + $0x1c8] sm:$0xff] %v2001_v18  ;;  %v2011_v12 = vadd.f32 %v1313_v10, %v1669_v52  ;;  %v737_v43 = vpop.f32.mrf.mxu1 }
 0x131   :  { %v848_v30 = vadd.f32 %v847_v28, %v1772_v42  ;;  %v981_v32 = vadd.f32 %v980_v27, %v918_v60  ;;  %811 = vst [vmem:[%s2130_s5 + $0x1f0] sm:$0xff] %v2011_v12  ;;  %v2021_v42 = vadd.f32 %v1669_v52, %v734_v34  ;;  %v932_v28 = vmul.f32 %v1926_v50, %v1926_v50 }
 0x132   :  { %v935_v34 = vmul.f32 %v1943_v45, %v1943_v45 }
 0x133   :  { %v982_v35 = vadd.f32 %v981_v32, %v919_v31  ;;  %v849_v2 = vadd.f32 %v848_v30, %v1794_v59  ;;  %809 = vst [vmem:[%s2130_s5 + $0x1e0] sm:$0xff] %v2021_v42  ;;  %v2031_v59 = vadd.f32 %v1314_v36, %v1669_v52 }
 0x135   :  { %v850_v39 = vadd.f32 %v849_v2, %v1761_v16  ;;  %v983_v41 = vadd.f32 %v982_v35, %v920_v6  ;;  %812 = vst [vmem:[%s2130_s5 + $0x1f8] sm:$0xff] %v2031_v59  ;;  %v2041_v16 = vadd.f32 %v1669_v52, %v737_v43  ;;  %v925_v52 = vmul.f32 %v1805_v8, %v1805_v8 }
 0x136   :  { %v936_v6 = vmul.f32 %v1961_v63, %v1961_v63  ;;  %v939_v43 = vmul.f32 %v1981_v22, %v1981_v22 }
 0x137   :  { %v984_v46 = vadd.f32 %v983_v41, %v921_v37  ;;  %v851_v47 = vadd.f32 %v850_v39, %v1783_v49  ;;  %810 = vst [vmem:[%s2130_s5 + $0x1e8] sm:$0xff] %v2041_v16 }
 0x139   :  { %v852_v51 = vadd.f32 %v851_v47, %v1816_v3  ;;  %v985_v56 = vadd.f32 %v984_v46, %v922_v44  ;;  %v926_v3 = vmul.f32 %v1827_v24, %v1827_v24  ;;  %v940_v47 = vmul.f32 %v2001_v18, %v2001_v18 }
 0x13b   :  { %v986_v49 = vadd.f32 %v985_v56, %v923_v54  ;;  %v853_v25 = vadd.f32 %v852_v51, %v1838_v29 }
 0x13d   :  { %v854_v62 = vadd.f32 %v853_v25, %v1805_v8  ;;  %v987_v0 = vadd.f32 %v986_v49, %v924_v57  ;;  %v929_v8 = vmul.f32 %v1849_v53, %v1849_v53  ;;  %v943_v25 = vmul.f32 %v2021_v42, %v2021_v42 }
 0x13f   :  { %v988_v1 = vadd.f32 %v987_v0, %v925_v52  ;;  %v855_v4 = vadd.f32 %v854_v62, %v1827_v24  ;;  %v930_v24 = vmul.f32 %v1871_v48, %v1871_v48  ;;  %v944_v62 = vmul.f32 %v2041_v16, %v2041_v16 }
 0x141   :  { %v856_v9 = vadd.f32 %v855_v4, %v1860_v40  ;;  %v989_v15 = vadd.f32 %v988_v1, %v926_v3 }
 0x143   :  { %v990_v17 = vadd.f32 %v989_v15, %v927_v14  ;;  %v857_v29 = vadd.f32 %v856_v9, %v1882_v61 }
 0x145   :  { %v858_v7 = vadd.f32 %v857_v29, %v1849_v53  ;;  %v991_v20 = vadd.f32 %v990_v17, %v928_v58  ;;  %v933_v53 = vmul.f32 %v1893_v11, %v1893_v11 }
 0x147   :  { %v992_v21 = vadd.f32 %v991_v20, %v929_v8  ;;  %v859_v23 = vadd.f32 %v858_v7, %v1871_v48  ;;  %v934_v48 = vmul.f32 %v1915_v5, %v1915_v5 }
 0x149   :  { %v860_v40 = vadd.f32 %v859_v23, %v1904_v19  ;;  %v993_v60 = vadd.f32 %v992_v21, %v930_v24 }
 0x14b   :  { %v994_v27 = vadd.f32 %v993_v60, %v931_v26  ;;  %v861_v61 = vadd.f32 %v860_v40, %v1926_v50 }
 0x14d   :  { %v862_v10 = vadd.f32 %v861_v61, %v1893_v11  ;;  %v995_v30 = vadd.f32 %v994_v27, %v932_v28  ;;  %v937_v11 = vmul.f32 %v1937_v38, %v1937_v38 }
 0x14f   :  { %v996_v31 = vadd.f32 %v995_v30, %v933_v53  ;;  %v863_v32 = vadd.f32 %v862_v10, %v1915_v5  ;;  %v938_v5 = vmul.f32 %v1954_v55, %v1954_v55 }
 0x151   :  { %v864_v19 = vadd.f32 %v863_v32, %v1943_v45  ;;  %v997_v35 = vadd.f32 %v996_v31, %v934_v48 }
 0x153   :  { %v998_v2 = vadd.f32 %v997_v35, %v935_v34  ;;  %v865_v50 = vadd.f32 %v864_v19, %v1961_v63 }
 0x155   :  { %v866_v36 = vadd.f32 %v865_v50, %v1937_v38  ;;  %v999_v37 = vadd.f32 %v998_v2, %v936_v6  ;;  %v941_v38 = vmul.f32 %v1971_v13, %v1971_v13 }
 0x157   :  { %v1000_v39 = vadd.f32 %v999_v37, %v937_v11  ;;  %v867_v41 = vadd.f32 %v866_v36, %v1954_v55  ;;  %v942_v55 = vmul.f32 %v1991_v33, %v1991_v33 }
 0x159   :  { %v868_v45 = vadd.f32 %v867_v41, %v1981_v22  ;;  %v1001_v44 = vadd.f32 %v1000_v39, %v938_v5 }
 0x15b   :  { %v1002_v46 = vadd.f32 %v1001_v44, %v939_v43  ;;  %v869_v63 = vadd.f32 %v868_v45, %v2001_v18 }
 0x15d   :  { %v870_v51 = vadd.f32 %v869_v63, %v1971_v13  ;;  %v1003_v54 = vadd.f32 %v1002_v46, %v940_v47  ;;  %v945_v13 = vmul.f32 %v2011_v12, %v2011_v12 }
 0x15f   :  { %v1004_v56 = vadd.f32 %v1003_v54, %v941_v38  ;;  %v871_v49 = vadd.f32 %v870_v51, %v1991_v33  ;;  %v946_v33 = vmul.f32 %v2031_v59, %v2031_v59 }
 0x161   :  { %v872_v22 = vadd.f32 %v871_v49, %v2021_v42  ;;  %v1005_v57 = vadd.f32 %v1004_v56, %v942_v55 }
 0x163   :  { %v1006_v52 = vadd.f32 %v1005_v57, %v943_v25  ;;  %v873_v18 = vadd.f32 %v872_v22, %v2041_v16 }
 0x165   :  { %v874_v0 = vadd.f32 %v873_v18, %v2011_v12  ;;  %v1007_v3 = vadd.f32 %v1006_v52, %v944_v62 }
 0x167   :  { %v875_v1 = vadd.f32 %v874_v0, %v2031_v59  ;;  %v1008_v4 = vadd.f32 %v1007_v3, %v945_v13 }
 0x169   :  { %v876_v42 = vrot.slane %v875_v1, 4  ;;  %v1009_v9 = vadd.f32 %v1008_v4, %v946_v33 }
 0x16b   :  { %v877_v14 = vadd.f32 %v876_v42, %v875_v1  ;;  %v1010_v15 = vrot.slane %v1009_v9, 4 }
 0x16d   :  { %v878_v17 = vrot.slane %v877_v14, 2  ;;  %v1011_v29 = vadd.f32 %v1010_v15, %v1009_v9 }
 0x16f   :  { %v879_v58 = vadd.f32 %v878_v17, %v877_v14  ;;  %v1012_v16 = vrot.slane %v1011_v29, 2 }
 0x171   :  { %v880_v8 = vrot.slane %v879_v58, 1  ;;  %v1013_v7 = vadd.f32 %v1012_v16, %v1011_v29 }
 0x173   :  { %v881_v20 = vadd.f32 %v880_v8, %v879_v58  ;;  %v1014_v24 = vrot.slane %v1013_v7, 1 }
 0x175   :  { %882 = vst [vmem:[%s2131_s6] sm:$0x1] %v881_v20  ;;  %v1015_v12 = vadd.f32 %v1014_v24, %v1013_v7 }
 0x177   :  { %1016 = vst [vmem:[%s2131_s6 + $0x1] sm:$0x1] %v1015_v12 }

// kernel: resblock_pallas.3
= control target key start
LH: loop header
LB: loop body
LE: loop exit
PB: predicated region body
PF: predicated region fallthrough
CT: control target
= control target key end

     0   :  { %s3631_s21 = smov 0   ;;  %s3633_s22 = smov 0   ;;  %s4384_s0 = inlined_call_operand.vmem [shape: f32[2,16,16,128], index: 0, kind: input, shape index: {}, may-alias: {0,1,2}]   ;;  %s4385_s1 = inlined_call_operand.vmem [shape: f32[2,16,16,128], index: 1, kind: input, shape index: {}, may-alias: {0,1,2}]   ;;  %s4386_s2 = inlined_call_operand.vmem [shape: f32[2,16,16,128], index: 2, kind: input, shape index: {}, may-alias: {0,1,2}]   ;;  %s4387_s3 = inlined_call_operand.vmem [shape: bf16[9,128,128], index: 3, kind: input, shape index: {}]   ;;  %s4388_s4 = inlined_call_operand.vmem [shape: f32[1,128], index: 4, kind: input, shape index: {}]   ;;  %s4389_s5 = inlined_call_operand.vmem [shape: bf16[2,256,128], index: 5, kind: output, shape index: {0}]   ;;  %s4390_s6 = inlined_call_operand.vmem [shape: f32[4,2,128], index: 6, kind: output, shape index: {1}]  }
   0x1   :  { %s3635_s23 = smov 0   ;;  %s3637_s24 = smov 0  }
   0x2   :  { %s3639_s25 = smov 0  }
   0x3 LB: > { %s26_s26 = sadd.s32 1, %s3585_s23  ;;  %s29_s27 = sadd.s32 1, %s3589_s24  ;;  %s3593_s25 = sphi %s3639_s25, %s17_s25   ;;  %s3589_s24 = sphi %s3637_s24, %s4430_s24   ;;  %s3585_s23 = sphi %s3635_s23, %s4429_s23   ;;  %s3581_s22 = sphi %s3633_s22, %s4428_s22   ;;  %s3577_s21 = sphi %s3631_s21, %s4427_s21  }
   0x4   : > { %p27_p0 = scmp.ge.s32.totalorder %s26_s26, 2  ;;  %p2667_p1 = scmp.ge.s32.totalorder %s3593_s25, 1 }
   0x5   : > { %p305_p2 = scmp.lt.s32.totalorder %s3593_s25, 5 }
   0x6   : > { %s4432_s26 = smov (%p27_p0, %s26_s26), 0  ;;  %s4434_s27 = smov (!%p27_p0, %s29_s27), %s3589_s24 }
   0x7   : > { %p306_p3 = pnand %p2667_p1, %p305_p2  ;;  %p31_p4 = scmp.ge.s32.totalorder %s4434_s27, 2 }
   0x9   : > { %s4436_s27 = smov (%p31_p4, %s4434_s27), 0  ;;  %309 = sbr.rel (%p306_p3) target bundleno = 423 (0x1a7), region = 40 }
   0xe   : > { %v3473_v0 = vld [vmem:[%s4387_s3 + $0x78] sm:$0xff]   ;;  %s3669_s30 = sshll.u32 %s3577_s21, 3  ;;  %p377_p5 = scmp.lt.s32.totalorder %s3581_s22, 1  ;;  %v3475_v2 = vld [vmem:[%s4387_s3 + $0x70] sm:$0xff]   ;;  %v3477_v4 = vld [vmem:[%s4387_s3 + $0x68] sm:$0xff]   ;;  %v3595_v11 = vmov 0.0  }
   0xf   : > { %v3474_v1 = vld [vmem:[%s4387_s3 + $0x38] sm:$0xff]   ;;  %3128 = vmatprep.subr.bf16.mxu0 %v3473_v0  ;;  %p379_p6 = scmp.lt.s32.totalorder %s3669_s30, 15  ;;  %v3476_v3 = vld [vmem:[%s4387_s3 + $0x30] sm:$0xff]   ;;  %v3478_v5 = vld [vmem:[%s4387_s3 + $0x28] sm:$0xff]   ;;  %s2673_s8 = sadd.s32 4294967295, %s3669_s30 }
  0x10   : > { %3160 = vmatprep.subr.bf16.mxu1 %v3474_v1  ;;  %3129 = vmatpush3.bf16.msra.mxu0 %v3473_v0  ;;  %s378_s13 = scalar_select %p377_p5, %s3581_s22, 1  ;;  %v3479_v6 = vld [vmem:[%s4387_s3 + $0x60] sm:$0xff]   ;;  %v3481_v8 = vld [vmem:[%s4387_s3 + $0x58] sm:$0xff]   ;;  %v3483_v10 = vld [vmem:[%s4387_s3 + $0x50] sm:$0xff]   ;;  %442 = vst [vmem:[#allocation2] sm:$0x1] %v3595_v11 }
  0x11   : > { %3161 = vmatpush3.bf16.msra.mxu1 %v3474_v1  ;;  %3130 = vmatprep.subr.bf16.mxu0 %v3475_v2  ;;  %s380_s16 = scalar_select %p379_p6, %s3669_s30, 15  ;;  %v3480_v7 = vld [vmem:[%s4387_s3 + $0x20] sm:$0xff]   ;;  %v3482_v9 = vld [vmem:[%s4387_s3 + $0x18] sm:$0xff]   ;;  %443 = vst [vmem:[#allocation2 + $0x18] sm:$0x1] %v3595_v11  ;;  %v3484_v14 = vld [vmem:[%s4387_s3 + $0x10] sm:$0xff]  }
  0x12   : > { %3162 = vmatprep.subr.bf16.mxu1 %v3476_v3  ;;  %s3690_s20 = sshll.u32 %s378_s13, 5  ;;  %p389_p7 = scmp.gt.s32.totalorder %s2673_s8, 0  ;;  %444 = vst [vmem:[#allocation2 + $0x30] sm:$0x1] %v3595_v11  ;;  %445 = vst [vmem:[#allocation2 + $0x48] sm:$0x1] %v3595_v11 }
  0x13   : > { %s2669_s19 = sshll.u32 %s380_s16, 1  ;;  %p2674_p8 = scmp.lt.s32.totalorder %s2673_s8, 15  ;;  %446 = vst [vmem:[#allocation2 + $0x60] sm:$0x1] %v3595_v11  ;;  %447 = vst [vmem:[#allocation2 + $0x78] sm:$0x1] %v3595_v11 }
  0x14   : > { %3131 = vmatpush3.bf16.msra.mxu0 %v3475_v2  ;;  %s383_s7 = sadd.s32 %s3690_s20, %s2669_s19  ;;  %s4438_s8 = smov (!%p389_p7, %s2673_s8), 0  ;;  %448 = vst [vmem:[#allocation2 + $0x90] sm:$0x1] %v3595_v11  ;;  %449 = vst [vmem:[#allocation2 + $0xa8] sm:$0x1] %v3595_v11  ;;  %v3485_v19 = vld [vmem:[%s4387_s3 + $0x48] sm:$0xff]  }
  0x15   : > { %3163 = vmatpush3.bf16.msra.mxu1 %v3476_v3  ;;  %3132 = vmatprep.subr.bf16.mxu0 %v3477_v4  ;;  %s2671_s11 = sshll.u32 %s383_s7, 3  ;;  %s4440_s8 = smov (!%p2674_p8, %s4438_s8), 15  ;;  %450 = vst [vmem:[#allocation2 + $0xc0] sm:$0x1] %v3595_v11  ;;  %451 = vst [vmem:[#allocation2 + $0xd8] sm:$0x1] %v3595_v11 }
  0x16   : > { %3164 = vmatprep.subr.bf16.mxu1 %v3478_v5  ;;  %s3706_s16 = scalar_lea.vmem %s4384_s0, %s2671_s11  ;;  %s2679_s29 = sshll.u32 %s4440_s8, 1  ;;  %452 = vst [vmem:[#allocation2 + $0x11] sm:$0x1] %v3595_v11  ;;  %453 = vst [vmem:[#allocation2 + $0x29] sm:$0x1] %v3595_v11  ;;  %v3486_v20 = vld [vmem:[%s4387_s3 + $0x8] sm:$0xff]  }
  0x17   : > { %p440_p9 = scmp.eq.s32.totalorder %s3577_s21, 0  ;;  %454 = vst [vmem:[#allocation2 + $0x41] sm:$0x1] %v3595_v11  ;;  %455 = vst [vmem:[#allocation2 + $0x59] sm:$0x1] %v3595_v11  ;;  %s397_s7 = sadd.s32 %s2679_s29, %s3690_s20  ;;  %v3720_v12 = vld [vmem:[%s3706_s16] sm:$0xff] }
  0x18   : > { %3133 = vmatpush3.bf16.msra.mxu0 %v3477_v4  ;;  %456 = vst [vmem:[#allocation2 + $0x71] sm:$0x1] %v3595_v11  ;;  %457 = vst [vmem:[#allocation2 + $0x89] sm:$0x1] %v3595_v11  ;;  %v3723_v13 = vld [vmem:[%s3706_s16 + $0x8] sm:$0xff]  ;;  %s2681_s10 = sshll.u32 %s397_s7, 3 }
  0x19   : > { %3165 = vmatpush3.bf16.msra.mxu1 %v3478_v5  ;;  %3134 = vmatprep.subr.bf16.mxu0 %v3479_v6  ;;  %458 = vst [vmem:[#allocation2 + $0xa1] sm:$0x1] %v3595_v11  ;;  %459 = vst [vmem:[#allocation2 + $0xb9] sm:$0x1] %v3595_v11  ;;  %v501_v15 = vmax.f32 %v3720_v12, 0.0  ;;  %v502_v16 = vmax.f32 %v3723_v13, 0.0  ;;  %s399_s13 = scalar_lea.vmem %s4385_s1, %s2681_s10 }
  0x1a   : > { %3166 = vmatprep.subr.bf16.mxu1 %v3480_v7  ;;  %460 = vst [vmem:[#allocation2 + $0xd1] sm:$0x1] %v3595_v11  ;;  %461 = vst [vmem:[#allocation2 + $0xe9] sm:$0x1] %v3595_v11  ;;  %v462_v17 = vld [vmem:[%s399_s13] sm:$0xff]  ;;  %v463_v18 = vld [vmem:[%s399_s13 + $0x8] sm:$0xff] }
  0x1b   : > { %s466_s14 = scalar_select %p440_p9, 1, 0  ;;  %518 = vst [vmem:[#allocation2 + $0x19] sm:$0xff] %v501_v15  ;;  %519 = vst [vmem:[#allocation2 + $0x21] sm:$0xff] %v502_v16  ;;  %v464_v21 = vmax.f32 %v462_v17, 0.0  ;;  %v465_v22 = vmax.f32 %v463_v18, 0.0  ;;  %v3791_v48 = vpack.c.bf16 %v502_v16, %v501_v15 }
  0x1c   : > { %3135 = vmatpush3.bf16.msra.mxu0 %v3479_v6  ;;  %v487_v24 = vld [vmem:[%s3706_s16 + $0x10] sm:$0xff]  ;;  %v488_v26 = vld [vmem:[%s3706_s16 + $0x18] sm:$0xff]  ;;  %v3748_v28 = vld [vmem:[%s3706_s16 + $0x20] sm:$0xff]  ;;  %s2920_s18 = sadd.s32 8, %s3669_s30  ;;  %p441_p11 = scmp.eq.s32.totalorder %s3577_s21, 1 }
  0x1d   : > { %3167 = vmatpush3.bf16.msra.mxu1 %v3480_v7  ;;  %3136 = vmatprep.subr.bf16.mxu0 %v3481_v8  ;;  %v467_v23 = vstv %s466_s14  ;;  %v503_v27 = vmax.f32 %v487_v24, 0.0  ;;  %v3751_v29 = vld [vmem:[%s3706_s16 + $0x28] sm:$0xff]  ;;  %v504_v32 = vmax.f32 %v488_v26, 0.0  ;;  %v505_v33 = vmax.f32 %v3748_v28, 0.0  ;;  %v3487_v34 = vld [vmem:[%s4387_s3 + $0x40] sm:$0xff]   ;;  %v3489_v38 = vld [vmem:[%s4387_s3 + $0xb8] sm:$0xff]  }
  0x1e   : > { %3168 = vmatprep.subr.bf16.mxu1 %v3482_v9  ;;  %vm3742_vm0 = vcmp.eq.s32.totalorder %v467_v23, 1  ;;  %v506_v35 = vmax.f32 %v3751_v29, 0.0  ;;  %v3488_v36 = vld [vmem:[%s4387_s3] sm:$0xff]   ;;  %v3548_v37 = vpack.c.bf16 %v465_v22, %v464_v21  ;;  %v3490_v40 = vld [vmem:[%s4387_s3 + $0xf8] sm:$0xff]   ;;  %v3778_v42 = vld [vmem:[%s3706_s16 + $0x30] sm:$0xff]  ;;  %p3923_p10 = scmp.lt.s32.totalorder %s2920_s18, 15 }
  0x1f   : > { %v469_v30 = vsel %vm3742_vm0, 0.0, %v464_v21  ;;  %v470_v31 = vsel %vm3742_vm0, 0.0, %v465_v22  ;;  %520 = vst [vmem:[#allocation2 + $0x31] sm:$0xff] %v503_v27  ;;  %521 = vst [vmem:[#allocation2 + $0x39] sm:$0xff] %v504_v32  ;;  %v3781_v43 = vld [vmem:[%s3706_s16 + $0x38] sm:$0xff]  ;;  %v507_v44 = vmax.f32 %v3778_v42, 0.0  ;;  %v3807_v59 = vpack.c.bf16 %v504_v32, %v503_v27 }
  0x20   : > { %3137 = vmatpush3.bf16.msra.mxu0 %v3481_v8  ;;  %471 = vst [vmem:[#allocation2 + $0x1] sm:$0xff] %v469_v30  ;;  %472 = vst [vmem:[#allocation2 + $0x9] sm:$0xff] %v470_v31  ;;  %v508_v45 = vmax.f32 %v3781_v43, 0.0  ;;  %v3786_v46 = vld [vmem:[%s3706_s16 + $0x40] sm:$0xff]  ;;  %v3789_v47 = vld [vmem:[%s3706_s16 + $0x48] sm:$0xff]  ;;  %s4442_s18 = smov (!%p3923_p10, %s2920_s18), 15 }
  0x21   : > { %3169 = vmatpush3.bf16.msra.mxu1 %v3482_v9  ;;  %3138 = vmatprep.subr.bf16.mxu0 %v3483_v10  ;;  %522 = vst [vmem:[#allocation2 + $0x49] sm:$0xff] %v505_v33  ;;  %vm3545_vm1 = vmneg %vm3742_vm0  ;;  %v509_v49 = vmax.f32 %v3786_v46, 0.0  ;;  %v510_v50 = vmax.f32 %v3789_v47, 0.0  ;;  %v3491_v56 = vld [vmem:[%s4387_s3 + $0xb0] sm:$0xff]   ;;  %v3493_v62 = vld [vmem:[%s4387_s3 + $0xa8] sm:$0xff]   ;;  %v3829_v9 = vpack.c.bf16 %v506_v35, %v505_v33  ;;  %s4444_s18 = smov (!%p3923_p10, %s4442_s18), 15 }
  0x22   : > { %3170 = vmatprep.subr.bf16.mxu1 %v3484_v14  ;;  %vm3547_vm2 = vmpackc.low %vm3545_vm1, %vm3545_vm1  ;;  %523 = vst [vmem:[#allocation2 + $0x51] sm:$0xff] %v506_v35  ;;  %v536_v39 = vld [vmem:[#allocation2 + $0x18] sm:$0xff]  ;;  %v537_v41 = vld [vmem:[#allocation2 + $0x20] sm:$0xff]  ;;  %v3839_v15 = vpack.c.bf16 %v508_v45, %v507_v44  ;;  %s2686_s29 = sshll.u32 %s4444_s18, 1  ;;  %s2692_s14 = sshll.u32 %s3581_s22, 1 }
  0x23   : > { %3549 = vmatprep.mubr.msk.bf16.mxu0 %vm3547_vm2, %v3548_v37  ;;  %v3795_v53 = vpack.c.bf16 %v537_v41, %v536_v39  ;;  %524 = vst [vmem:[#allocation2 + $0x61] sm:$0xff] %v507_v44  ;;  %525 = vst [vmem:[#allocation2 + $0x69] sm:$0xff] %v508_v45  ;;  %v3492_v58 = vld [vmem:[%s4387_s3 + $0xf0] sm:$0xff]   ;;  %v496_v1 = vld [vmem:[%s3706_s16 + $0x58] sm:$0xff]  ;;  %v3857_v21 = vpack.c.bf16 %v510_v50, %v509_v49  ;;  %s414_s10 = sadd.s32 %s2686_s29, %s3690_s20  ;;  %s432_s15 = sadd.s32 %s3577_s21, %s2692_s14 }
  0x24   : > { %3139 = vmatpush3.bf16.msra.mxu0 %v3483_v10  ;;  %526 = vst [vmem:[#allocation2 + $0x79] sm:$0xff] %v509_v49  ;;  %527 = vst [vmem:[#allocation2 + $0x81] sm:$0xff] %v510_v50  ;;  %v495_v0 = vld [vmem:[%s3706_s16 + $0x50] sm:$0xff]  ;;  %v497_v3 = vld [vmem:[%s3706_s16 + $0x60] sm:$0xff]  ;;  %v512_v6 = vmax.f32 %v496_v1, 0.0  ;;  %s2688_s12 = sshll.u32 %s414_s10, 3 }
  0x25   : > { %3171 = vmatpush3.bf16.msra.mxu1 %v3484_v14  ;;  %3140 = vmatprep.subr.bf16.mxu0 %v3485_v19  ;;  %v511_v2 = vmax.f32 %v495_v0, 0.0  ;;  %v498_v4 = vld [vmem:[%s3706_s16 + $0x68] sm:$0xff]  ;;  %v513_v7 = vmax.f32 %v497_v3, 0.0  ;;  %v3495_v13 = vld [vmem:[%s4387_s3 + $0xa0] sm:$0xff]   ;;  %v3497_v18 = vld [vmem:[%s4387_s3 + $0x98] sm:$0xff]   ;;  %s416_s19 = scalar_lea.vmem %s4386_s2, %s2688_s12  ;;  %p433_p13 = scmp.lt.s32.totalorder %s432_s15, 3 }
  0x26   : > { %3172 = vmatprep.subr.bf16.mxu1 %v3486_v20  ;;  %v538_v54 = vld [vmem:[#allocation2 + $0x30] sm:$0xff]  ;;  %v539_v57 = vld [vmem:[#allocation2 + $0x38] sm:$0xff]  ;;  %v3494_v5 = vld [vmem:[%s4387_s3 + $0xe8] sm:$0xff]   ;;  %v514_v8 = vmax.f32 %v498_v4, 0.0  ;;  %529 = vst [vmem:[#allocation2 + $0x99] sm:$0xff] %v512_v6 }
  0x27   : > { %v534_v51 = vld [vmem:[#allocation2] sm:$0xff]  ;;  %v535_v52 = vld [vmem:[#allocation2 + $0x8] sm:$0xff]  ;;  %v3810_v60 = vpack.c.bf16 %v539_v57, %v538_v54  ;;  %528 = vst [vmem:[#allocation2 + $0x91] sm:$0xff] %v511_v2  ;;  %530 = vst [vmem:[#allocation2 + $0xa9] sm:$0xff] %v513_v7  ;;  %v3867_v27 = vpack.c.bf16 %v512_v6, %v511_v2  ;;  %s4448_s15 = smov (!%p433_p13, %s432_s15), 3 }
  0x28   : > { %3141 = vmatpush3.bf16.msra.mxu0 %v3485_v19  ;;  %v550_v55 = vpack.c.bf16 %v535_v52, %v534_v51  ;;  %v540_v61 = vld [vmem:[#allocation2 + $0x48] sm:$0xff]  ;;  %531 = vst [vmem:[#allocation2 + $0xb1] sm:$0xff] %v514_v8  ;;  %v3496_v14 = vld [vmem:[%s4387_s3 + $0xe0] sm:$0xff]   ;;  %v3499_v25 = vld [vmem:[%s4387_s3 + $0x90] sm:$0xff]   ;;  %v3881_v33 = vpack.c.bf16 %v514_v8, %v513_v7  ;;  %s2693_s22 = sshll.u32 %s4448_s15, 1 }
  0x29   : > { %3173 = vmatpush3.bf16.msra.mxu1 %v3486_v20  ;;  %3142 = vmatprep.subr.bf16.mxu0 %v3487_v34  ;;  %v541_v63 = vld [vmem:[#allocation2 + $0x50] sm:$0xff]  ;;  %v3498_v20 = vld [vmem:[%s4387_s3 + $0xd8] sm:$0xff]   ;;  %v3501_v29 = vld [vmem:[%s4387_s3 + $0x88] sm:$0xff]  }
  0x2a   : > { %3174 = vmatprep.subr.bf16.mxu1 %v3488_v36  ;;  %3176 = vmatprep.mubr.bf16.mxu1 %v550_v55  ;;  %v3831_v10 = vpack.c.bf16 %v541_v63, %v540_v61  ;;  %v542_v11 = vld [vmem:[#allocation2 + $0x60] sm:$0xff]  ;;  %v543_v12 = vld [vmem:[#allocation2 + $0x68] sm:$0xff]  ;;  %v3500_v26 = vld [vmem:[%s4387_s3 + $0xd0] sm:$0xff]  }
  0x2b   : > { %v3842_v16 = vpack.c.bf16 %v543_v12, %v542_v11  ;;  %v544_v17 = vld [vmem:[#allocation2 + $0x78] sm:$0xff]  ;;  %v545_v19 = vld [vmem:[#allocation2 + $0x80] sm:$0xff]  ;;  %v3502_v32 = vld [vmem:[%s4387_s3 + $0xc8] sm:$0xff]  }
  0x2c   : > { %3143 = vmatpush3.bf16.msra.mxu0 %v3487_v34  ;;  %v3859_v23 = vpack.c.bf16 %v545_v19, %v544_v17  ;;  %v905_v34 = vld [vmem:[#allocation2 + $0x2] sm:$0xff]  ;;  %v906_v35 = vld [vmem:[#allocation2 + $0xa] sm:$0xff]  ;;  %v3505_v42 = vld [vmem:[%s4387_s3 + $0x138] sm:$0xff]  }
  0x2d   : > { %3175 = vmatpush3.bf16.msra.mxu1 %v3488_v36  ;;  %3192 = vmatprep.subr.bf16.mxu0 %v3489_v38  ;;  %v3503_v37 = vld [vmem:[%s4387_s3 + $0x80] sm:$0xff]   ;;  %v921_v39 = vpack.c.bf16 %v906_v35, %v905_v34  ;;  %v3506_v43 = vld [vmem:[%s4387_s3 + $0x178] sm:$0xff]   ;;  %v3900_v46 = vld [vmem:[%s3706_s16 + $0x70] sm:$0xff] }
  0x2e   : > { %3224 = vmatprep.subr.bf16.mxu1 %v3490_v40  ;;  %v546_v22 = vld [vmem:[#allocation2 + $0x90] sm:$0xff]  ;;  %v547_v24 = vld [vmem:[#allocation2 + $0x98] sm:$0xff]  ;;  %v548_v30 = vld [vmem:[#allocation2 + $0xa8] sm:$0xff]  ;;  %v515_v50 = vmax.f32 %v3900_v46, 0.0 }
  0x2f   : > { %3145 = vmatmul.mubr.bf16.vlgmr.msra.gmra.mxu0 %v3791_v48  ;;  %v3870_v28 = vpack.c.bf16 %v547_v24, %v546_v22  ;;  %v549_v31 = vld [vmem:[#allocation2 + $0xb0] sm:$0xff]  ;;  %v908_v41 = vld [vmem:[#allocation2 + $0x22] sm:$0xff]  ;;  %v910_v45 = vld [vmem:[#allocation2 + $0x3a] sm:$0xff] }
  0x30   : > { %3177 = vmatmul.mubr.bf16.vlgmr.msra.gmra.mxu1 %v3795_v53  ;;  %3193 = vmatpush3.bf16.msra.mxu0 %v3489_v38  ;;  %v3883_v36 = vpack.c.bf16 %v549_v31, %v548_v30  ;;  %v3504_v38 = vld [vmem:[%s4387_s3 + $0xc0] sm:$0xff]   ;;  %v909_v44 = vld [vmem:[#allocation2 + $0x32] sm:$0xff]  ;;  %532 = vst [vmem:[#allocation2 + $0xc1] sm:$0xff] %v515_v50  ;;  %v911_v55 = vld [vmem:[#allocation2 + $0x4a] sm:$0xff] }
  0x31   : > { %3225 = vmatpush3.bf16.msra.mxu1 %v3490_v40  ;;  %3194 = vmatprep.subr.bf16.mxu0 %v3491_v56  ;;  %v907_v40 = vld [vmem:[#allocation2 + $0x1a] sm:$0xff]  ;;  %v3507_v52 = vld [vmem:[%s4387_s3 + $0x130] sm:$0xff]   ;;  %v3509_v57 = vld [vmem:[%s4387_s3 + $0x128] sm:$0xff]  }
  0x32   : > { %3226 = vmatprep.subr.bf16.mxu1 %v3492_v58  ;;  %3148 = vmatprep.mubr.bf16.mxu0 %v3807_v59  ;;  %v3903_v47 = vld [vmem:[%s3706_s16 + $0x78] sm:$0xff]  ;;  %v3907_v49 = vpack.c.bf16 %v908_v41, %v907_v40  ;;  %v3508_v54 = vld [vmem:[%s4387_s3 + $0x170] sm:$0xff]   ;;  %v913_v61 = vld [vmem:[#allocation2 + $0x62] sm:$0xff]  ;;  %s3967_s16 = scalar_select %p441_p11, 1, 0 }
  0x33   : > { %3180 = vmatprep.mubr.bf16.mxu1 %v3810_v60  ;;  %v516_v51 = vmax.f32 %v3903_v47, 0.0  ;;  %v914_v63 = vld [vmem:[#allocation2 + $0x6a] sm:$0xff]  ;;  %v3511_v0 = vld [vmem:[%s4387_s3 + $0x120] sm:$0xff]   ;;  %v3514_v6 = vld [vmem:[%s4387_s3 + $0x158] sm:$0xff]  }
  0x34   : > { %3195 = vmatpush3.bf16.msra.mxu0 %v3491_v56  ;;  %v912_v56 = vld [vmem:[#allocation2 + $0x52] sm:$0xff]  ;;  %v3512_v1 = vld [vmem:[%s4387_s3 + $0x160] sm:$0xff]   ;;  %v3947_v2 = vpack.c.bf16 %v914_v63, %v913_v61  ;;  %v919_v17 = vld [vmem:[#allocation2 + $0xaa] sm:$0xff] }
  0x35   : > { %3227 = vmatpush3.bf16.msra.mxu1 %v3492_v58  ;;  %3196 = vmatprep.subr.bf16.mxu0 %v3493_v62  ;;  %533 = vst [vmem:[#allocation2 + $0xc9] sm:$0xff] %v516_v51  ;;  %v3510_v58 = vld [vmem:[%s4387_s3 + $0x168] sm:$0xff]   ;;  %v915_v3 = vld [vmem:[#allocation2 + $0x7a] sm:$0xff]  ;;  %v917_v7 = vld [vmem:[#allocation2 + $0x92] sm:$0xff] }
  0x36   : > { %3228 = vmatprep.subr.bf16.mxu1 %v3494_v5  ;;  %v916_v4 = vld [vmem:[#allocation2 + $0x82] sm:$0xff]  ;;  %v918_v11 = vld [vmem:[#allocation2 + $0x9a] sm:$0xff]  ;;  %v3515_v12 = vld [vmem:[%s4387_s3 + $0x110] sm:$0xff]  }
  0x37   : > { %3149 = vmatmul.mubr.bf16.gmra.mxu0 %v3829_v9  ;;  %v3962_v8 = vpack.c.bf16 %v916_v4, %v915_v3  ;;  %v3517_v19 = vld [vmem:[%s4387_s3 + $0x108] sm:$0xff]   ;;  %v3519_v30 = vld [vmem:[%s4387_s3 + $0x100] sm:$0xff]   ;;  %v3522_v41 = vld [vmem:[%s4387_s3 + $0x1f8] sm:$0xff]  }
  0x38   : > { %3181 = vmatmul.mubr.bf16.gmra.mxu1 %v3831_v10  ;;  %3197 = vmatpush3.bf16.msra.mxu0 %v3493_v62  ;;  %v3939_v62 = vpack.c.bf16 %v912_v56, %v911_v55  ;;  %v3518_v24 = vld [vmem:[%s4387_s3 + $0x148] sm:$0xff]   ;;  %v3520_v31 = vld [vmem:[%s4387_s3 + $0x140] sm:$0xff]   ;;  %v3530_v55 = vld [vmem:[%s4387_s3 + $0x1d8] sm:$0xff]  }
  0x39   : > { %3229 = vmatpush3.bf16.msra.mxu1 %v3494_v5  ;;  %3198 = vmatprep.subr.bf16.mxu0 %v3495_v13  ;;  %v3513_v5 = vld [vmem:[%s4387_s3 + $0x118] sm:$0xff]   ;;  %v4006_v35 = vld [vmem:[%s416_s19 + $0x8] sm:$0xff]  ;;  %v3531_v56 = vld [vmem:[%s4387_s3 + $0x190] sm:$0xff]  }
  0x3a   : > { %3230 = vmatprep.subr.bf16.mxu1 %v3496_v14  ;;  %3152 = vmatprep.mubr.bf16.mxu0 %v3839_v15  ;;  %v3533_v63 = vld [vmem:[%s4387_s3 + $0x188] sm:$0xff]   ;;  %v3535_v4 = vld [vmem:[%s4387_s3 + $0x180] sm:$0xff]   ;;  %v3537_v46 = vld [vmem:[%s4387_s3 + $0x238] sm:$0xff]  }
  0x3b   : > { %3184 = vmatprep.mubr.bf16.mxu1 %v3842_v16  ;;  %v3538_v47 = vld [vmem:[%s4387_s3 + $0x230] sm:$0xff]  }
  0x3c   : > { %3199 = vmatpush3.bf16.msra.mxu0 %v3495_v13  ;;  %v3516_v13 = vld [vmem:[%s4387_s3 + $0x150] sm:$0xff]   ;;  %v1122_v22 = vld [vmem:[#allocation2 + $0xc8] sm:$0xff] }
  0x3d   : > { %3231 = vmatpush3.bf16.msra.mxu1 %v3496_v14  ;;  %3200 = vmatprep.subr.bf16.mxu0 %v3497_v18  ;;  %v3973_v14 = vpack.c.bf16 %v918_v11, %v917_v7  ;;  %v1526_v61 = vld [vmem:[#allocation2 + $0xca] sm:$0xff] }
  0x3e   : > { %3232 = vmatprep.subr.bf16.mxu1 %v3498_v20 }
  0x3f   : > { %3153 = vmatmul.mubr.bf16.gmra.mxu0 %v3857_v21 }
  0x40   : > { %3185 = vmatmul.mubr.bf16.gmra.mxu1 %v3859_v23  ;;  %3201 = vmatpush3.bf16.msra.mxu0 %v3497_v18  ;;  %v920_v18 = vld [vmem:[#allocation2 + $0xb2] sm:$0xff] }
  0x41   : > { %3233 = vmatpush3.bf16.msra.mxu1 %v3498_v20  ;;  %3202 = vmatprep.subr.bf16.mxu0 %v3499_v25  ;;  %v1121_v20 = vld [vmem:[#allocation2 + $0xc0] sm:$0xff] }
  0x42   : > { %3234 = vmatprep.subr.bf16.mxu1 %v3500_v26  ;;  %3156 = vmatprep.mubr.bf16.mxu0 %v3867_v27 }
  0x43   : > { %3188 = vmatprep.mubr.bf16.mxu1 %v3870_v28 }
  0x44   : > { %3203 = vmatpush3.bf16.msra.mxu0 %v3499_v25  ;;  %v3985_v25 = vpack.c.bf16 %v920_v18, %v919_v17 }
  0x45   : > { %3235 = vmatpush3.bf16.msra.mxu1 %v3500_v26  ;;  %3204 = vmatprep.subr.bf16.mxu0 %v3501_v29  ;;  %v478_v26 = vstv %s3967_s16  ;;  %s2689_s16 = sshll.u32 %s3577_s21, 4 }
  0x46   : > { %3236 = vmatprep.subr.bf16.mxu1 %v3502_v32  ;;  %vm4001_vm3 = vcmp.eq.s32.totalorder %v478_v26, 1  ;;  %p4255_p12 = scmp.lt.s32.totalorder %s2689_s16, 31 }
  0x47   : > { %3157 = vmatmul.mubr.bf16.gmra.mxu0 %v3881_v33  ;;  %vm3550_vm4 = vmneg %vm4001_vm3 }
  0x48   : > { %3189 = vmatmul.mubr.bf16.gmra.mxu1 %v3883_v36  ;;  %3205 = vmatpush3.bf16.msra.mxu0 %v3501_v29  ;;  %v3991_v29 = vpack.c.bf16 %v1122_v22, %v1121_v20  ;;  %vm3552_vm5 = vmpackc.low %vm3550_vm4, %vm3550_vm4  ;;  %s4446_s16 = smov (!%p4255_p12, %s2689_s16), 31 }
  0x49   : > { %3237 = vmatpush3.bf16.msra.mxu1 %v3502_v32  ;;  %3206 = vmatprep.subr.bf16.mxu0 %v3503_v37  ;;  %v3999_v32 = vld [vmem:[%s416_s19] sm:$0xff]  ;;  %s427_s9 = sadd.s32 %s3690_s20, %s4446_s16  ;;  %s436_s19 = scalar_lea.vmem %s4390_s6, %s2693_s22 }
  0x4a   : > { %3238 = vmatprep.subr.bf16.mxu1 %v3504_v38  ;;  %3208 = vmatprep.mubr.bf16.mxu0 %v921_v39  ;;  %v3521_v39 = vld [vmem:[%s4387_s3 + $0x1b8] sm:$0xff]   ;;  %s2691_s20 = sshll.u32 %s427_s9, 2 }
  0x4b   : > { %3240 = vmatprep.mubr.bf16.mxu1 %v3795_v53  ;;  %v3921_v53 = vpack.c.bf16 %v910_v45, %v909_v44  ;;  %v3525_v44 = vld [vmem:[%s4387_s3 + $0x1a8] sm:$0xff]   ;;  %s4317_s13 = scalar_lea.vmem %s4389_s5, %s2691_s20 }
  0x4c   : > { %3207 = vmatpush3.bf16.msra.mxu0 %v3503_v37  ;;  %v475_v37 = vmax.f32 %v3999_v32, 0.0  ;;  %v3526_v45 = vld [vmem:[%s4387_s3 + $0x1e8] sm:$0xff]  }
  0x4d   : > { %3239 = vmatpush3.bf16.msra.mxu1 %v3504_v38  ;;  %3256 = vmatprep.subr.bf16.mxu0 %v3505_v42  ;;  %v476_v38 = vmax.f32 %v4006_v35, 0.0 }
  0x4e   : > { %3288 = vmatprep.subr.bf16.mxu1 %v3506_v43  ;;  %v480_v40 = vsel %vm4001_vm3, 0.0, %v475_v37 }
  0x4f   : > { %3209 = vmatmul.mubr.bf16.vlgmr.msra.gmra.mxu0 %v3907_v49  ;;  %483 = vst [vmem:[#allocation2 + $0xd9] sm:$0xff] %v480_v40 }
  0x50   : > { %3241 = vmatmul.mubr.bf16.vlgmr.msra.gmra.mxu1 %v3810_v60  ;;  %3257 = vmatpush3.bf16.msra.mxu0 %v3505_v42  ;;  %v481_v42 = vsel %vm4001_vm3, 0.0, %v476_v38 }
  0x51   : > { %3289 = vmatpush3.bf16.msra.mxu1 %v3506_v43  ;;  %3258 = vmatprep.subr.bf16.mxu0 %v3507_v52  ;;  %484 = vst [vmem:[#allocation2 + $0xe1] sm:$0xff] %v481_v42  ;;  %v3524_v43 = vld [vmem:[%s4387_s3 + $0x1f0] sm:$0xff]  }
  0x52   : > { %3290 = vmatprep.subr.bf16.mxu1 %v3508_v54  ;;  %3212 = vmatprep.mubr.bf16.mxu0 %v3921_v53 }
  0x53   : > { %3244 = vmatprep.mubr.bf16.mxu1 %v3831_v10 }
  0x54   : > { %3259 = vmatpush3.bf16.msra.mxu0 %v3507_v52  ;;  %v3528_v52 = vld [vmem:[%s4387_s3 + $0x1e0] sm:$0xff]  }
  0x55   : > { %3291 = vmatpush3.bf16.msra.mxu1 %v3508_v54  ;;  %3260 = vmatprep.subr.bf16.mxu0 %v3509_v57  ;;  %v3529_v54 = vld [vmem:[%s4387_s3 + $0x198] sm:$0xff]  }
  0x56   : > { %3292 = vmatprep.subr.bf16.mxu1 %v3510_v58 }
  0x57   : > { %3213 = vmatmul.mubr.bf16.gmra.mxu0 %v3939_v62 }
  0x58   : > { %3245 = vmatmul.mubr.bf16.gmra.mxu1 %v3842_v16  ;;  %3261 = vmatpush3.bf16.msra.mxu0 %v3509_v57  ;;  %v3532_v57 = vld [vmem:[%s4387_s3 + $0x1d0] sm:$0xff]  }
  0x59   : > { %3293 = vmatpush3.bf16.msra.mxu1 %v3510_v58  ;;  %3262 = vmatprep.subr.bf16.mxu0 %v3511_v0  ;;  %v1525_v58 = vld [vmem:[#allocation2 + $0xc2] sm:$0xff] }
  0x5a   : > { %3294 = vmatprep.subr.bf16.mxu1 %v3512_v1  ;;  %3216 = vmatprep.mubr.bf16.mxu0 %v3947_v2  ;;  %v4079_v3 = vpack.c.bf16 %v1526_v61, %v1525_v58 }
  0x5b   : > { %3248 = vmatprep.mubr.bf16.mxu1 %v3859_v23 }
  0x5c   : > { %3263 = vmatpush3.bf16.msra.mxu0 %v3511_v0  ;;  %v3534_v0 = vld [vmem:[%s4387_s3 + $0x1c8] sm:$0xff]  }
  0x5d   : > { %3295 = vmatpush3.bf16.msra.mxu1 %v3512_v1  ;;  %3264 = vmatprep.subr.bf16.mxu0 %v3513_v5  ;;  %v1332_v1 = vpack.c.bf16 %v516_v51, %v515_v50 }
  0x5e   : > { %3296 = vmatprep.subr.bf16.mxu1 %v3514_v6 }
  0x5f   : > { %3217 = vmatmul.mubr.bf16.gmra.mxu0 %v3962_v8 }
  0x60   : > { %3249 = vmatmul.mubr.bf16.gmra.mxu1 %v3870_v28  ;;  %3265 = vmatpush3.bf16.msra.mxu0 %v3513_v5  ;;  %v3536_v5 = vld [vmem:[%s4387_s3 + $0x1c0] sm:$0xff]  }
  0x61   : > { %3297 = vmatpush3.bf16.msra.mxu1 %v3514_v6  ;;  %3266 = vmatprep.subr.bf16.mxu0 %v3515_v12 }
  0x62   : > { %3298 = vmatprep.subr.bf16.mxu1 %v3516_v13  ;;  %3220 = vmatprep.mubr.bf16.mxu0 %v3973_v14 }
  0x63   : > { %3252 = vmatprep.mubr.bf16.mxu1 %v3883_v36 }
  0x64   : > { %3267 = vmatpush3.bf16.msra.mxu0 %v3515_v12 }
  0x65   : > { %3299 = vmatpush3.bf16.msra.mxu1 %v3516_v13  ;;  %3268 = vmatprep.subr.bf16.mxu0 %v3517_v19 }
  0x66   : > { %3300 = vmatprep.subr.bf16.mxu1 %v3518_v24 }
  0x67   : > { %3221 = vmatmul.mubr.bf16.gmra.mxu0 %v3985_v25 }
  0x68   : > { %3253 = vmatmul.mubr.bf16.gmra.mxu1 %v3991_v29  ;;  %3269 = vmatpush3.bf16.msra.mxu0 %v3517_v19 }
  0x69   : > { %3301 = vmatpush3.bf16.msra.mxu1 %v3518_v24  ;;  %3270 = vmatprep.subr.bf16.mxu0 %v3519_v30 }
  0x6a   : > { %3302 = vmatprep.subr.bf16.mxu1 %v3520_v31  ;;  %3272 = vmatprep.mubr.bf16.mxu0 %v3791_v48  ;;  %v3523_v48 = vld [vmem:[%s4387_s3 + $0x1b0] sm:$0xff]  }
  0x6b   : > { %3304 = vmatprep.mubr.bf16.mxu1 %v3907_v49  ;;  %v3527_v49 = vld [vmem:[%s4387_s3 + $0x1a0] sm:$0xff]  }
  0x6c   : > { %3271 = vmatpush3.bf16.msra.mxu0 %v3519_v30 }
  0x6d   : > { %3303 = vmatpush3.bf16.msra.mxu1 %v3520_v31  ;;  %3320 = vmatprep.subr.bf16.mxu0 %v3521_v39 }
  0x6e   : > { %3352 = vmatprep.subr.bf16.mxu1 %v3522_v41 }
  0x6f   : > { %3273 = vmatmul.mubr.bf16.vlgmr.msra.gmra.mxu0 %v3807_v59 }
  0x70   : > { %3305 = vmatmul.mubr.bf16.vlgmr.msra.gmra.mxu1 %v3921_v53  ;;  %3321 = vmatpush3.bf16.msra.mxu0 %v3521_v39 }
  0x71   : > { %3353 = vmatpush3.bf16.msra.mxu1 %v3522_v41  ;;  %3322 = vmatprep.subr.bf16.mxu0 %v3523_v48 }
  0x72   : > { %3354 = vmatprep.subr.bf16.mxu1 %v3524_v43  ;;  %3276 = vmatprep.mubr.bf16.mxu0 %v3829_v9 }
  0x73   : > { %3308 = vmatprep.mubr.bf16.mxu1 %v3939_v62 }
  0x74   : > { %3323 = vmatpush3.bf16.msra.mxu0 %v3523_v48 }
  0x75   : > { %3355 = vmatpush3.bf16.msra.mxu1 %v3524_v43  ;;  %3324 = vmatprep.subr.bf16.mxu0 %v3525_v44 }
  0x76   : > { %3356 = vmatprep.subr.bf16.mxu1 %v3526_v45 }
  0x77   : > { %3277 = vmatmul.mubr.bf16.gmra.mxu0 %v3839_v15 }
  0x78   : > { %3309 = vmatmul.mubr.bf16.gmra.mxu1 %v3947_v2  ;;  %3325 = vmatpush3.bf16.msra.mxu0 %v3525_v44 }
  0x79   : > { %3357 = vmatpush3.bf16.msra.mxu1 %v3526_v45  ;;  %3326 = vmatprep.subr.bf16.mxu0 %v3527_v49 }
  0x7a   : > { %3358 = vmatprep.subr.bf16.mxu1 %v3528_v52  ;;  %3280 = vmatprep.mubr.bf16.mxu0 %v3857_v21 }
  0x7b   : > { %3312 = vmatprep.mubr.bf16.mxu1 %v3962_v8 }
  0x7c   : > { %3327 = vmatpush3.bf16.msra.mxu0 %v3527_v49 }
  0x7d   : > { %3359 = vmatpush3.bf16.msra.mxu1 %v3528_v52  ;;  %3328 = vmatprep.subr.bf16.mxu0 %v3529_v54 }
  0x7e   : > { %3360 = vmatprep.subr.bf16.mxu1 %v3530_v55 }
  0x7f   : > { %3281 = vmatmul.mubr.bf16.gmra.mxu0 %v3867_v27 }
  0x80   : > { %3313 = vmatmul.mubr.bf16.gmra.mxu1 %v3973_v14  ;;  %3329 = vmatpush3.bf16.msra.mxu0 %v3529_v54 }
  0x81   : > { %3361 = vmatpush3.bf16.msra.mxu1 %v3530_v55  ;;  %3330 = vmatprep.subr.bf16.mxu0 %v3531_v56 }
  0x82   : > { %3362 = vmatprep.subr.bf16.mxu1 %v3532_v57  ;;  %3284 = vmatprep.mubr.bf16.mxu0 %v3881_v33 }
  0x83   : > { %3316 = vmatprep.mubr.bf16.mxu1 %v3985_v25 }
  0x84   : > { %3331 = vmatpush3.bf16.msra.mxu0 %v3531_v56 }
  0x85   : > { %3363 = vmatpush3.bf16.msra.mxu1 %v3532_v57  ;;  %3332 = vmatprep.subr.bf16.mxu0 %v3533_v63 }
  0x86   : > { %3364 = vmatprep.subr.bf16.mxu1 %v3534_v0 }
  0x87   : > { %3285 = vmatmul.mubr.bf16.gmra.mxu0 %v1332_v1 }
  0x88   : > { %3317 = vmatmul.mubr.bf16.gmra.mxu1 %v4079_v3  ;;  %3333 = vmatpush3.bf16.msra.mxu0 %v3533_v63 }
  0x89   : > { %3365 = vmatpush3.bf16.msra.mxu1 %v3534_v0  ;;  %3334 = vmatprep.subr.bf16.mxu0 %v3535_v4 }
  0x8a   : > { %3366 = vmatprep.subr.bf16.mxu1 %v3536_v5  ;;  %3336 = vmatprep.mubr.bf16.mxu0 %v3810_v60  ;;  %v3539_v60 = vld [vmem:[%s4387_s3 + $0x228] sm:$0xff]  }
  0x8b   : > { %3368 = vmatprep.mubr.bf16.mxu1 %v3807_v59  ;;  %v3540_v59 = vld [vmem:[%s4387_s3 + $0x220] sm:$0xff]  }
  0x8c   : > { %3335 = vmatpush3.bf16.msra.mxu0 %v3535_v4 }
  0x8d   : > { %3367 = vmatpush3.bf16.msra.mxu1 %v3536_v5  ;;  %3384 = vmatprep.subr.bf16.mxu0 %v3537_v46 }
  0x8e   : > { %3416 = vmatprep.subr.bf16.mxu1 %v3537_v46 }
  0x8f   : > { %3337 = vmatmul.mubr.bf16.vlgmr.msra.gmra.mxu0 %v3831_v10  ;;  %v3542_v10 = vld [vmem:[%s4387_s3 + $0x210] sm:$0xff]  }
  0x90   : > { %3369 = vmatmul.mubr.bf16.vlgmr.msra.gmra.mxu1 %v3829_v9  ;;  %3385 = vmatpush3.bf16.msra.mxu0 %v3537_v46  ;;  %v3541_v9 = vld [vmem:[%s4387_s3 + $0x218] sm:$0xff]  }
  0x91   : > { %3424 = vmatpush3.bf16.msra.mxu1 %v3537_v46  ;;  %3386 = vmatprep.subr.bf16.mxu0 %v3538_v47 }
  0x92   : > { %3417 = vmatprep.subr.bf16.mxu1 %v3538_v47  ;;  %3340 = vmatprep.mubr.bf16.mxu0 %v3842_v16  ;;  %v1729_v16 = vld [vmem:[#allocation2 + $0xe0] sm:$0xff] }
  0x93   : > { %3372 = vmatprep.mubr.bf16.mxu1 %v3839_v15  ;;  %v1728_v15 = vld [vmem:[#allocation2 + $0xd8] sm:$0xff] }
  0x94   : > { %3387 = vmatpush3.bf16.msra.mxu0 %v3538_v47 }
  0x95   : > { %3425 = vmatpush3.bf16.msra.mxu1 %v3538_v47  ;;  %3388 = vmatprep.subr.bf16.mxu0 %v3539_v60 }
  0x96   : > { %3418 = vmatprep.subr.bf16.mxu1 %v3539_v60 }
  0x97   : > { %3341 = vmatmul.mubr.bf16.gmra.mxu0 %v3859_v23  ;;  %v1737_v23 = vpack.c.bf16 %v1729_v16, %v1728_v15 }
  0x98   : > { %3373 = vmatmul.mubr.bf16.gmra.mxu1 %v3857_v21  ;;  %3389 = vmatpush3.bf16.msra.mxu0 %v3539_v60  ;;  %v3543_v21 = vld [vmem:[%s4387_s3 + $0x208] sm:$0xff]  }
  0x99   : > { %3426 = vmatpush3.bf16.msra.mxu1 %v3539_v60  ;;  %3390 = vmatprep.subr.bf16.mxu0 %v3540_v59 }
  0x9a   : > { %3419 = vmatprep.subr.bf16.mxu1 %v3540_v59  ;;  %3344 = vmatprep.mubr.bf16.mxu0 %v3870_v28  ;;  %v3553_v28 = vpack.c.bf16 %v476_v38, %v475_v37 }
  0x9b   : > { %3376 = vmatprep.mubr.bf16.mxu1 %v3867_v27  ;;  %v3544_v27 = vld [vmem:[%s4387_s3 + $0x200] sm:$0xff]  }
  0x9c   : > { %3391 = vmatpush3.bf16.msra.mxu0 %v3540_v59 }
  0x9d   : > { %3427 = vmatpush3.bf16.msra.mxu1 %v3540_v59  ;;  %3392 = vmatprep.subr.bf16.mxu0 %v3541_v9 }
  0x9e   : > { %3420 = vmatprep.subr.bf16.mxu1 %v3541_v9 }
  0x9f   : > { %3345 = vmatmul.mubr.bf16.gmra.mxu0 %v3883_v36  ;;  %v2133_v36 = vld [vmem:[#allocation2 + $0xe2] sm:$0xff] }
  0xa0   : > { %3377 = vmatmul.mubr.bf16.gmra.mxu1 %v3881_v33  ;;  %3393 = vmatpush3.bf16.msra.mxu0 %v3541_v9  ;;  %v2132_v33 = vld [vmem:[#allocation2 + $0xda] sm:$0xff] }
  0xa1   : > { %3428 = vmatpush3.bf16.msra.mxu1 %v3541_v9  ;;  %3394 = vmatprep.subr.bf16.mxu0 %v3542_v10  ;;  %v2141_v50 = vpack.c.bf16 %v2133_v36, %v2132_v33 }
  0xa2   : > { %3421 = vmatprep.subr.bf16.mxu1 %v3542_v10  ;;  %3348 = vmatprep.mubr.bf16.mxu0 %v3991_v29 }
  0xa3   : > { %3380 = vmatprep.mubr.bf16.mxu1 %v1332_v1 }
  0xa4   : > { %3395 = vmatpush3.bf16.msra.mxu0 %v3542_v10 }
  0xa5   : > { %3429 = vmatpush3.bf16.msra.mxu1 %v3542_v10  ;;  %3396 = vmatprep.subr.bf16.mxu0 %v3543_v21 }
  0xa6   : > { %3422 = vmatprep.subr.bf16.mxu1 %v3543_v21 }
  0xa7   : > { %3349 = vmatmul.mubr.bf16.gmra.mxu0 %v1737_v23 }
  0xa8   : > { %3554 = vmatmul.mubr.msk.bf16.gmra.mxu1 %vm3552_vm5, %v3553_v28  ;;  %3397 = vmatpush3.bf16.msra.mxu0 %v3543_v21 }
  0xa9   : > { %3430 = vmatpush3.bf16.msra.mxu1 %v3543_v21  ;;  %3398 = vmatprep.subr.bf16.mxu0 %v3544_v27 }
  0xaa   : > { %3423 = vmatprep.subr.bf16.mxu1 %v3544_v27  ;;  %3400 = vmatprep.mubr.bf16.mxu0 %v3921_v53 }
  0xab   : > { %3408 = vmatprep.mubr.bf16.mxu1 %v3973_v14 }
  0xac   : > { %3399 = vmatpush3.bf16.msra.mxu0 %v3544_v27 }
  0xad   : > { %3431 = vmatpush3.bf16.msra.mxu1 %v3544_v27 }
  0xaf   : > { %3401 = vmatmul.mubr.bf16.vlgmr.msra.gmra.mxu0 %v3939_v62 }
  0xb0   : > { %3409 = vmatmul.mubr.bf16.vlgmr.msra.gmra.mxu1 %v3985_v25  ;;  %3404 = vmatprep.mubr.bf16.mxu0 %v3947_v2 }
  0xb1   : > { %3412 = vmatprep.mubr.bf16.mxu1 %v4079_v3 }
  0xb7   : > { %3405 = vmatmul.mubr.bf16.gmra.mxu0 %v3962_v8 }
  0xb8   : > { %3413 = vmatmul.mubr.bf16.gmra.mxu1 %v2141_v50 }
  0xef   : > { %v3146_v51 = vpop.f32.mrf.mxu0 }
  0xf0   : > { %v3178_v53 = vpop.f32.mrf.mxu1 }
  0xf1   : > { %v851_v6 = vadd.f32 %v3178_v53, %v3146_v51  ;;  %v697_v7 = vpop.f32.mrf.mxu0 }
  0xf2   : > { %v842_v11 = vpop.f32.mrf.mxu1 }
  0xf3   : > { %v843_v12 = vadd.f32 %v842_v11, %v697_v7  ;;  %v3147_v13 = vpop.f32.mrf.mxu0 }
  0xf4   : > { %v3179_v62 = vpop.f32.mrf.mxu1 }
  0xf5   : > { %v854_v14 = vadd.f32 %v3179_v62, %v3147_v13  ;;  %v700_v17 = vpop.f32.mrf.mxu0 }
  0xf6   : > { %v845_v18 = vpop.f32.mrf.mxu1 }
  0xf7   : > { %v846_v2 = vadd.f32 %v845_v18, %v700_v17  ;;  %v3150_v19 = vpop.f32.mrf.mxu0 }
  0xf8   : > { %v3182_v20 = vpop.f32.mrf.mxu1 }
  0xf9   : > { %v867_v22 = vadd.f32 %v3182_v20, %v3150_v19  ;;  %v713_v24 = vpop.f32.mrf.mxu0 }
  0xfa   : > { %v858_v25 = vpop.f32.mrf.mxu1 }
  0xfb   : > { %v859_v26 = vadd.f32 %v858_v25, %v713_v24  ;;  %v3151_v8 = vpop.f32.mrf.mxu0 }
  0xfc   : > { %v3183_v29 = vpop.f32.mrf.mxu1 }
  0xfd   : > { %v870_v30 = vadd.f32 %v3183_v29, %v3151_v8  ;;  %v716_v31 = vpop.f32.mrf.mxu0 }
  0xfe   : > { %v861_v32 = vpop.f32.mrf.mxu1 }
  0xff   : > { %v862_v34 = vadd.f32 %v861_v32, %v716_v31  ;;  %v3154_v35 = vpop.f32.mrf.mxu0 }
 0x100   : > { %v3186_v37 = vpop.f32.mrf.mxu1 }
 0x101   : > { %v883_v38 = vadd.f32 %v3186_v37, %v3154_v35  ;;  %v729_v39 = vpop.f32.mrf.mxu0 }
 0x102   : > { %v874_v40 = vpop.f32.mrf.mxu1 }
 0x103   : > { %v875_v41 = vadd.f32 %v874_v40, %v729_v39  ;;  %v3155_v42 = vpop.f32.mrf.mxu0 }
 0x104   : > { %v3187_v48 = vpop.f32.mrf.mxu1 }
 0x105   : > { %v886_v43 = vadd.f32 %v3187_v48, %v3155_v42  ;;  %v732_v44 = vpop.f32.mrf.mxu0 }
 0x106   : > { %v877_v45 = vpop.f32.mrf.mxu1 }
 0x107   : > { %v878_v49 = vadd.f32 %v877_v45, %v732_v44  ;;  %v3158_v52 = vpop.f32.mrf.mxu0 }
 0x108   : > { %v3190_v54 = vpop.f32.mrf.mxu1 }
 0x109   : > { %v899_v55 = vadd.f32 %v3190_v54, %v3158_v52  ;;  %v745_v56 = vpop.f32.mrf.mxu0 }
 0x10a   : > { %v890_v57 = vpop.f32.mrf.mxu1 }
 0x10b   : > { %v891_v58 = vadd.f32 %v890_v57, %v745_v56  ;;  %v3159_v61 = vpop.f32.mrf.mxu0 }
 0x10c   : > { %v3191_v63 = vpop.f32.mrf.mxu1 }
 0x10d   : > { %v902_v0 = vadd.f32 %v3191_v63, %v3159_v61  ;;  %v748_v1 = vpop.f32.mrf.mxu0 }
 0x10e   : > { %v893_v3 = vpop.f32.mrf.mxu1 }
 0x10f   : > { %v894_v4 = vadd.f32 %v893_v3, %v748_v1  ;;  %v3210_v5 = vpop.f32.mrf.mxu0 }
 0x110   : > { %v1093_v46 = vadd.f32 %v3210_v5, %v851_v6  ;;  %v3242_v47 = vpop.f32.mrf.mxu1 }
 0x111   : > { %v1028_v60 = vpop.f32.mrf.mxu0 }
 0x112   : > { %v4138_v59 = vadd.f32 %v3242_v47, %v1093_v46  ;;  %v1091_v9 = vadd.f32 %v1028_v60, %v843_v12  ;;  %v1230_v10 = vpop.f32.mrf.mxu1 }
 0x113   : > { %v3211_v15 = vpop.f32.mrf.mxu0 }
 0x114   : > { %v4140_v16 = vadd.f32 %v1230_v10, %v1091_v9  ;;  %v1094_v21 = vadd.f32 %v3211_v15, %v854_v14  ;;  %v3243_v23 = vpop.f32.mrf.mxu1 }
 0x115   : > { %v1031_v27 = vpop.f32.mrf.mxu0 }
 0x116   : > { %v4142_v28 = vadd.f32 %v3243_v23, %v1094_v21  ;;  %v1092_v33 = vadd.f32 %v1031_v27, %v846_v2  ;;  %v1233_v36 = vpop.f32.mrf.mxu1 }
 0x117   : > { %v3214_v50 = vpop.f32.mrf.mxu0 }
 0x118   : > { %v4144_v51 = vadd.f32 %v1233_v36, %v1092_v33  ;;  %v1097_v53 = vadd.f32 %v3214_v50, %v867_v22  ;;  %v3246_v6 = vpop.f32.mrf.mxu1 }
 0x119   : > { %v1044_v7 = vpop.f32.mrf.mxu0 }
 0x11a   : > { %v4146_v11 = vadd.f32 %v3246_v6, %v1097_v53  ;;  %v1095_v12 = vadd.f32 %v1044_v7, %v859_v26  ;;  %v1246_v13 = vpop.f32.mrf.mxu1 }
 0x11b   : > { %v3215_v62 = vpop.f32.mrf.mxu0 }
 0x11c   : > { %v4148_v17 = vadd.f32 %v1246_v13, %v1095_v12  ;;  %v1098_v14 = vadd.f32 %v3215_v62, %v870_v30  ;;  %v3247_v18 = vpop.f32.mrf.mxu1 }
 0x11d   : > { %v1047_v19 = vpop.f32.mrf.mxu0 }
 0x11e   : > { %v4150_v20 = vadd.f32 %v3247_v18, %v1098_v14  ;;  %v1096_v2 = vadd.f32 %v1047_v19, %v862_v34  ;;  %v1249_v24 = vpop.f32.mrf.mxu1 }
 0x11f   : > { %v3218_v25 = vpop.f32.mrf.mxu0 }
 0x120   : > { %v4152_v8 = vadd.f32 %v1249_v24, %v1096_v2  ;;  %v1101_v22 = vadd.f32 %v3218_v25, %v883_v38  ;;  %v3250_v29 = vpop.f32.mrf.mxu1 }
 0x121   : > { %v1060_v31 = vpop.f32.mrf.mxu0 }
 0x122   : > { %v4154_v32 = vadd.f32 %v3250_v29, %v1101_v22  ;;  %v1099_v26 = vadd.f32 %v1060_v31, %v875_v41  ;;  %v1262_v35 = vpop.f32.mrf.mxu1 }
 0x123   : > { %v3219_v37 = vpop.f32.mrf.mxu0 }
 0x124   : > { %v4156_v39 = vadd.f32 %v1262_v35, %v1099_v26  ;;  %v1102_v30 = vadd.f32 %v3219_v37, %v886_v43  ;;  %v3251_v40 = vpop.f32.mrf.mxu1 }
 0x125   : > { %v1063_v42 = vpop.f32.mrf.mxu0 }
 0x126   : > { %v4158_v48 = vadd.f32 %v3251_v40, %v1102_v30  ;;  %v1100_v34 = vadd.f32 %v1063_v42, %v878_v49  ;;  %v1265_v44 = vpop.f32.mrf.mxu1 }
 0x127   : > { %v3222_v45 = vpop.f32.mrf.mxu0 }
 0x128   : > { %v4160_v52 = vadd.f32 %v1265_v44, %v1100_v34  ;;  %v1105_v38 = vadd.f32 %v3222_v45, %v899_v55  ;;  %v3254_v54 = vpop.f32.mrf.mxu1 }
 0x129   : > { %v1076_v56 = vpop.f32.mrf.mxu0 }
 0x12a   : > { %v4162_v57 = vadd.f32 %v3254_v54, %v1105_v38  ;;  %v1103_v41 = vadd.f32 %v1076_v56, %v891_v58  ;;  %v1278_v61 = vpop.f32.mrf.mxu1 }
 0x12b   : > { %v3223_v63 = vpop.f32.mrf.mxu0 }
 0x12c   : > { %v4164_v1 = vadd.f32 %v1278_v61, %v1103_v41  ;;  %v1106_v43 = vadd.f32 %v3223_v63, %v902_v0  ;;  %v3255_v3 = vpop.f32.mrf.mxu1 }
 0x12d   : > { %v1079_v5 = vpop.f32.mrf.mxu0 }
 0x12e   : > { %v4166_v46 = vadd.f32 %v3255_v3, %v1106_v43  ;;  %v1104_v49 = vadd.f32 %v1079_v5, %v894_v4  ;;  %v1281_v47 = vpop.f32.mrf.mxu1 }
 0x12f   : > { %v3274_v60 = vpop.f32.mrf.mxu0 }
 0x130   : > { %v4168_v9 = vadd.f32 %v1281_v47, %v1104_v49  ;;  %v4170_v55 = vpop.f32.mrf.mxu1 }
 0x131   : > { %v1432_v10 = vpop.f32.mrf.mxu0 }
 0x132   : > { %v4172_v15 = vpop.f32.mrf.mxu1 }
 0x133   : > { %v3275_v58 = vpop.f32.mrf.mxu0 }
 0x134   : > { %v4174_v21 = vpop.f32.mrf.mxu1 }
 0x135   : > { %v1435_v23 = vpop.f32.mrf.mxu0 }
 0x136   : > { %v4176_v27 = vpop.f32.mrf.mxu1 }
 0x137   : > { %v3278_v0 = vpop.f32.mrf.mxu0 }
 0x138   : > { %v4178_v33 = vpop.f32.mrf.mxu1 }
 0x139   : > { %v1448_v36 = vpop.f32.mrf.mxu0 }
 0x13a   : > { %v4180_v4 = vpop.f32.mrf.mxu1 }
 0x13b   : > { %v3279_v50 = vpop.f32.mrf.mxu0 }
 0x13c   : > { %v4182_v53 = vpop.f32.mrf.mxu1 }
 0x13d   : > { %v1451_v6 = vpop.f32.mrf.mxu0 }
 0x13e   : > { %v4184_v7 = vpop.f32.mrf.mxu1 }
 0x13f   : > { %v3282_v12 = vpop.f32.mrf.mxu0 }
 0x140   : > { %v4186_v13 = vpop.f32.mrf.mxu1 }
 0x141   : > { %v1464_v62 = vpop.f32.mrf.mxu0 }
 0x142   : > { %v4188_v14 = vpop.f32.mrf.mxu1 }
 0x143   : > { %v3283_v18 = vpop.f32.mrf.mxu0 }
 0x144   : > { %v4190_v19 = vpop.f32.mrf.mxu1 }
 0x145   : > { %v1467_v2 = vpop.f32.mrf.mxu0 }
 0x146   : > { %v4192_v24 = vpop.f32.mrf.mxu1 }
 0x147   : > { %v3286_v25 = vpop.f32.mrf.mxu0 }
 0x148   : > { %v4194_v22 = vpop.f32.mrf.mxu1 }
 0x149   : > { %v1480_v29 = vpop.f32.mrf.mxu0 }
 0x14a   : > { %v4196_v31 = vpop.f32.mrf.mxu1 }
 0x14b   : > { %4396 = vst [vmem:[#allocation3_spill] sm:$0xff] %v4196_v31  ;;  %v3287_v26 = vpop.f32.mrf.mxu0 }
 0x14c   : > { %v4198_v35 = vpop.f32.mrf.mxu1 }
 0x14d   : > { %4397 = vst [vmem:[#allocation4_spill] sm:$0xff] %v4198_v35  ;;  %v1483_v37 = vpop.f32.mrf.mxu0  ;;  %v1499_v35 = vadd.f32 %v1448_v36, %v4148_v17  ;;  %v1506_v17 = vadd.f32 %v3283_v18, %v4158_v48 }
 0x14e   : > { %v4200_v30 = vpop.f32.mrf.mxu1 }
 0x14f   : > { %4398 = vst [vmem:[#allocation5_spill] sm:$0xff] %v4200_v30  ;;  %v3338_v40 = vpop.f32.mrf.mxu0 }
 0x150   : > { %v4202_v42 = vpop.f32.mrf.mxu1 }
 0x151   : > { %4399 = vst [vmem:[#allocation6_spill] sm:$0xff] %v4202_v42  ;;  %v1837_v34 = vpop.f32.mrf.mxu0 }
 0x152   : > { %v4204_v44 = vpop.f32.mrf.mxu1 }
 0x153   : > { %4400 = vst [vmem:[#allocation7_spill] sm:$0xff] %v4204_v44  ;;  %v3339_v45 = vpop.f32.mrf.mxu0 }
 0x154   : > { %v4206_v38 = vpop.f32.mrf.mxu1 }
 0x155   : > { %4401 = vst [vmem:[#allocation8_spill] sm:$0xff] %v4206_v38  ;;  %v1840_v54 = vpop.f32.mrf.mxu0 }
 0x156   : > { %v4208_v56 = vpop.f32.mrf.mxu1 }
 0x157   : > { %4402 = vst [vmem:[#allocation9_spill] sm:$0xff] %v4208_v56  ;;  %v3342_v41 = vpop.f32.mrf.mxu0 }
 0x158   : > { %v4210_v61 = vpop.f32.mrf.mxu1 }
 0x159   : > { %4403 = vst [vmem:[#allocation10_spill] sm:$0xff] %v4210_v61  ;;  %v4212_v63 = vpop.f32.mrf.mxu0 }
 0x15a   : > { %4404 = vst [vmem:[#allocation11_spill] sm:$0xff] %v4212_v63  ;;  %v4214_v43 = vpop.f32.mrf.mxu1  ;;  %v1497_v63 = vadd.f32 %v3274_v60, %v4138_v59  ;;  %v1500_v59 = vadd.f32 %v1451_v6, %v4152_v8  ;;  %v1504_v8 = vadd.f32 %v1467_v2, %v4160_v52 }
 0x15b   : > { %4405 = vst [vmem:[#allocation12_spill] sm:$0xff] %v4214_v43  ;;  %v4216_v3 = vpop.f32.mrf.mxu0  ;;  %v1495_v43 = vadd.f32 %v1432_v10, %v4140_v16  ;;  %v1505_v16 = vadd.f32 %v3282_v12, %v4154_v32  ;;  %v1509_v32 = vadd.f32 %v3286_v25, %v4162_v57 }
 0x15c   : > { %4406 = vst [vmem:[#allocation13_spill] sm:$0xff] %v4216_v3  ;;  %v4218_v5 = vpop.f32.mrf.mxu1  ;;  %v1498_v3 = vadd.f32 %v3275_v58, %v4142_v28  ;;  %v1503_v28 = vadd.f32 %v1464_v62, %v4156_v39  ;;  %v1702_v52 = vadd.f32 %v4184_v7, %v1500_v59 }
 0x15d   : > { %4407 = vst [vmem:[#allocation14_spill] sm:$0xff] %v4218_v5  ;;  %v4220_v49 = vpop.f32.mrf.mxu0  ;;  %v1496_v5 = vadd.f32 %v1435_v23, %v4144_v51  ;;  %v1699_v51 = vadd.f32 %v4170_v55, %v1497_v63  ;;  %v1701_v55 = vadd.f32 %v4180_v4, %v1499_v35  ;;  %v1707_v57 = vadd.f32 %v4186_v13, %v1505_v16 }
 0x15e   : > { %4408 = vst [vmem:[#allocation15_spill] sm:$0xff] %v4220_v49  ;;  %v4222_v47 = vpop.f32.mrf.mxu1  ;;  %v1700_v10 = vadd.f32 %v4174_v21, %v1498_v3  ;;  %v1510_v21 = vadd.f32 %v3287_v26, %v4166_v46  ;;  %v1708_v4 = vadd.f32 %v4190_v19, %v1506_v17  ;;  %v1706_v46 = vadd.f32 %v4192_v24, %v1504_v8  ;;  %v4414_v26 = vld [vmem:[#allocation5_spill] sm:$0xff] }
 0x15f   : > { %4409 = vst [vmem:[#allocation16_spill] sm:$0xff] %v4222_v47  ;;  %v3346_v38 = vpop.f32.mrf.mxu0  ;;  %v1501_v47 = vadd.f32 %v3278_v0, %v4146_v11  ;;  %v1697_v11 = vadd.f32 %v4172_v15, %v1495_v43  ;;  %v1698_v58 = vadd.f32 %v4176_v27, %v1496_v5  ;;  %v1507_v15 = vadd.f32 %v1480_v29, %v4164_v1  ;;  %v4419_v43 = vld [vmem:[#allocation8_spill] sm:$0xff] }
 0x160   : > { %v4224_v44 = vpop.f32.mrf.mxu1  ;;  %v1705_v0 = vadd.f32 %v4188_v14, %v1503_v28  ;;  %v1903_v1 = vadd.f32 %v3339_v45, %v1700_v10  ;;  %v1711_v12 = vadd.f32 %v4194_v22, %v1509_v32  ;;  %v1910_v7 = vadd.f32 %v3346_v38, %v1707_v57  ;;  %v4413_v14 = vld [vmem:[#allocation4_spill] sm:$0xff]  ;;  %v4417_v45 = vld [vmem:[#allocation6_spill] sm:$0xff] }
 0x161   : > { %4410 = vst [vmem:[#allocation17_spill] sm:$0xff] %v4224_v44  ;;  %v1869_v56 = vpop.f32.mrf.mxu0  ;;  %v1502_v44 = vadd.f32 %v3279_v50, %v4150_v20  ;;  %v1703_v23 = vadd.f32 %v4178_v33, %v1501_v47  ;;  %v1508_v33 = vadd.f32 %v1483_v37, %v4168_v9  ;;  %v1902_v50 = vadd.f32 %v3338_v40, %v1699_v51  ;;  %v4412_v9 = vld [vmem:[#allocation3_spill] sm:$0xff]  ;;  %v4421_v47 = vld [vmem:[#allocation9_spill] sm:$0xff]  ;;  %v4423_v17 = vld [vmem:[#allocation10_spill] sm:$0xff] }
 0x162   : > { %v4226_v42 = vpop.f32.mrf.mxu1  ;;  %v1901_v62 = vadd.f32 %v1840_v54, %v1698_v58  ;;  %v1709_v13 = vadd.f32 %v4412_v9, %v1507_v15  ;;  %v1712_v19 = vadd.f32 %v4413_v14, %v1510_v21  ;;  %v1908_v25 = vadd.f32 %v1869_v56, %v1705_v0  ;;  %v4415_v22 = vld [vmem:[#allocation11_spill] sm:$0xff] }
 0x163   : > { %v3347_v61 = vpop.f32.mrf.mxu0  ;;  %v1704_v48 = vadd.f32 %v4182_v53, %v1502_v44  ;;  %v1900_v53 = vadd.f32 %v1837_v34, %v1697_v11  ;;  %v1906_v2 = vadd.f32 %v3342_v41, %v1703_v23  ;;  %v1710_v24 = vadd.f32 %v4414_v26, %v1508_v33  ;;  %v4416_v37 = vld [vmem:[#allocation13_spill] sm:$0xff]  ;;  %v4418_v54 = vld [vmem:[#allocation7_spill] sm:$0xff] }
 0x164   : > { %v4231_v30 = vpop.f32.mrf.mxu1  ;;  %v1904_v35 = vadd.f32 %v4415_v22, %v1701_v55  ;;  %v1911_v34 = vadd.f32 %v3347_v61, %v1708_v4  ;;  %v2104_v38 = vadd.f32 %v4417_v45, %v1902_v50  ;;  %v2105_v3 = vadd.f32 %v4419_v43, %v1903_v1  ;;  %v4424_v55 = vld [vmem:[#allocation12_spill] sm:$0xff]  ;;  %v4425_v15 = vld [vmem:[#allocation14_spill] sm:$0xff] }
 0x165   : > { %v1872_v49 = vpop.f32.mrf.mxu0  ;;  %v1907_v40 = vadd.f32 %v4416_v37, %v1704_v48  ;;  %v2102_v63 = vadd.f32 %v4418_v54, %v1900_v53  ;;  %v4420_v41 = vld [vmem:[#allocation15_spill] sm:$0xff]  ;;  %v2103_v59 = vadd.f32 %v4421_v47, %v1901_v62  ;;  %v2108_v61 = vadd.f32 %v4423_v17, %v1906_v2 }
 0x166   : > { %v4237_v31 = vpop.f32.mrf.mxu1  ;;  %v1905_v56 = vadd.f32 %v4420_v41, %v1702_v52  ;;  %v1909_v51 = vadd.f32 %v1872_v49, %v1706_v46  ;;  %v2110_v58 = vadd.f32 %v4226_v42, %v1908_v25  ;;  %v2106_v48 = vadd.f32 %v4424_v55, %v1904_v35  ;;  %v4303_v49 = vld [vmem:[%s4388_s4] ss:$0 sm:$0xff]  ;;  %v4426_v0 = vld [vmem:[#allocation16_spill] sm:$0xff] }
 0x167   : > { %v3350_v60 = vpop.f32.mrf.mxu0  ;;  %v2109_v21 = vadd.f32 %v4425_v15, %v1907_v40  ;;  %v2113_v52 = vadd.f32 %v4231_v30, %v1911_v34 }
 0x168   : > { %v4247_v20 = vpop.f32.mrf.mxu1  ;;  %v4422_v16 = vld [vmem:[#allocation17_spill] sm:$0xff]  ;;  %v1914_v11 = vadd.f32 %v3350_v60, %v1711_v12  ;;  %v2107_v33 = vadd.f32 %v4426_v0, %v1905_v56  ;;  %v2111_v1 = vadd.f32 %v4237_v31, %v1909_v51 }
 0x169   : > { %v1885_v39 = vpop.f32.mrf.mxu0  ;;  %v2112_v28 = vadd.f32 %v4422_v16, %v1910_v7 }
 0x16a   : > { %v4263_v27 = vpop.f32.mrf.mxu1  ;;  %v1912_v4 = vadd.f32 %v1885_v39, %v1709_v13  ;;  %v2116_v46 = vadd.f32 %v4247_v20, %v1914_v11 }
 0x16b   : > { %v3351_v36 = vpop.f32.mrf.mxu0 }
 0x16c   : > { %v4270_v6 = vpop.f32.mrf.mxu1  ;;  %v1915_v7 = vadd.f32 %v3351_v36, %v1712_v19  ;;  %v2114_v19 = vadd.f32 %v4263_v27, %v1912_v4 }
 0x16d   : > { %v1888_v18 = vpop.f32.mrf.mxu0 }
 0x16e   : > { %v4282_v29 = vpop.f32.mrf.mxu1  ;;  %v1913_v39 = vadd.f32 %v1888_v18, %v1710_v24  ;;  %v2117_v43 = vadd.f32 %v4270_v6, %v1915_v7 }
 0x16f   : > { %v3402_v44 = vpop.f32.mrf.mxu0 }
 0x170   : > { %v3410_v5 = vpop.f32.mrf.mxu1  ;;  %v2306_v23 = vadd.f32 %v3402_v44, %v2104_v38 }
 0x171   : > { %v2241_v10 = vpop.f32.mrf.mxu0  ;;  %v2314_v60 = vadd.f32 %v3410_v5, %v2112_v28 }
 0x172   : > { %v2304_v8 = vadd.f32 %v2241_v10, %v2102_v63  ;;  %v2273_v32 = vpop.f32.mrf.mxu1  ;;  %v2329_v9 = vadd.f32 %v4303_v49, %v2306_v23 }
 0x173   : > { %v3403_v57 = vpop.f32.mrf.mxu0  ;;  %v2312_v42 = vadd.f32 %v2273_v32, %v2110_v58  ;;  %v4312_v13 = vadd.f32 %v4303_v49, %v2314_v60 }
 0x174   : > { %v2307_v50 = vadd.f32 %v3403_v57, %v2105_v3  ;;  %v3411_v53 = vpop.f32.mrf.mxu1  ;;  %v2327_v30 = vadd.f32 %v4303_v49, %v2304_v8  ;;  %v2115_v3 = vadd.f32 %v4282_v29, %v1913_v39  ;;  %v2447_v47 = vmul.f32 %v2329_v9, %v2329_v9 }
 0x175   : > { %v2315_v12 = vadd.f32 %v3411_v53, %v2113_v52  ;;  %v2244_v62 = vpop.f32.mrf.mxu0  ;;  %v4324_v26 = vadd.f32 %v4303_v49, %v2312_v42 }
 0x176   : > { %v2330_v14 = vadd.f32 %v4303_v49, %v2307_v50  ;;  %v2305_v2 = vadd.f32 %v2244_v62, %v2103_v59  ;;  %v2276_v25 = vpop.f32.mrf.mxu1  ;;  %v2445_v35 = vmul.f32 %v2327_v30, %v2327_v30 }
 0x177   : > { %v4320_v31 = vadd.f32 %v4303_v49, %v2315_v12  ;;  %v2313_v20 = vadd.f32 %v2276_v25, %v2111_v1  ;;  %v3406_v36 = vpop.f32.mrf.mxu0  ;;  %v2453_v39 = vmul.f32 %v4324_v26, %v4324_v26 }
 0x178   : > { %v2945_v18 = vpack.c.bf16 %v2330_v14, %v2329_v9  ;;  %v2328_v24 = vadd.f32 %v4303_v49, %v2305_v2  ;;  %v3414_v22 = vpop.f32.mrf.mxu1  ;;  %v2310_v34 = vadd.f32 %v3406_v36, %v2108_v61  ;;  %v2448_v59 = vmul.f32 %v2330_v14, %v2330_v14 }
 0x179   : > { %v2965_v37 = vpack.c.bf16 %v4320_v31, %v4312_v13  ;;  %v4330_v40 = vadd.f32 %v4303_v49, %v2313_v20  ;;  %v2257_v44 = vpop.f32.mrf.mxu0  ;;  %v2318_v54 = vadd.f32 %v3414_v22, %v2116_v46 }
 0x17a   : > { %2977 = vst [vmem:[%s4317_s13 + $0x8] sm:$0xff] %v2945_v18   ;;  %v2940_v27 = vpack.c.bf16 %v2328_v24, %v2327_v30  ;;  %v2423_v45 = vadd.f32 %v2328_v24, %v2327_v30  ;;  %v2446_v38 = vmul.f32 %v2328_v24, %v2328_v24  ;;  %v2289_v63 = vpop.f32.mrf.mxu1  ;;  %v2308_v56 = vadd.f32 %v2257_v44, %v2106_v48 }
 0x17b   : > { %2981 = vst [vmem:[%s4317_s13 + $0x28] sm:$0xff] %v2965_v37   ;;  %v2960_v41 = vpack.c.bf16 %v4330_v40, %v4324_v26  ;;  %v3407_v5 = vpop.f32.mrf.mxu0  ;;  %v2333_v11 = vadd.f32 %v4303_v49, %v2310_v34  ;;  %v2341_v58 = vadd.f32 %v4303_v49, %v2318_v54  ;;  %v2316_v55 = vadd.f32 %v2289_v63, %v2114_v19 }
 0x17c   : > { %2941 = vst [vmem:[%s4317_s13] sm:$0xff] %v2940_v27   ;;  %v2424_v16 = vadd.f32 %v2423_v45, %v2329_v9  ;;  %v2461_v28 = vadd.f32 %v2446_v38, %v2445_v35  ;;  %v3415_v51 = vpop.f32.mrf.mxu1  ;;  %v2331_v10 = vadd.f32 %v4303_v49, %v2308_v56  ;;  %v2311_v6 = vadd.f32 %v3407_v5, %v2109_v21 }
 0x17d   : > { %2980 = vst [vmem:[%s4317_s13 + $0x20] sm:$0xff] %v2960_v41   ;;  %v2319_v17 = vadd.f32 %v3415_v51, %v2117_v43  ;;  %v2260_v29 = vpop.f32.mrf.mxu0  ;;  %v2339_v46 = vadd.f32 %v4303_v49, %v2316_v55  ;;  %v2451_v12 = vmul.f32 %v2333_v11, %v2333_v11  ;;  %v2454_v19 = vmul.f32 %v4330_v40, %v4330_v40 }
 0x17e   : > { %v2462_v61 = vadd.f32 %v2461_v28, %v2447_v47  ;;  %v2425_v23 = vadd.f32 %v2424_v16, %v2330_v14  ;;  %v2309_v8 = vadd.f32 %v2260_v29, %v2107_v33  ;;  %v2292_v32 = vpop.f32.mrf.mxu1  ;;  %v2334_v48 = vadd.f32 %v4303_v49, %v2311_v6 }
 0x17f   : > { %v2342_v15 = vadd.f32 %v4303_v49, %v2319_v17  ;;  %v2317_v52 = vadd.f32 %v2292_v32, %v2115_v3  ;;  %v2449_v57 = vmul.f32 %v2331_v10, %v2331_v10  ;;  %v2455_v24 = vmul.f32 %v4312_v13, %v4312_v13 }
 0x180   : > { %v2426_v60 = vadd.f32 %v2425_v23, %v2331_v10  ;;  %v2463_v21 = vadd.f32 %v2462_v61, %v2448_v59  ;;  %v2332_v0 = vadd.f32 %v4303_v49, %v2309_v8  ;;  %v2955_v4 = vpack.c.bf16 %v2334_v48, %v2333_v11 }
 0x181   : > { %v2975_v42 = vpack.c.bf16 %v2342_v15, %v2341_v58  ;;  %v2340_v30 = vadd.f32 %v4303_v49, %v2317_v52  ;;  %v2452_v14 = vmul.f32 %v2334_v48, %v2334_v48  ;;  %v2456_v37 = vmul.f32 %v4320_v31, %v4320_v31 }
 0x182   : > { %v2464_v50 = vadd.f32 %v2463_v21, %v2449_v57  ;;  %v2950_v33 = vpack.c.bf16 %v2332_v0, %v2331_v10  ;;  %v2427_v53 = vadd.f32 %v2426_v60, %v2332_v0  ;;  %v2450_v1 = vmul.f32 %v2332_v0, %v2332_v0  ;;  %2979 = vst [vmem:[%s4317_s13 + $0x18] sm:$0xff] %v2955_v4  }
 0x183   : > { %2983 = vst [vmem:[%s4317_s13 + $0x38] sm:$0xff] %v2975_v42   ;;  %v2970_v9 = vpack.c.bf16 %v2340_v30, %v2339_v46  ;;  %v2457_v44 = vmul.f32 %v2339_v46, %v2339_v46  ;;  %v2458_v54 = vmul.f32 %v2340_v30, %v2340_v30  ;;  %v2460_v41 = vmul.f32 %v2342_v15, %v2342_v15 }
 0x184   : > { %2978 = vst [vmem:[%s4317_s13 + $0x10] sm:$0xff] %v2950_v33   ;;  %v2428_v62 = vadd.f32 %v2427_v53, %v2333_v11  ;;  %v2465_v7 = vadd.f32 %v2464_v50, %v2450_v1 }
 0x185   : > { %2982 = vst [vmem:[%s4317_s13 + $0x30] sm:$0xff] %v2970_v9  }
 0x186   : > { %v2429_v2 = vadd.f32 %v2428_v62, %v2334_v48  ;;  %v2466_v25 = vadd.f32 %v2465_v7, %v2451_v12 }
 0x188   : > { %v2430_v20 = vadd.f32 %v2429_v2, %v4324_v26  ;;  %v2467_v36 = vadd.f32 %v2466_v25, %v2452_v14 }
 0x18a   : > { %v2468_v49 = vadd.f32 %v2467_v36, %v2453_v39  ;;  %v2431_v18 = vadd.f32 %v2430_v20, %v4330_v40  ;;  %v2459_v40 = vmul.f32 %v2341_v58, %v2341_v58 }
 0x18c   : > { %v2432_v22 = vadd.f32 %v2431_v18, %v4312_v13  ;;  %v2469_v35 = vadd.f32 %v2468_v49, %v2454_v19 }
 0x18e   : > { %v2433_v34 = vadd.f32 %v2432_v22, %v4320_v31  ;;  %v2470_v26 = vadd.f32 %v2469_v35, %v2455_v24 }
 0x190   : > { %v2434_v27 = vadd.f32 %v2433_v34, %v2339_v46  ;;  %v2471_v45 = vadd.f32 %v2470_v26, %v2456_v37 }
 0x192   : > { %v2435_v38 = vadd.f32 %v2434_v27, %v2340_v30  ;;  %v2472_v63 = vadd.f32 %v2471_v45, %v2457_v44 }
 0x194   : > { %v2436_v43 = vadd.f32 %v2435_v38, %v2341_v58  ;;  %v2473_v3 = vadd.f32 %v2472_v63, %v2458_v54 }
 0x196   : > { %v2437_v13 = vadd.f32 %v2436_v43, %v2342_v15  ;;  %v2474_v56 = vadd.f32 %v2473_v3, %v2459_v40 }
 0x198   : > { %v2438_v5 = vrot.slane %v2437_v13, 4  ;;  %v2475_v47 = vadd.f32 %v2474_v56, %v2460_v41 }
 0x19a   : > { %v2439_v31 = vadd.f32 %v2438_v5, %v2437_v13  ;;  %v2476_v59 = vrot.slane %v2475_v47, 4 }
 0x19c   : > { %v2440_v16 = vrot.slane %v2439_v31, 2  ;;  %v2477_v28 = vadd.f32 %v2476_v59, %v2475_v47 }
 0x19e   : > { %v2441_v51 = vadd.f32 %v2440_v16, %v2439_v31  ;;  %v2478_v11 = vrot.slane %v2477_v28, 2 }
 0x1a0   : > { %v2442_v10 = vrot.slane %v2441_v51, 1  ;;  %v2479_v6 = vadd.f32 %v2478_v11, %v2477_v28 }
 0x1a2   : > { %v2443_v17 = vadd.f32 %v2442_v10, %v2441_v51  ;;  %v2480_v29 = vrot.slane %v2479_v6, 1 }
 0x1a4   : > { %2444 = vst [vmem:[%s436_s19] sm:$0x1] %v2443_v17  ;;  %v2481_v61 = vadd.f32 %v2480_v29, %v2479_v6 }
 0x1a6   : > { %2482 = vst [vmem:[%s436_s19 + $0x1] sm:$0x1] %v2481_v61 }
 0x1a7 PF: > { %s17_s25 = sadd.s32 1, %s3593_s25   ;;  %s4427_s21 = smov %s3585_s23 }
 0x1a8   : > { %p14_p0 = scmp.ge.s32.totalorder %s17_s25, 6   ;;  %s4428_s22 = smov %s3589_s24 }
 0x1a9   : > { %s4429_s23 = smov %s4432_s26  ;;  %s4430_s24 = smov %s4436_s27 }
 0x1aa   :  { %16 = sbr.rel (!%p14_p0) target bundleno = 3 (0x3), region = 99 }

</bundles_post_ra>
